<compile_context>
chip_gen: v6e
topology: v6e:2x2x1
jax: 0.10.0
libtpu: 0.0.40
codegen_flags: <defaults>
</compile_context>

<pallas_src>
import jax
import jax.numpy as jnp
from jax.experimental import pallas as pl
from jax.experimental.pallas import tpu as pltpu

N_STATES = 57600          # from the PyTorch module
N_ACTIONS = 4             # env.action_space.n (synthetic choice)
HIDDEN = 50

TK = 9600                 # K tile: multiple of 128 (9600 = 75*128), ~1.9 MB weight DMA
NK = N_STATES // TK       # 6 reduction steps
assert TK % 128 == 0 and NK * TK == N_STATES


def _net_kernel(x_ref, w1_ref, b1_ref, w2_ref, b2_ref, o_ref, acc_ref):
    """Fused forward: accumulate x@w1 over K tiles; on the last tile apply
    bias + ReLU and the tiny 50 -> N_ACTIONS output layer."""
    k = pl.program_id(0)

    @pl.when(k == 0)
    def _():
        acc_ref[...] = jnp.zeros_like(acc_ref)

    # [B, TK] @ [TK, HIDDEN] -> accumulate [B, HIDDEN] in f32 on the MXU.
    acc_ref[...] += jnp.dot(
        x_ref[...], w1_ref[...], preferred_element_type=jnp.float32
    )

    @pl.when(k == pl.num_programs(0) - 1)
    def _():
        h = jnp.maximum(acc_ref[...] + b1_ref[...], 0.0)           # [B, HIDDEN]
        out = jnp.dot(h, w2_ref[...], preferred_element_type=jnp.float32)
        o_ref[...] = (out + b2_ref[...]).astype(o_ref.dtype)        # [B, N_ACTIONS]


@jax.jit
def net_forward(x, w1, b1, w2, b2):
    """x: [B, N_STATES] f32 -> actions_value: [B, N_ACTIONS] f32."""
    B, K = x.shape
    assert K == N_STATES

    return pl.pallas_call(
        _net_kernel,
        out_shape=jax.ShapeDtypeStruct((B, N_ACTIONS), jnp.float32),
        grid_spec=pltpu.PrefetchScalarGridSpec(
            num_scalar_prefetch=0,
            grid=(NK,),
            in_specs=[
                # x tile: [B, TK] — lane dim TK is a multiple of 128.
                pl.BlockSpec((B, TK), lambda k: (0, k)),
                # fc1 weight tile: [TK, HIDDEN] (unpadded; 50 == full dim).
                pl.BlockSpec((TK, HIDDEN), lambda k: (k, 0)),
                # Tiny always-resident epilogue params (full-array blocks).
                pl.BlockSpec((1, HIDDEN), lambda k: (0, 0)),
                pl.BlockSpec((HIDDEN, N_ACTIONS), lambda k: (0, 0)),
                pl.BlockSpec((1, N_ACTIONS), lambda k: (0, 0)),
            ],
            # Output block index is constant across k -> resident accumulator
            # semantics; written once on the last reduction step.
            out_specs=pl.BlockSpec((B, N_ACTIONS), lambda k: (0, 0)),
            scratch_shapes=[pltpu.VMEM((B, HIDDEN), jnp.float32)],
        ),
        compiler_params=pltpu.CompilerParams(
            dimension_semantics=("arbitrary",),
            vmem_limit_bytes=32 * 1024 * 1024,
        ),
    )(x, w1, b1.reshape(1, HIDDEN), w2, b2.reshape(1, N_ACTIONS))


def init_params(key):
    """Deterministic init mirroring the PyTorch module:
       weights ~ Normal(0, 0.1); biases use PyTorch Linear default
       Uniform(-1/sqrt(fan_in), 1/sqrt(fan_in))."""
    k1, k2, k3, k4 = jax.random.split(key, 4)
    w1 = 0.1 * jax.random.normal(k1, (N_STATES, HIDDEN), jnp.float32)
    bound1 = 1.0 / jnp.sqrt(jnp.float32(N_STATES))
    b1 = jax.random.uniform(k2, (HIDDEN,), jnp.float32, -bound1, bound1)
    w2 = 0.1 * jax.random.normal(k3, (HIDDEN, N_ACTIONS), jnp.float32)
    bound2 = 1.0 / jnp.sqrt(jnp.float32(HIDDEN))
    b2 = jax.random.uniform(k4, (N_ACTIONS,), jnp.float32, -bound2, bound2)
    return w1, b1, w2, b2


if __name__ == "__main__":
    key = jax.random.PRNGKey(0)
    kx, kp = jax.random.split(key)

    batch = 2
    x = jax.random.normal(kx, (batch, N_STATES), jnp.float32)
    w1, b1, w2, b2 = init_params(kp)

    actions_value = net_forward(x, w1, b1, w2, b2)
    jax.block_until_ready(actions_value)

    # Cross-check against a plain-JAX reference of the same forward pass.
    ref = jnp.maximum(x @ w1 + b1, 0.0) @ w2 + b2
    assert actions_value.shape == (batch, N_ACTIONS)
    assert jnp.allclose(actions_value, ref, atol=2e-3, rtol=2e-3)

    print("KERNEL_OK")
</pallas_src>

<mosaic_0001>
module attributes {stable_mosaic.version = 11 : i64} {
  func.func @_net_kernel(%arg0: i32, %arg1: memref<2x9600xf32, #tpu.memory_space<vmem>>, %arg2: memref<9600x50xf32, #tpu.memory_space<vmem>>, %arg3: memref<1x50xf32, #tpu.memory_space<vmem>>, %arg4: memref<50x4xf32, #tpu.memory_space<vmem>>, %arg5: memref<1x4xf32, #tpu.memory_space<vmem>>, %arg6: memref<2x4xf32, #tpu.memory_space<vmem>>, %arg7: memref<2x50xf32, #tpu.memory_space<vmem>>) attributes {dimension_semantics = [#tpu.dimension_semantics<arbitrary>], iteration_bounds = array<i64: 6>, scalar_prefetch = 0 : i64, scratch_operands = 1 : i64, tpu.core_type = #tpu.core_type<tc>, window_params = [{transform_indices = @transform_0, window_bounds = array<i64: 2, 9600>}, {transform_indices = @transform_1, window_bounds = array<i64: 9600, 50>}, {pipeline_mode = #tpu.pipeline_mode<synchronous>, transform_indices = @transform_2, window_bounds = array<i64: 1, 50>}, {pipeline_mode = #tpu.pipeline_mode<synchronous>, transform_indices = @transform_3, window_bounds = array<i64: 50, 4>}, {pipeline_mode = #tpu.pipeline_mode<synchronous>, transform_indices = @transform_4, window_bounds = array<i64: 1, 4>}, {pipeline_mode = #tpu.pipeline_mode<synchronous>, transform_indices = @transform_5, window_bounds = array<i64: 2, 4>}]} {
    %c0_i32 = arith.constant 0 : i32
    %0 = arith.cmpi eq, %arg0, %c0_i32 : i32
    %1 = arith.extui %0 : i1 to i32
    %c0_i32_0 = arith.constant 0 : i32
    %2 = arith.cmpi ne, %1, %c0_i32_0 : i32
    scf.if %2 {
      %cst_9 = arith.constant 0.000000e+00 : f32
      %12 = vector.broadcast %cst_9 : f32 to vector<2x50xf32>
      %c0_10 = arith.constant 0 : index
      %c0_11 = arith.constant 0 : index
      %13 = vector.load %arg7[%c0_10, %c0_11] : memref<2x50xf32, #tpu.memory_space<vmem>>, vector<2x50xf32>
      tpu.vector_store %arg7[%c0_10, %c0_11], %12 {strides = array<i32>} : memref<2x50xf32, #tpu.memory_space<vmem>>, vector<2x50xf32>,
    } else {
    }
    %c0 = arith.constant 0 : index
    %c0_1 = arith.constant 0 : index
    %3 = vector.load %arg7[%c0, %c0_1] : memref<2x50xf32, #tpu.memory_space<vmem>>, vector<2x50xf32>
    %c0_2 = arith.constant 0 : index
    %c0_3 = arith.constant 0 : index
    %4 = vector.load %arg1[%c0_2, %c0_3] : memref<2x9600xf32, #tpu.memory_space<vmem>>, vector<2x9600xf32>
    %c0_4 = arith.constant 0 : index
    %c0_5 = arith.constant 0 : index
    %5 = vector.load %arg2[%c0_4, %c0_5] : memref<9600x50xf32, #tpu.memory_space<vmem>>, vector<9600x50xf32>
    %cst = arith.constant dense<0.000000e+00> : vector<2x50xf32>
    %6 = tpu.matmul %4, %5, %cst {dimension_numbers = #tpu.dot_dimension_numbers<[1], [0], [0], [1], [0, 0, 1, 1], [], []>} : vector<2x9600xf32>, vector<9600x50xf32>, vector<2x50xf32> -> vector<2x50xf32>
    %7 = arith.addf %3, %6 : vector<2x50xf32>
    %c0_6 = arith.constant 0 : index
    %c0_7 = arith.constant 0 : index
    %8 = vector.load %arg7[%c0_6, %c0_7] : memref<2x50xf32, #tpu.memory_space<vmem>>, vector<2x50xf32>
    tpu.vector_store %arg7[%c0_6, %c0_7], %7 {strides = array<i32>} : memref<2x50xf32, #tpu.memory_space<vmem>>, vector<2x50xf32>,
    %c5_i32 = arith.constant 5 : i32
    %9 = arith.cmpi eq, %arg0, %c5_i32 : i32
    %10 = arith.extui %9 : i1 to i32
    %c0_i32_8 = arith.constant 0 : i32
    %11 = arith.cmpi ne, %10, %c0_i32_8 : i32
    scf.if %11 {
      %c0_9 = arith.constant 0 : index
      %c0_10 = arith.constant 0 : index
      %12 = vector.load %arg7[%c0_9, %c0_10] : memref<2x50xf32, #tpu.memory_space<vmem>>, vector<2x50xf32>
      %c0_11 = arith.constant 0 : index
      %c0_12 = arith.constant 0 : index
      %13 = vector.load %arg3[%c0_11, %c0_12] : memref<1x50xf32, #tpu.memory_space<vmem>>, vector<1x50xf32>
      %14 = vector.broadcast %13 : vector<1x50xf32> to vector<2x50xf32>
      %15 = arith.addf %12, %14 : vector<2x50xf32>
      %cst_13 = arith.constant 0.000000e+00 : f32
      %16 = vector.broadcast %cst_13 : f32 to vector<2x50xf32>
      %17 = arith.maximumf %15, %16 : vector<2x50xf32>
      %c0_14 = arith.constant 0 : index
      %c0_15 = arith.constant 0 : index
      %18 = vector.load %arg4[%c0_14, %c0_15] : memref<50x4xf32, #tpu.memory_space<vmem>>, vector<50x4xf32>
      %cst_16 = arith.constant dense<0.000000e+00> : vector<2x4xf32>
      %19 = tpu.matmul %17, %18, %cst_16 {dimension_numbers = #tpu.dot_dimension_numbers<[1], [0], [0], [1], [0, 0, 1, 1], [], []>} : vector<2x50xf32>, vector<50x4xf32>, vector<2x4xf32> -> vector<2x4xf32>
      %c0_17 = arith.constant 0 : index
      %c0_18 = arith.constant 0 : index
      %20 = vector.load %arg5[%c0_17, %c0_18] : memref<1x4xf32, #tpu.memory_space<vmem>>, vector<1x4xf32>
      %21 = vector.broadcast %20 : vector<1x4xf32> to vector<2x4xf32>
      %22 = arith.addf %19, %21 : vector<2x4xf32>
      %c0_19 = arith.constant 0 : index
      %c0_20 = arith.constant 0 : index
      %23 = vector.load %arg6[%c0_19, %c0_20] : memref<2x4xf32, #tpu.memory_space<vmem>>, vector<2x4xf32>
      tpu.vector_store %arg6[%c0_19, %c0_20], %22 {strides = array<i32>} : memref<2x4xf32, #tpu.memory_space<vmem>>, vector<2x4xf32>,
    } else {
    }
    return
  }
  func.func @transform_0(%arg0: i32) -> (i32, i32) {
    %c0_i32 = arith.constant 0 : i32
    %c0_i32_0 = arith.constant 0 : i32
    return %c0_i32, %arg0 : i32, i32
  }
  func.func @transform_1(%arg0: i32) -> (i32, i32) {
    %c0_i32 = arith.constant 0 : i32
    %c0_i32_0 = arith.constant 0 : i32
    return %arg0, %c0_i32 : i32, i32
  }
  func.func @transform_2(%arg0: i32) -> (i32, i32) {
    %c0_i32 = arith.constant 0 : i32
    %c0_i32_0 = arith.constant 0 : i32
    %c0_i32_1 = arith.constant 0 : i32
    return %c0_i32, %c0_i32_0 : i32, i32
  }
  func.func @transform_3(%arg0: i32) -> (i32, i32) {
    %c0_i32 = arith.constant 0 : i32
    %c0_i32_0 = arith.constant 0 : i32
    %c0_i32_1 = arith.constant 0 : i32
    return %c0_i32, %c0_i32_0 : i32, i32
  }
  func.func @transform_4(%arg0: i32) -> (i32, i32) {
    %c0_i32 = arith.constant 0 : i32
    %c0_i32_0 = arith.constant 0 : i32
    %c0_i32_1 = arith.constant 0 : i32
    return %c0_i32, %c0_i32_0 : i32, i32
  }
  func.func @transform_5(%arg0: i32) -> (i32, i32) {
    %c0_i32 = arith.constant 0 : i32
    %c0_i32_0 = arith.constant 0 : i32
    %c0_i32_1 = arith.constant 0 : i32
    return %c0_i32, %c0_i32_0 : i32, i32
  }
}

</mosaic_0001>

<bundles_post_ra>
// kernel: net_forward.1
= control target key start
LH: loop header
LB: loop body
LE: loop exit
PB: predicated region body
PF: predicated region fallthrough
CT: control target
= control target key end

     0   :  { %10 = vsyncpa [#allocation4], 0  ;;  %s6207_s18 = smov 0   ;;  %s7549_s0 = inlined_call_operand.vmem [shape: f32[2,57600], index: 0, kind: input, shape index: {}]   ;;  %s7550_s1 = inlined_call_operand.vmem [shape: f32[57600,50], index: 1, kind: input, shape index: {}]   ;;  %s7551_s2 = inlined_call_operand.vmem [shape: f32[1,50], index: 2, kind: input, shape index: {}]   ;;  %s7552_s3 = inlined_call_operand.vmem [shape: f32[50,4], index: 3, kind: input, shape index: {}]   ;;  %s7553_s4 = inlined_call_operand.vmem [shape: f32[1,4], index: 4, kind: input, shape index: {}]   ;;  %s7554_s5 = inlined_call_operand.hbm [shape: f32[2,4], index: 5, kind: output, shape index: {}]  }
   0x1 LB: > { %s6213_s19 = sadd.s32 4294967295, %s6168_s18   ;;  %p4709_p0 = scmp.ge.s32.totalorder %s6168_s18, 1  ;;  %s6168_s18 = sphi %s6207_s18, %s16_s18  }
   0x2   : > { %p195_p1 = scmp.lt.s32.totalorder %s6168_s18, 7 }
   0x4   : > { %p196_p2 = pnand %p4709_p0, %p195_p1 }
   0x5   : > { %s223_s20 = smul.u32 (!%p196_p2), 75, %s6213_s19  ;;  %p4712_p5 = scmp.ne.s32.totalorder (!%p196_p2), %s6213_s19, 0 }
   0x6   : > { %199 = sbr.rel (%p196_p2) target bundleno = 1096 (0x448), region = 40 }
   0x7   : > { %s229_s21 = smul.u32 (!%p196_p2), 1200, %s6213_s19  ;;  %p224_p3 = scmp.lt.s32.totalorder (!%p196_p2), %s223_s20, 449 }
   0x9   : > { %p230_p4 = scmp.lt.s32.totalorder (!%p196_p2), %s229_s21, 7199 }
   0xb   : > { %s7556_s20 = smov (!%p224_p3, %s223_s20), 449  ;;  %s7558_s21 = smov (!%p230_p4, %s229_s21), 7199 }
   0xc   : > { %s4710_s22 = sshll.u32 %s7556_s20, 1  ;;  %s4711_s26 = sshll.u32 %s7558_s21, 3 }
   0xd   : > { %s6222_s25 = scalar_lea.vmem %s7549_s0, %s4710_s22  ;;  %s6227_s29 = scalar_lea.vmem %s7550_s1, %s4711_s26 }
   0xe   : > { %238 = sbr.rel (%p4712_p5) target bundleno = 21 (0x15), region = 44 }
  0x13   : > { %vm239_vm0 = vcmask 402432   ;;  %v6170_v0 = vmov 0.0  }
  0x14   : > { %240 = vst.msk [vmem:[#allocation2] sm:$0x3] %vm239_vm0, %v6170_v0 }
  0x15 PF: > { %v292_v1 = vld [vmem:[%s6227_s29 + $0xf8] sm:$0xff]  ;;  %v291_v5 = vld [vmem:[%s6227_s29 + $0xf0] sm:$0xff]  ;;  %v290_v9 = vld [vmem:[%s6227_s29 + $0xe8] sm:$0xff]  ;;  %v6171_v31 = vmov 1983009808   ;;  %v1484_v33 = vlaneseq  ;;  %vm6173_vm1 = vmmov 0  }
  0x16   : > { %v324_v2 = vld [vmem:[%s6227_s29 + $0x1f8] sm:$0xff]  ;;  %4722 = vmatprep.subr.mxu0 %v292_v1  ;;  %v323_v6 = vld [vmem:[%s6227_s29 + $0x1f0] sm:$0xff]  ;;  %v322_v10 = vld [vmem:[%s6227_s29 + $0x1e8] sm:$0xff]  ;;  %v1482_v32 = vunpack.c.l.s4 %v6171_v31  ;;  %vm4538_vm2 = vcmask 402432   ;;  %p4713_p6 = scmp.ne.s32.totalorder %s6213_s19, 5 }
  0x17   : > { %v276_v3 = vld [vmem:[%s6227_s29 + $0x78] sm:$0xff]  ;;  %4757 = vmatprep.subr.mxu1 %v324_v2  ;;  %v275_v7 = vld [vmem:[%s6227_s29 + $0x70] sm:$0xff]  ;;  %v274_v11 = vld [vmem:[%s6227_s29 + $0x68] sm:$0xff]  ;;  %v1485_v43 = vshrl.u32 %v1484_v33, 7 }
  0x18   : > { %v308_v4 = vld [vmem:[%s6227_s29 + $0x178] sm:$0xff]  ;;  %4723 = vmatpush3.msra.mxu0 %v276_v3  ;;  %v307_v8 = vld [vmem:[%s6227_s29 + $0x170] sm:$0xff]  ;;  %v306_v12 = vld [vmem:[%s6227_s29 + $0x168] sm:$0xff]  ;;  %v1483_v42 = vunpack.c.0.s8 %v1482_v32 }
  0x19   : > { %4758 = vmatpush3.msra.mxu1 %v308_v4  ;;  %4724 = vmatprep.subr.mxu0 %v291_v5  ;;  %v289_v13 = vld [vmem:[%s6227_s29 + $0xe0] sm:$0xff]  ;;  %v288_v17 = vld [vmem:[%s6227_s29 + $0xd8] sm:$0xff]  ;;  %v287_v21 = vld [vmem:[%s6227_s29 + $0xd0] sm:$0xff] }
  0x1a   : > { %4759 = vmatprep.subr.mxu1 %v323_v6  ;;  %4725 = vmatpush3.msra.mxu0 %v275_v7  ;;  %v321_v14 = vld [vmem:[%s6227_s29 + $0x1e0] sm:$0xff]  ;;  %v320_v18 = vld [vmem:[%s6227_s29 + $0x1d8] sm:$0xff]  ;;  %v319_v22 = vld [vmem:[%s6227_s29 + $0x1d0] sm:$0xff]  ;;  %v6276_v52 = vsub.s32 %v1483_v42, %v1485_v43 }
  0x1b   : > { %4760 = vmatpush3.msra.mxu1 %v307_v8  ;;  %4726 = vmatprep.subr.mxu0 %v290_v9  ;;  %v273_v15 = vld [vmem:[%s6227_s29 + $0x60] sm:$0xff]  ;;  %v272_v19 = vld [vmem:[%s6227_s29 + $0x58] sm:$0xff]  ;;  %v271_v23 = vld [vmem:[%s6227_s29 + $0x50] sm:$0xff] }
  0x1c   : > { %4761 = vmatprep.subr.mxu1 %v322_v10  ;;  %v305_v16 = vld [vmem:[%s6227_s29 + $0x160] sm:$0xff]  ;;  %4727 = vmatpush3.msra.mxu0 %v274_v11  ;;  %v304_v20 = vld [vmem:[%s6227_s29 + $0x158] sm:$0xff]  ;;  %v303_v24 = vld [vmem:[%s6227_s29 + $0x150] sm:$0xff] }
  0x1d   : > { %4762 = vmatpush3.msra.mxu1 %v306_v12  ;;  %4728 = vmatprep.subr.mxu0 %v289_v13  ;;  %v286_v25 = vld [vmem:[%s6227_s29 + $0xc8] sm:$0xff]  ;;  %v285_v29 = vld [vmem:[%s6227_s29 + $0xc0] sm:$0xff]  ;;  %v284_v36 = vld [vmem:[%s6227_s29 + $0xb8] sm:$0xff] }
  0x1e   : > { %4763 = vmatprep.subr.mxu1 %v321_v14  ;;  %4729 = vmatpush3.msra.mxu0 %v273_v15  ;;  %v318_v26 = vld [vmem:[%s6227_s29 + $0x1c8] sm:$0xff]  ;;  %v317_v30 = vld [vmem:[%s6227_s29 + $0x1c0] sm:$0xff]  ;;  %v316_v37 = vld [vmem:[%s6227_s29 + $0x1b8] sm:$0xff] }
  0x1f   : > { %4764 = vmatpush3.msra.mxu1 %v305_v16  ;;  %4730 = vmatprep.subr.mxu0 %v288_v17  ;;  %v270_v27 = vld [vmem:[%s6227_s29 + $0x48] sm:$0xff]  ;;  %v269_v34 = vld [vmem:[%s6227_s29 + $0x40] sm:$0xff]  ;;  %v268_v38 = vld [vmem:[%s6227_s29 + $0x38] sm:$0xff] }
  0x20   : > { %4765 = vmatprep.subr.mxu1 %v320_v18  ;;  %4731 = vmatpush3.msra.mxu0 %v272_v19  ;;  %v302_v28 = vld [vmem:[%s6227_s29 + $0x148] sm:$0xff]  ;;  %v301_v35 = vld [vmem:[%s6227_s29 + $0x140] sm:$0xff]  ;;  %v300_v39 = vld [vmem:[%s6227_s29 + $0x138] sm:$0xff] }
  0x21   : > { %4766 = vmatpush3.msra.mxu1 %v304_v20  ;;  %4732 = vmatprep.subr.mxu0 %v287_v21  ;;  %v283_v40 = vld [vmem:[%s6227_s29 + $0xb0] sm:$0xff]  ;;  %v282_v46 = vld [vmem:[%s6227_s29 + $0xa8] sm:$0xff]  ;;  %v281_v50 = vld [vmem:[%s6227_s29 + $0xa0] sm:$0xff] }
  0x22   : > { %4767 = vmatprep.subr.mxu1 %v319_v22  ;;  %4733 = vmatpush3.msra.mxu0 %v271_v23  ;;  %v315_v41 = vld [vmem:[%s6227_s29 + $0x1b0] sm:$0xff]  ;;  %v314_v47 = vld [vmem:[%s6227_s29 + $0x1a8] sm:$0xff]  ;;  %v313_v51 = vld [vmem:[%s6227_s29 + $0x1a0] sm:$0xff] }
  0x23   : > { %4768 = vmatpush3.msra.mxu1 %v303_v24  ;;  %4734 = vmatprep.subr.mxu0 %v286_v25  ;;  %v267_v44 = vld [vmem:[%s6227_s29 + $0x30] sm:$0xff]  ;;  %v266_v48 = vld [vmem:[%s6227_s29 + $0x28] sm:$0xff]  ;;  %v265_v53 = vld [vmem:[%s6227_s29 + $0x20] sm:$0xff] }
  0x24   : > { %4769 = vmatprep.subr.mxu1 %v318_v26  ;;  %4735 = vmatpush3.msra.mxu0 %v270_v27  ;;  %v299_v45 = vld [vmem:[%s6227_s29 + $0x130] sm:$0xff]  ;;  %v298_v49 = vld [vmem:[%s6227_s29 + $0x128] sm:$0xff]  ;;  %v297_v54 = vld [vmem:[%s6227_s29 + $0x120] sm:$0xff] }
  0x25   : > { %4770 = vmatpush3.msra.mxu1 %v302_v28  ;;  %4736 = vmatprep.subr.mxu0 %v285_v29  ;;  %v242_v55 = vld [vmem:[%s6222_s25] sm:$0xff]  ;;  %v280_v56 = vld [vmem:[%s6227_s29 + $0x98] sm:$0xff]  ;;  %v279_v61 = vld [vmem:[%s6227_s29 + $0x90] sm:$0xff] }
  0x26   : > { %4771 = vmatprep.subr.mxu1 %v317_v30  ;;  %4737 = vmatpush3.msra.mxu0 %v269_v34  ;;  %v312_v57 = vld [vmem:[%s6227_s29 + $0x198] sm:$0xff]  ;;  %v1480_v58 = vcombine.high %v242_v55, %v242_v55  ;;  %v311_v62 = vld [vmem:[%s6227_s29 + $0x190] sm:$0xff]  ;;  %v1487_v63 = vrot.slane %v242_v55, %v6276_v52  ;;  %v278_v3 = vld [vmem:[%s6227_s29 + $0x88] sm:$0xff] }
  0x27   : > { %4772 = vmatpush3.msra.mxu1 %v301_v35  ;;  %4738 = vmatprep.subr.mxu0 %v284_v36  ;;  %v264_v59 = vld [vmem:[%s6227_s29 + $0x18] sm:$0xff]  ;;  %v263_v0 = vld [vmem:[%s6227_s29 + $0x10] sm:$0xff]  ;;  %v310_v4 = vld [vmem:[%s6227_s29 + $0x188] sm:$0xff] }
  0x28   : > { %4773 = vmatprep.subr.mxu1 %v316_v37  ;;  %4739 = vmatpush3.msra.mxu0 %v268_v38  ;;  %v296_v60 = vld [vmem:[%s6227_s29 + $0x118] sm:$0xff]  ;;  %v295_v1 = vld [vmem:[%s6227_s29 + $0x110] sm:$0xff]  ;;  %v1494_v2 = vrot.slane %v1480_v58, %v6276_v52  ;;  %v262_v5 = vld [vmem:[%s6227_s29 + $0x8] sm:$0xff]  ;;  %v1495_v9 = vcombine.high %v1487_v63, %v1487_v63 }
  0x29   : > { %4774 = vmatpush3.msra.mxu1 %v300_v39  ;;  %4740 = vmatprep.subr.mxu0 %v283_v40  ;;  %v294_v6 = vld [vmem:[%s6227_s29 + $0x108] sm:$0xff]  ;;  %v277_v7 = vld [vmem:[%s6227_s29 + $0x80] sm:$0xff]  ;;  %v356_v13 = vld [vmem:[%s6227_s29 + $0x2f8] sm:$0xff] }
  0x2a   : > { %4775 = vmatprep.subr.mxu1 %v315_v41  ;;  %4741 = vmatpush3.msra.mxu0 %v267_v44  ;;  %v309_v8 = vld [vmem:[%s6227_s29 + $0x180] sm:$0xff]  ;;  %v1496_v11 = vcombine.high %v1494_v2, %v1494_v2  ;;  %v388_v14 = vld [vmem:[%s6227_s29 + $0x3f8] sm:$0xff]  ;;  %v355_v17 = vld [vmem:[%s6227_s29 + $0x2f0] sm:$0xff] }
  0x2b   : > { %4776 = vmatpush3.msra.mxu1 %v299_v45  ;;  %4742 = vmatprep.subr.mxu0 %v282_v46  ;;  %v261_v10 = vld [vmem:[%s6227_s29] sm:$0xff]  ;;  %v340_v15 = vld [vmem:[%s6227_s29 + $0x278] sm:$0xff]  ;;  %v387_v18 = vld [vmem:[%s6227_s29 + $0x3f0] sm:$0xff] }
  0x2c   : > { %4777 = vmatprep.subr.mxu1 %v314_v47  ;;  %4743 = vmatpush3.msra.mxu0 %v266_v48  ;;  %v293_v12 = vld [vmem:[%s6227_s29 + $0x100] sm:$0xff]  ;;  %v372_v16 = vld [vmem:[%s6227_s29 + $0x378] sm:$0xff]  ;;  %v339_v19 = vld [vmem:[%s6227_s29 + $0x270] sm:$0xff] }
  0x2d   : > { %4778 = vmatpush3.msra.mxu1 %v298_v49  ;;  %4744 = vmatprep.subr.mxu0 %v281_v50  ;;  %v371_v20 = vld [vmem:[%s6227_s29 + $0x370] sm:$0xff]  ;;  %v354_v21 = vld [vmem:[%s6227_s29 + $0x2e8] sm:$0xff]  ;;  %v353_v25 = vld [vmem:[%s6227_s29 + $0x2e0] sm:$0xff] }
  0x2e   : > { %4779 = vmatprep.subr.mxu1 %v313_v51  ;;  %4745 = vmatpush3.msra.mxu0 %v265_v53  ;;  %v386_v22 = vld [vmem:[%s6227_s29 + $0x3e8] sm:$0xff]  ;;  %v385_v26 = vld [vmem:[%s6227_s29 + $0x3e0] sm:$0xff]  ;;  %v352_v29 = vld [vmem:[%s6227_s29 + $0x2d8] sm:$0xff] }
  0x2f   : > { %4780 = vmatpush3.msra.mxu1 %v297_v54  ;;  %4746 = vmatprep.subr.mxu0 %v280_v56  ;;  %v338_v23 = vld [vmem:[%s6227_s29 + $0x268] sm:$0xff]  ;;  %v337_v27 = vld [vmem:[%s6227_s29 + $0x260] sm:$0xff]  ;;  %v384_v30 = vld [vmem:[%s6227_s29 + $0x3d8] sm:$0xff] }
  0x30   : > { %4781 = vmatprep.subr.mxu1 %v312_v57  ;;  %4747 = vmatpush3.msra.mxu0 %v264_v59  ;;  %v370_v24 = vld [vmem:[%s6227_s29 + $0x368] sm:$0xff]  ;;  %v369_v28 = vld [vmem:[%s6227_s29 + $0x360] sm:$0xff]  ;;  %v336_v31 = vld [vmem:[%s6227_s29 + $0x258] sm:$0xff] }
  0x31   : > { %4782 = vmatpush3.msra.mxu1 %v296_v60  ;;  %4748 = vmatprep.subr.mxu0 %v279_v61  ;;  %v368_v32 = vld [vmem:[%s6227_s29 + $0x358] sm:$0xff]  ;;  %v351_v33 = vld [vmem:[%s6227_s29 + $0x2d0] sm:$0xff]  ;;  %v350_v37 = vld [vmem:[%s6227_s29 + $0x2c8] sm:$0xff] }
  0x32   : > { %4783 = vmatprep.subr.mxu1 %v311_v62  ;;  %4749 = vmatpush3.msra.mxu0 %v263_v0  ;;  %v383_v34 = vld [vmem:[%s6227_s29 + $0x3d0] sm:$0xff]  ;;  %v382_v38 = vld [vmem:[%s6227_s29 + $0x3c8] sm:$0xff]  ;;  %v349_v41 = vld [vmem:[%s6227_s29 + $0x2c0] sm:$0xff] }
  0x33   : > { %4784 = vmatpush3.msra.mxu1 %v295_v1  ;;  %4750 = vmatprep.subr.mxu0 %v278_v3  ;;  %v335_v35 = vld [vmem:[%s6227_s29 + $0x250] sm:$0xff]  ;;  %v334_v39 = vld [vmem:[%s6227_s29 + $0x248] sm:$0xff]  ;;  %v381_v42 = vld [vmem:[%s6227_s29 + $0x3c0] sm:$0xff] }
  0x34   : > { %4785 = vmatprep.subr.mxu1 %v310_v4  ;;  %4751 = vmatpush3.msra.mxu0 %v262_v5  ;;  %v367_v36 = vld [vmem:[%s6227_s29 + $0x350] sm:$0xff]  ;;  %v366_v40 = vld [vmem:[%s6227_s29 + $0x348] sm:$0xff]  ;;  %v333_v43 = vld [vmem:[%s6227_s29 + $0x240] sm:$0xff] }
  0x35   : > { %4786 = vmatpush3.msra.mxu1 %v294_v6  ;;  %4752 = vmatprep.subr.mxu0 %v277_v7  ;;  %v365_v44 = vld [vmem:[%s6227_s29 + $0x340] sm:$0xff]  ;;  %v348_v45 = vld [vmem:[%s6227_s29 + $0x2b8] sm:$0xff]  ;;  %v347_v49 = vld [vmem:[%s6227_s29 + $0x2b0] sm:$0xff] }
  0x36   : > { %4787 = vmatprep.subr.mxu1 %v309_v8  ;;  %4753 = vmatpush3.msra.mxu0 %v261_v10  ;;  %v380_v46 = vld [vmem:[%s6227_s29 + $0x3b8] sm:$0xff]  ;;  %v379_v50 = vld [vmem:[%s6227_s29 + $0x3b0] sm:$0xff]  ;;  %v346_v54 = vld [vmem:[%s6227_s29 + $0x2a8] sm:$0xff] }
  0x37   : > { %1941 = vmatprep.mubr.f32.mxu0 %v1495_v9  ;;  %4788 = vmatpush3.msra.mxu1 %v293_v12  ;;  %v332_v47 = vld [vmem:[%s6227_s29 + $0x238] sm:$0xff]  ;;  %v331_v51 = vld [vmem:[%s6227_s29 + $0x230] sm:$0xff]  ;;  %v378_v55 = vld [vmem:[%s6227_s29 + $0x3a8] sm:$0xff] }
  0x38   : > { %2011 = vmatprep.mubr.f32.mxu1 %v1496_v11  ;;  %1942 = vmatmul.mubr.f32.vlgmr.msra.gmra.mxu0 %v1487_v63  ;;  %v364_v48 = vld [vmem:[%s6227_s29 + $0x338] sm:$0xff]  ;;  %v363_v53 = vld [vmem:[%s6227_s29 + $0x330] sm:$0xff]  ;;  %v330_v56 = vld [vmem:[%s6227_s29 + $0x228] sm:$0xff] }
  0x39   : > { %2012 = vmatmul.mubr.f32.vlgmr.msra.gmra.mxu1 %v1494_v2  ;;  %4792 = vmatprep.subr.mxu0 %v356_v13  ;;  %v362_v57 = vld [vmem:[%s6227_s29 + $0x328] sm:$0xff]  ;;  %v345_v59 = vld [vmem:[%s6227_s29 + $0x2a0] sm:$0xff]  ;;  %v344_v63 = vld [vmem:[%s6227_s29 + $0x298] sm:$0xff] }
  0x3a   : > { %4827 = vmatprep.subr.mxu1 %v388_v14  ;;  %4793 = vmatpush3.msra.mxu0 %v340_v15  ;;  %v243_v58 = vld [vmem:[%s6222_s25 + $0x8] sm:$0xff]  ;;  %v377_v60 = vld [vmem:[%s6227_s29 + $0x3a0] sm:$0xff]  ;;  %v376_v0 = vld [vmem:[%s6227_s29 + $0x398] sm:$0xff] }
  0x3b   : > { %4828 = vmatpush3.msra.mxu1 %v372_v16  ;;  %4794 = vmatprep.subr.mxu0 %v355_v17  ;;  %v329_v61 = vld [vmem:[%s6227_s29 + $0x220] sm:$0xff]  ;;  %v1504_v1 = vrot.slane %v243_v58, %v6276_v52  ;;  %v1497_v2 = vcombine.high %v243_v58, %v243_v58  ;;  %v328_v3 = vld [vmem:[%s6227_s29 + $0x218] sm:$0xff]  ;;  %v343_v5 = vld [vmem:[%s6227_s29 + $0x290] sm:$0xff] }
  0x3c   : > { %4829 = vmatprep.subr.mxu1 %v387_v18  ;;  %4795 = vmatpush3.msra.mxu0 %v339_v19  ;;  %v361_v62 = vld [vmem:[%s6227_s29 + $0x320] sm:$0xff]  ;;  %v360_v4 = vld [vmem:[%s6227_s29 + $0x318] sm:$0xff]  ;;  %v375_v6 = vld [vmem:[%s6227_s29 + $0x390] sm:$0xff] }
  0x3d   : > { %4830 = vmatpush3.msra.mxu1 %v371_v20  ;;  %4796 = vmatprep.subr.mxu0 %v354_v21  ;;  %v327_v7 = vld [vmem:[%s6227_s29 + $0x210] sm:$0xff]  ;;  %v342_v9 = vld [vmem:[%s6227_s29 + $0x288] sm:$0xff]  ;;  %v1512_v11 = vcombine.high %v1504_v1, %v1504_v1  ;;  %v1511_v12 = vrot.slane %v1497_v2, %v6276_v52  ;;  %v341_v14 = vld [vmem:[%s6227_s29 + $0x280] sm:$0xff] }
  0x3e   : > { %4831 = vmatprep.subr.mxu1 %v386_v22  ;;  %4797 = vmatpush3.msra.mxu0 %v338_v23  ;;  %v359_v8 = vld [vmem:[%s6227_s29 + $0x310] sm:$0xff]  ;;  %v374_v10 = vld [vmem:[%s6227_s29 + $0x388] sm:$0xff]  ;;  %v325_v16 = vld [vmem:[%s6227_s29 + $0x200] sm:$0xff] }
  0x3f   : > { %4832 = vmatpush3.msra.mxu1 %v370_v24  ;;  %4798 = vmatprep.subr.mxu0 %v353_v25  ;;  %v326_v13 = vld [vmem:[%s6227_s29 + $0x208] sm:$0xff]  ;;  %v373_v17 = vld [vmem:[%s6227_s29 + $0x380] sm:$0xff]  ;;  %v420_v18 = vld [vmem:[%s6227_s29 + $0x4f8] sm:$0xff]  ;;  %v1513_v19 = vcombine.high %v1511_v12, %v1511_v12 }
  0x40   : > { %4833 = vmatprep.subr.mxu1 %v385_v26  ;;  %4799 = vmatpush3.msra.mxu0 %v337_v27  ;;  %v358_v15 = vld [vmem:[%s6227_s29 + $0x308] sm:$0xff]  ;;  %v357_v20 = vld [vmem:[%s6227_s29 + $0x300] sm:$0xff]  ;;  %v404_v21 = vld [vmem:[%s6227_s29 + $0x478] sm:$0xff] }
  0x41   : > { %4834 = vmatpush3.msra.mxu1 %v369_v28  ;;  %4800 = vmatprep.subr.mxu0 %v352_v29  ;;  %v419_v22 = vld [vmem:[%s6227_s29 + $0x4f0] sm:$0xff]  ;;  %v452_v23 = vld [vmem:[%s6227_s29 + $0x5f8] sm:$0xff]  ;;  %v418_v26 = vld [vmem:[%s6227_s29 + $0x4e8] sm:$0xff] }
  0x42   : > { %4835 = vmatprep.subr.mxu1 %v384_v30  ;;  %4801 = vmatpush3.msra.mxu0 %v336_v31  ;;  %v403_v24 = vld [vmem:[%s6227_s29 + $0x470] sm:$0xff]  ;;  %v436_v25 = vld [vmem:[%s6227_s29 + $0x578] sm:$0xff]  ;;  %v402_v28 = vld [vmem:[%s6227_s29 + $0x468] sm:$0xff] }
  0x43   : > { %4836 = vmatpush3.msra.mxu1 %v368_v32  ;;  %4802 = vmatprep.subr.mxu0 %v351_v33  ;;  %v451_v27 = vld [vmem:[%s6227_s29 + $0x5f0] sm:$0xff]  ;;  %v417_v30 = vld [vmem:[%s6227_s29 + $0x4e0] sm:$0xff]  ;;  %v450_v31 = vld [vmem:[%s6227_s29 + $0x5e8] sm:$0xff] }
  0x44   : > { %4837 = vmatprep.subr.mxu1 %v383_v34  ;;  %4803 = vmatpush3.msra.mxu0 %v335_v35  ;;  %v435_v29 = vld [vmem:[%s6227_s29 + $0x570] sm:$0xff]  ;;  %v401_v32 = vld [vmem:[%s6227_s29 + $0x460] sm:$0xff]  ;;  %v434_v33 = vld [vmem:[%s6227_s29 + $0x568] sm:$0xff] }
  0x45   : > { %4838 = vmatpush3.msra.mxu1 %v367_v36  ;;  %4804 = vmatprep.subr.mxu0 %v350_v37  ;;  %v416_v34 = vld [vmem:[%s6227_s29 + $0x4d8] sm:$0xff]  ;;  %v449_v35 = vld [vmem:[%s6227_s29 + $0x5e0] sm:$0xff] }
  0x46   : > { %4839 = vmatprep.subr.mxu1 %v382_v38  ;;  %4805 = vmatpush3.msra.mxu0 %v334_v39  ;;  %v400_v36 = vld [vmem:[%s6227_s29 + $0x458] sm:$0xff]  ;;  %v433_v37 = vld [vmem:[%s6227_s29 + $0x560] sm:$0xff]  ;;  %v415_v38 = vld [vmem:[%s6227_s29 + $0x4d0] sm:$0xff] }
  0x47   : > { %4840 = vmatpush3.msra.mxu1 %v366_v40  ;;  %4806 = vmatprep.subr.mxu0 %v349_v41  ;;  %v448_v39 = vld [vmem:[%s6227_s29 + $0x5d8] sm:$0xff]  ;;  %v399_v40 = vld [vmem:[%s6227_s29 + $0x450] sm:$0xff]  ;;  %v393_v2 = vld [vmem:[%s6227_s29 + $0x420] sm:$0xff] }
  0x48   : > { %4841 = vmatprep.subr.mxu1 %v381_v42  ;;  %4807 = vmatpush3.msra.mxu0 %v333_v43  ;;  %v432_v41 = vld [vmem:[%s6227_s29 + $0x558] sm:$0xff]  ;;  %v414_v42 = vld [vmem:[%s6227_s29 + $0x4c8] sm:$0xff]  ;;  %v447_v43 = vld [vmem:[%s6227_s29 + $0x5d0] sm:$0xff] }
  0x49   : > { %4842 = vmatpush3.msra.mxu1 %v365_v44  ;;  %4808 = vmatprep.subr.mxu0 %v348_v45  ;;  %v398_v44 = vld [vmem:[%s6227_s29 + $0x448] sm:$0xff]  ;;  %v431_v45 = vld [vmem:[%s6227_s29 + $0x550] sm:$0xff]  ;;  %v428_v58 = vld [vmem:[%s6227_s29 + $0x538] sm:$0xff] }
  0x4a   : > { %4843 = vmatprep.subr.mxu1 %v380_v46  ;;  %4809 = vmatpush3.msra.mxu0 %v332_v47  ;;  %v413_v46 = vld [vmem:[%s6227_s29 + $0x4c0] sm:$0xff]  ;;  %v446_v47 = vld [vmem:[%s6227_s29 + $0x5c8] sm:$0xff] }
  0x4b   : > { %4844 = vmatpush3.msra.mxu1 %v364_v48  ;;  %4810 = vmatprep.subr.mxu0 %v347_v49  ;;  %v397_v48 = vld [vmem:[%s6227_s29 + $0x440] sm:$0xff]  ;;  %v430_v49 = vld [vmem:[%s6227_s29 + $0x548] sm:$0xff] }
  0x4c   : > { %4845 = vmatprep.subr.mxu1 %v379_v50  ;;  %4811 = vmatpush3.msra.mxu0 %v331_v51  ;;  %v412_v50 = vld [vmem:[%s6227_s29 + $0x4b8] sm:$0xff]  ;;  %v445_v51 = vld [vmem:[%s6227_s29 + $0x5c0] sm:$0xff] }
  0x4d   : > { %4846 = vmatpush3.msra.mxu1 %v363_v53  ;;  %4812 = vmatprep.subr.mxu0 %v346_v54  ;;  %v396_v53 = vld [vmem:[%s6227_s29 + $0x438] sm:$0xff]  ;;  %v429_v54 = vld [vmem:[%s6227_s29 + $0x540] sm:$0xff] }
  0x4e   : > { %4847 = vmatprep.subr.mxu1 %v378_v55  ;;  %4813 = vmatpush3.msra.mxu0 %v330_v56  ;;  %v411_v55 = vld [vmem:[%s6227_s29 + $0x4b0] sm:$0xff]  ;;  %v444_v56 = vld [vmem:[%s6227_s29 + $0x5b8] sm:$0xff] }
  0x4f   : > { %4848 = vmatpush3.msra.mxu1 %v362_v57  ;;  %4814 = vmatprep.subr.mxu0 %v345_v59  ;;  %v395_v57 = vld [vmem:[%s6227_s29 + $0x430] sm:$0xff]  ;;  %v410_v59 = vld [vmem:[%s6227_s29 + $0x4a8] sm:$0xff] }
  0x50   : > { %4849 = vmatprep.subr.mxu1 %v377_v60  ;;  %4815 = vmatpush3.msra.mxu0 %v329_v61  ;;  %v443_v60 = vld [vmem:[%s6227_s29 + $0x5b0] sm:$0xff]  ;;  %v394_v61 = vld [vmem:[%s6227_s29 + $0x428] sm:$0xff] }
  0x51   : > { %4850 = vmatpush3.msra.mxu1 %v361_v62  ;;  %4816 = vmatprep.subr.mxu0 %v344_v63  ;;  %v427_v62 = vld [vmem:[%s6227_s29 + $0x530] sm:$0xff]  ;;  %v409_v63 = vld [vmem:[%s6227_s29 + $0x4a0] sm:$0xff] }
  0x52   : > { %4851 = vmatprep.subr.mxu1 %v376_v0  ;;  %4817 = vmatpush3.msra.mxu0 %v328_v3  ;;  %v442_v0 = vld [vmem:[%s6227_s29 + $0x5a8] sm:$0xff] }
  0x53   : > { %4852 = vmatpush3.msra.mxu1 %v360_v4  ;;  %4818 = vmatprep.subr.mxu0 %v343_v5  ;;  %v426_v3 = vld [vmem:[%s6227_s29 + $0x528] sm:$0xff]  ;;  %v408_v4 = vld [vmem:[%s6227_s29 + $0x498] sm:$0xff]  ;;  %v441_v5 = vld [vmem:[%s6227_s29 + $0x5a0] sm:$0xff] }
  0x54   : > { %4853 = vmatprep.subr.mxu1 %v375_v6  ;;  %4819 = vmatpush3.msra.mxu0 %v327_v7  ;;  %v392_v6 = vld [vmem:[%s6227_s29 + $0x418] sm:$0xff]  ;;  %v425_v7 = vld [vmem:[%s6227_s29 + $0x520] sm:$0xff] }
  0x55   : > { %4854 = vmatpush3.msra.mxu1 %v359_v8  ;;  %4820 = vmatprep.subr.mxu0 %v342_v9  ;;  %v407_v9 = vld [vmem:[%s6227_s29 + $0x490] sm:$0xff] }
  0x56   : > { %4855 = vmatprep.subr.mxu1 %v374_v10  ;;  %4821 = vmatpush3.msra.mxu0 %v326_v13  ;;  %v440_v10 = vld [vmem:[%s6227_s29 + $0x598] sm:$0xff] }
  0x57   : > { %2081 = vmatprep.mubr.f32.mxu0 %v1512_v11  ;;  %4822 = vmatprep.subr.mxu0 %v341_v14  ;;  %v424_v13 = vld [vmem:[%s6227_s29 + $0x518] sm:$0xff]  ;;  %v406_v14 = vld [vmem:[%s6227_s29 + $0x488] sm:$0xff] }
  0x58   : > { %4856 = vmatpush3.msra.mxu1 %v358_v15  ;;  %4823 = vmatpush3.msra.mxu0 %v325_v16  ;;  %v439_v15 = vld [vmem:[%s6227_s29 + $0x590] sm:$0xff]  ;;  %v390_v16 = vld [vmem:[%s6227_s29 + $0x408] sm:$0xff] }
  0x59   : > { %4857 = vmatprep.subr.mxu1 %v373_v17  ;;  %2082 = vmatmul.mubr.f32.vlgmr.msra.gmra.mxu0 %v1504_v1  ;;  %v244_v1 = vld [vmem:[%s6222_s25 + $0x10] sm:$0xff] }
  0x5a   : > { %4862 = vmatprep.subr.mxu0 %v420_v18  ;;  %4858 = vmatpush3.msra.mxu1 %v357_v20  ;;  %v1514_v8 = vcombine.high %v244_v1, %v244_v1  ;;  %v1521_v11 = vrot.slane %v244_v1, %v6276_v52  ;;  %v423_v17 = vld [vmem:[%s6227_s29 + $0x510] sm:$0xff]  ;;  %v438_v20 = vld [vmem:[%s6227_s29 + $0x588] sm:$0xff]  ;;  %v492_v1 = vld [vmem:[%s6227_s29 + $0x738] sm:$0xff] }
  0x5b   : > { %2151 = vmatprep.mubr.f32.mxu1 %v1513_v19  ;;  %4863 = vmatpush3.msra.mxu0 %v404_v21  ;;  %v405_v19 = vld [vmem:[%s6227_s29 + $0x480] sm:$0xff] }
  0x5c   : > { %2152 = vmatmul.mubr.f32.vlgmr.msra.gmra.mxu1 %v1511_v12  ;;  %4864 = vmatprep.subr.mxu0 %v419_v22  ;;  %v391_v12 = vld [vmem:[%s6227_s29 + $0x410] sm:$0xff]  ;;  %v1528_v18 = vrot.slane %v1514_v8, %v6276_v52  ;;  %v1529_v21 = vcombine.high %v1521_v11, %v1521_v11  ;;  %v389_v22 = vld [vmem:[%s6227_s29 + $0x400] sm:$0xff]  ;;  %v245_v8 = vld [vmem:[%s6222_s25 + $0x18] sm:$0xff] }
  0x5d   : > { %4897 = vmatprep.subr.mxu1 %v452_v23  ;;  %4865 = vmatpush3.msra.mxu0 %v403_v24  ;;  %v422_v23 = vld [vmem:[%s6227_s29 + $0x508] sm:$0xff]  ;;  %v437_v24 = vld [vmem:[%s6227_s29 + $0x580] sm:$0xff] }
  0x5e   : > { %4898 = vmatpush3.msra.mxu1 %v436_v25  ;;  %4866 = vmatprep.subr.mxu0 %v418_v26  ;;  %v484_v25 = vld [vmem:[%s6227_s29 + $0x6f8] sm:$0xff]  ;;  %v1530_v26 = vcombine.high %v1528_v18, %v1528_v18 }
  0x5f   : > { %4899 = vmatprep.subr.mxu1 %v451_v27  ;;  %4867 = vmatpush3.msra.mxu0 %v402_v28  ;;  %v421_v27 = vld [vmem:[%s6227_s29 + $0x500] sm:$0xff]  ;;  %v468_v28 = vld [vmem:[%s6227_s29 + $0x678] sm:$0xff] }
  0x60   : > { %4900 = vmatpush3.msra.mxu1 %v435_v29  ;;  %4868 = vmatprep.subr.mxu0 %v417_v30  ;;  %v483_v29 = vld [vmem:[%s6227_s29 + $0x6f0] sm:$0xff]  ;;  %v516_v30 = vld [vmem:[%s6227_s29 + $0x7f8] sm:$0xff] }
  0x61   : > { %4901 = vmatprep.subr.mxu1 %v450_v31  ;;  %4869 = vmatpush3.msra.mxu0 %v401_v32  ;;  %v467_v31 = vld [vmem:[%s6227_s29 + $0x670] sm:$0xff]  ;;  %v500_v32 = vld [vmem:[%s6227_s29 + $0x778] sm:$0xff] }
  0x62   : > { %4902 = vmatpush3.msra.mxu1 %v434_v33  ;;  %4870 = vmatprep.subr.mxu0 %v416_v34  ;;  %v482_v33 = vld [vmem:[%s6227_s29 + $0x6e8] sm:$0xff]  ;;  %v515_v34 = vld [vmem:[%s6227_s29 + $0x7f0] sm:$0xff] }
  0x63   : > { %4903 = vmatprep.subr.mxu1 %v449_v35  ;;  %4871 = vmatpush3.msra.mxu0 %v400_v36  ;;  %v466_v35 = vld [vmem:[%s6227_s29 + $0x668] sm:$0xff]  ;;  %v499_v36 = vld [vmem:[%s6227_s29 + $0x770] sm:$0xff] }
  0x64   : > { %4904 = vmatpush3.msra.mxu1 %v433_v37  ;;  %4872 = vmatprep.subr.mxu0 %v415_v38  ;;  %v481_v37 = vld [vmem:[%s6227_s29 + $0x6e0] sm:$0xff]  ;;  %v514_v38 = vld [vmem:[%s6227_s29 + $0x7e8] sm:$0xff] }
  0x65   : > { %4905 = vmatprep.subr.mxu1 %v448_v39  ;;  %4873 = vmatpush3.msra.mxu0 %v399_v40  ;;  %v465_v39 = vld [vmem:[%s6227_s29 + $0x660] sm:$0xff]  ;;  %v498_v40 = vld [vmem:[%s6227_s29 + $0x768] sm:$0xff] }
  0x66   : > { %4906 = vmatpush3.msra.mxu1 %v432_v41  ;;  %4874 = vmatprep.subr.mxu0 %v414_v42  ;;  %v480_v41 = vld [vmem:[%s6227_s29 + $0x6d8] sm:$0xff]  ;;  %v513_v42 = vld [vmem:[%s6227_s29 + $0x7e0] sm:$0xff] }
  0x67   : > { %4907 = vmatprep.subr.mxu1 %v447_v43  ;;  %4875 = vmatpush3.msra.mxu0 %v398_v44  ;;  %v464_v43 = vld [vmem:[%s6227_s29 + $0x658] sm:$0xff]  ;;  %v497_v44 = vld [vmem:[%s6227_s29 + $0x760] sm:$0xff] }
  0x68   : > { %4908 = vmatpush3.msra.mxu1 %v431_v45  ;;  %4876 = vmatprep.subr.mxu0 %v413_v46  ;;  %v479_v45 = vld [vmem:[%s6227_s29 + $0x6d0] sm:$0xff]  ;;  %v512_v46 = vld [vmem:[%s6227_s29 + $0x7d8] sm:$0xff] }
  0x69   : > { %4909 = vmatprep.subr.mxu1 %v446_v47  ;;  %4877 = vmatpush3.msra.mxu0 %v397_v48  ;;  %v463_v47 = vld [vmem:[%s6227_s29 + $0x650] sm:$0xff]  ;;  %v496_v48 = vld [vmem:[%s6227_s29 + $0x758] sm:$0xff] }
  0x6a   : > { %4910 = vmatpush3.msra.mxu1 %v430_v49  ;;  %4878 = vmatprep.subr.mxu0 %v412_v50  ;;  %v478_v49 = vld [vmem:[%s6227_s29 + $0x6c8] sm:$0xff]  ;;  %v511_v50 = vld [vmem:[%s6227_s29 + $0x7d0] sm:$0xff] }
  0x6b   : > { %4911 = vmatprep.subr.mxu1 %v445_v51  ;;  %4879 = vmatpush3.msra.mxu0 %v396_v53  ;;  %v462_v51 = vld [vmem:[%s6227_s29 + $0x648] sm:$0xff]  ;;  %v495_v53 = vld [vmem:[%s6227_s29 + $0x750] sm:$0xff] }
  0x6c   : > { %4912 = vmatpush3.msra.mxu1 %v429_v54  ;;  %4880 = vmatprep.subr.mxu0 %v411_v55  ;;  %v477_v54 = vld [vmem:[%s6227_s29 + $0x6c0] sm:$0xff]  ;;  %v510_v55 = vld [vmem:[%s6227_s29 + $0x7c8] sm:$0xff] }
  0x6d   : > { %4913 = vmatprep.subr.mxu1 %v444_v56  ;;  %4881 = vmatpush3.msra.mxu0 %v395_v57  ;;  %v461_v56 = vld [vmem:[%s6227_s29 + $0x640] sm:$0xff]  ;;  %v494_v57 = vld [vmem:[%s6227_s29 + $0x748] sm:$0xff] }
  0x6e   : > { %4914 = vmatpush3.msra.mxu1 %v428_v58  ;;  %4882 = vmatprep.subr.mxu0 %v410_v59  ;;  %v476_v58 = vld [vmem:[%s6227_s29 + $0x6b8] sm:$0xff]  ;;  %v509_v59 = vld [vmem:[%s6227_s29 + $0x7c0] sm:$0xff] }
  0x6f   : > { %4915 = vmatprep.subr.mxu1 %v443_v60  ;;  %4883 = vmatpush3.msra.mxu0 %v394_v61  ;;  %v460_v60 = vld [vmem:[%s6227_s29 + $0x638] sm:$0xff]  ;;  %v493_v61 = vld [vmem:[%s6227_s29 + $0x740] sm:$0xff] }
  0x70   : > { %4916 = vmatpush3.msra.mxu1 %v427_v62  ;;  %4884 = vmatprep.subr.mxu0 %v409_v63  ;;  %v475_v62 = vld [vmem:[%s6227_s29 + $0x6b0] sm:$0xff]  ;;  %v508_v63 = vld [vmem:[%s6227_s29 + $0x7b8] sm:$0xff] }
  0x71   : > { %4917 = vmatprep.subr.mxu1 %v442_v0  ;;  %4885 = vmatpush3.msra.mxu0 %v393_v2  ;;  %v459_v0 = vld [vmem:[%s6227_s29 + $0x630] sm:$0xff]  ;;  %v474_v2 = vld [vmem:[%s6227_s29 + $0x6a8] sm:$0xff] }
  0x72   : > { %4918 = vmatpush3.msra.mxu1 %v426_v3  ;;  %4886 = vmatprep.subr.mxu0 %v408_v4  ;;  %v507_v3 = vld [vmem:[%s6227_s29 + $0x7b0] sm:$0xff]  ;;  %v458_v4 = vld [vmem:[%s6227_s29 + $0x628] sm:$0xff] }
  0x73   : > { %4919 = vmatprep.subr.mxu1 %v441_v5  ;;  %4887 = vmatpush3.msra.mxu0 %v392_v6  ;;  %v491_v5 = vld [vmem:[%s6227_s29 + $0x730] sm:$0xff]  ;;  %v473_v6 = vld [vmem:[%s6227_s29 + $0x6a0] sm:$0xff] }
  0x74   : > { %4920 = vmatpush3.msra.mxu1 %v425_v7  ;;  %4888 = vmatprep.subr.mxu0 %v407_v9  ;;  %v506_v7 = vld [vmem:[%s6227_s29 + $0x7a8] sm:$0xff]  ;;  %v457_v9 = vld [vmem:[%s6227_s29 + $0x620] sm:$0xff] }
  0x75   : > { %4921 = vmatprep.subr.mxu1 %v440_v10  ;;  %4889 = vmatpush3.msra.mxu0 %v391_v12  ;;  %v490_v10 = vld [vmem:[%s6227_s29 + $0x728] sm:$0xff]  ;;  %v505_v12 = vld [vmem:[%s6227_s29 + $0x7a0] sm:$0xff] }
  0x76   : > { %4922 = vmatpush3.msra.mxu1 %v424_v13  ;;  %4890 = vmatprep.subr.mxu0 %v406_v14  ;;  %v456_v13 = vld [vmem:[%s6227_s29 + $0x618] sm:$0xff]  ;;  %v489_v14 = vld [vmem:[%s6227_s29 + $0x720] sm:$0xff] }
  0x77   : > { %4923 = vmatprep.subr.mxu1 %v439_v15  ;;  %4891 = vmatpush3.msra.mxu0 %v390_v16  ;;  %v1531_v15 = vcombine.high %v245_v8, %v245_v8  ;;  %v471_v16 = vld [vmem:[%s6227_s29 + $0x690] sm:$0xff] }
  0x78   : > { %4924 = vmatpush3.msra.mxu1 %v423_v17  ;;  %4892 = vmatprep.subr.mxu0 %v405_v19  ;;  %v504_v17 = vld [vmem:[%s6227_s29 + $0x798] sm:$0xff]  ;;  %v455_v19 = vld [vmem:[%s6227_s29 + $0x610] sm:$0xff] }
  0x79   : > { %4925 = vmatprep.subr.mxu1 %v438_v20  ;;  %4893 = vmatpush3.msra.mxu0 %v389_v22  ;;  %v488_v20 = vld [vmem:[%s6227_s29 + $0x718] sm:$0xff]  ;;  %v503_v22 = vld [vmem:[%s6227_s29 + $0x790] sm:$0xff] }
  0x7a   : > { %2221 = vmatprep.mubr.f32.mxu0 %v1529_v21  ;;  %4926 = vmatpush3.msra.mxu1 %v422_v23  ;;  %v470_v21 = vld [vmem:[%s6227_s29 + $0x688] sm:$0xff] }
  0x7b   : > { %2222 = vmatmul.mubr.f32.vlgmr.msra.gmra.mxu0 %v1521_v11  ;;  %4927 = vmatprep.subr.mxu1 %v437_v24  ;;  %v472_v11 = vld [vmem:[%s6227_s29 + $0x698] sm:$0xff]  ;;  %v454_v23 = vld [vmem:[%s6227_s29 + $0x608] sm:$0xff]  ;;  %v487_v24 = vld [vmem:[%s6227_s29 + $0x710] sm:$0xff] }
  0x7c   : > { %4932 = vmatprep.subr.mxu0 %v484_v25  ;;  %4928 = vmatpush3.msra.mxu1 %v421_v27  ;;  %v1545_v25 = vrot.slane %v1531_v15, %v6276_v52  ;;  %v502_v27 = vld [vmem:[%s6227_s29 + $0x788] sm:$0xff]  ;;  %v246_v15 = vld [vmem:[%s6222_s25 + $0x20] sm:$0xff] }
  0x7d   : > { %2291 = vmatprep.mubr.f32.mxu1 %v1530_v26  ;;  %4933 = vmatpush3.msra.mxu0 %v468_v28  ;;  %v469_v26 = vld [vmem:[%s6227_s29 + $0x680] sm:$0xff] }
  0x7e   : > { %2292 = vmatmul.mubr.f32.vlgmr.msra.gmra.mxu1 %v1528_v18  ;;  %4934 = vmatprep.subr.mxu0 %v483_v29  ;;  %v1538_v18 = vrot.slane %v245_v8, %v6276_v52  ;;  %v453_v29 = vld [vmem:[%s6227_s29 + $0x600] sm:$0xff]  ;;  %v556_v8 = vld [vmem:[%s6227_s29 + $0x938] sm:$0xff] }
  0x7f   : > { %4967 = vmatprep.subr.mxu1 %v516_v30  ;;  %4935 = vmatpush3.msra.mxu0 %v467_v31  ;;  %v486_v30 = vld [vmem:[%s6227_s29 + $0x708] sm:$0xff]  ;;  %v501_v31 = vld [vmem:[%s6227_s29 + $0x780] sm:$0xff] }
  0x80   : > { %4968 = vmatpush3.msra.mxu1 %v500_v32  ;;  %4936 = vmatprep.subr.mxu0 %v482_v33  ;;  %v1546_v28 = vcombine.high %v1538_v18, %v1538_v18  ;;  %v548_v32 = vld [vmem:[%s6227_s29 + $0x8f8] sm:$0xff]  ;;  %v1547_v33 = vcombine.high %v1545_v25, %v1545_v25 }
  0x81   : > { %4969 = vmatprep.subr.mxu1 %v515_v34  ;;  %4937 = vmatpush3.msra.mxu0 %v466_v35  ;;  %v485_v34 = vld [vmem:[%s6227_s29 + $0x700] sm:$0xff]  ;;  %v532_v35 = vld [vmem:[%s6227_s29 + $0x878] sm:$0xff] }
  0x82   : > { %4970 = vmatpush3.msra.mxu1 %v499_v36  ;;  %4938 = vmatprep.subr.mxu0 %v481_v37  ;;  %v547_v36 = vld [vmem:[%s6227_s29 + $0x8f0] sm:$0xff]  ;;  %v580_v37 = vld [vmem:[%s6227_s29 + $0x9f8] sm:$0xff] }
  0x83   : > { %4971 = vmatprep.subr.mxu1 %v514_v38  ;;  %4939 = vmatpush3.msra.mxu0 %v465_v39  ;;  %v531_v38 = vld [vmem:[%s6227_s29 + $0x870] sm:$0xff]  ;;  %v564_v39 = vld [vmem:[%s6227_s29 + $0x978] sm:$0xff] }
  0x84   : > { %4972 = vmatpush3.msra.mxu1 %v498_v40  ;;  %4940 = vmatprep.subr.mxu0 %v480_v41  ;;  %v546_v40 = vld [vmem:[%s6227_s29 + $0x8e8] sm:$0xff]  ;;  %v579_v41 = vld [vmem:[%s6227_s29 + $0x9f0] sm:$0xff] }
  0x85   : > { %4973 = vmatprep.subr.mxu1 %v513_v42  ;;  %4941 = vmatpush3.msra.mxu0 %v464_v43  ;;  %v530_v42 = vld [vmem:[%s6227_s29 + $0x868] sm:$0xff]  ;;  %v563_v43 = vld [vmem:[%s6227_s29 + $0x970] sm:$0xff] }
  0x86   : > { %4974 = vmatpush3.msra.mxu1 %v497_v44  ;;  %4942 = vmatprep.subr.mxu0 %v479_v45  ;;  %v545_v44 = vld [vmem:[%s6227_s29 + $0x8e0] sm:$0xff]  ;;  %v578_v45 = vld [vmem:[%s6227_s29 + $0x9e8] sm:$0xff] }
  0x87   : > { %4975 = vmatprep.subr.mxu1 %v512_v46  ;;  %4943 = vmatpush3.msra.mxu0 %v463_v47  ;;  %v529_v46 = vld [vmem:[%s6227_s29 + $0x860] sm:$0xff]  ;;  %v562_v47 = vld [vmem:[%s6227_s29 + $0x968] sm:$0xff] }
  0x88   : > { %4976 = vmatpush3.msra.mxu1 %v496_v48  ;;  %4944 = vmatprep.subr.mxu0 %v478_v49  ;;  %v544_v48 = vld [vmem:[%s6227_s29 + $0x8d8] sm:$0xff]  ;;  %v577_v49 = vld [vmem:[%s6227_s29 + $0x9e0] sm:$0xff] }
  0x89   : > { %4977 = vmatprep.subr.mxu1 %v511_v50  ;;  %4945 = vmatpush3.msra.mxu0 %v462_v51  ;;  %v528_v50 = vld [vmem:[%s6227_s29 + $0x858] sm:$0xff]  ;;  %v561_v51 = vld [vmem:[%s6227_s29 + $0x960] sm:$0xff] }
  0x8a   : > { %4978 = vmatpush3.msra.mxu1 %v495_v53  ;;  %4946 = vmatprep.subr.mxu0 %v477_v54  ;;  %v543_v53 = vld [vmem:[%s6227_s29 + $0x8d0] sm:$0xff]  ;;  %v576_v54 = vld [vmem:[%s6227_s29 + $0x9d8] sm:$0xff] }
  0x8b   : > { %4979 = vmatprep.subr.mxu1 %v510_v55  ;;  %4947 = vmatpush3.msra.mxu0 %v461_v56  ;;  %v527_v55 = vld [vmem:[%s6227_s29 + $0x850] sm:$0xff]  ;;  %v560_v56 = vld [vmem:[%s6227_s29 + $0x958] sm:$0xff] }
  0x8c   : > { %4980 = vmatpush3.msra.mxu1 %v494_v57  ;;  %4948 = vmatprep.subr.mxu0 %v476_v58  ;;  %v542_v57 = vld [vmem:[%s6227_s29 + $0x8c8] sm:$0xff]  ;;  %v575_v58 = vld [vmem:[%s6227_s29 + $0x9d0] sm:$0xff] }
  0x8d   : > { %4981 = vmatprep.subr.mxu1 %v509_v59  ;;  %4949 = vmatpush3.msra.mxu0 %v460_v60  ;;  %v526_v59 = vld [vmem:[%s6227_s29 + $0x848] sm:$0xff]  ;;  %v559_v60 = vld [vmem:[%s6227_s29 + $0x950] sm:$0xff] }
  0x8e   : > { %4982 = vmatpush3.msra.mxu1 %v493_v61  ;;  %4950 = vmatprep.subr.mxu0 %v475_v62  ;;  %v541_v61 = vld [vmem:[%s6227_s29 + $0x8c0] sm:$0xff]  ;;  %v574_v62 = vld [vmem:[%s6227_s29 + $0x9c8] sm:$0xff] }
  0x8f   : > { %4983 = vmatprep.subr.mxu1 %v508_v63  ;;  %4951 = vmatpush3.msra.mxu0 %v459_v0  ;;  %v525_v63 = vld [vmem:[%s6227_s29 + $0x840] sm:$0xff]  ;;  %v558_v0 = vld [vmem:[%s6227_s29 + $0x948] sm:$0xff] }
  0x90   : > { %4984 = vmatpush3.msra.mxu1 %v492_v1  ;;  %4952 = vmatprep.subr.mxu0 %v474_v2  ;;  %v540_v1 = vld [vmem:[%s6227_s29 + $0x8b8] sm:$0xff]  ;;  %v573_v2 = vld [vmem:[%s6227_s29 + $0x9c0] sm:$0xff] }
  0x91   : > { %4985 = vmatprep.subr.mxu1 %v507_v3  ;;  %4953 = vmatpush3.msra.mxu0 %v458_v4  ;;  %v524_v3 = vld [vmem:[%s6227_s29 + $0x838] sm:$0xff]  ;;  %v557_v4 = vld [vmem:[%s6227_s29 + $0x940] sm:$0xff] }
  0x92   : > { %4986 = vmatpush3.msra.mxu1 %v491_v5  ;;  %4954 = vmatprep.subr.mxu0 %v473_v6  ;;  %v539_v5 = vld [vmem:[%s6227_s29 + $0x8b0] sm:$0xff]  ;;  %v572_v6 = vld [vmem:[%s6227_s29 + $0x9b8] sm:$0xff] }
  0x93   : > { %4987 = vmatprep.subr.mxu1 %v506_v7  ;;  %4955 = vmatpush3.msra.mxu0 %v457_v9  ;;  %v523_v7 = vld [vmem:[%s6227_s29 + $0x830] sm:$0xff]  ;;  %v538_v9 = vld [vmem:[%s6227_s29 + $0x8a8] sm:$0xff] }
  0x94   : > { %4988 = vmatpush3.msra.mxu1 %v490_v10  ;;  %4956 = vmatprep.subr.mxu0 %v472_v11  ;;  %v571_v10 = vld [vmem:[%s6227_s29 + $0x9b0] sm:$0xff]  ;;  %v522_v11 = vld [vmem:[%s6227_s29 + $0x828] sm:$0xff] }
  0x95   : > { %4989 = vmatprep.subr.mxu1 %v505_v12  ;;  %4957 = vmatpush3.msra.mxu0 %v456_v13  ;;  %v555_v12 = vld [vmem:[%s6227_s29 + $0x930] sm:$0xff]  ;;  %v537_v13 = vld [vmem:[%s6227_s29 + $0x8a0] sm:$0xff] }
  0x96   : > { %4990 = vmatpush3.msra.mxu1 %v489_v14  ;;  %4958 = vmatprep.subr.mxu0 %v471_v16  ;;  %v570_v14 = vld [vmem:[%s6227_s29 + $0x9a8] sm:$0xff]  ;;  %v521_v16 = vld [vmem:[%s6227_s29 + $0x820] sm:$0xff] }
  0x97   : > { %4991 = vmatprep.subr.mxu1 %v504_v17  ;;  %4959 = vmatpush3.msra.mxu0 %v455_v19  ;;  %v554_v17 = vld [vmem:[%s6227_s29 + $0x928] sm:$0xff]  ;;  %v569_v19 = vld [vmem:[%s6227_s29 + $0x9a0] sm:$0xff] }
  0x98   : > { %4992 = vmatpush3.msra.mxu1 %v488_v20  ;;  %4960 = vmatprep.subr.mxu0 %v470_v21  ;;  %v520_v20 = vld [vmem:[%s6227_s29 + $0x818] sm:$0xff]  ;;  %v553_v21 = vld [vmem:[%s6227_s29 + $0x920] sm:$0xff] }
  0x99   : > { %4993 = vmatprep.subr.mxu1 %v503_v22  ;;  %4961 = vmatpush3.msra.mxu0 %v454_v23  ;;  %v1548_v22 = vcombine.high %v246_v15, %v246_v15  ;;  %v535_v23 = vld [vmem:[%s6227_s29 + $0x890] sm:$0xff] }
  0x9a   : > { %4994 = vmatpush3.msra.mxu1 %v487_v24  ;;  %4962 = vmatprep.subr.mxu0 %v469_v26  ;;  %v568_v24 = vld [vmem:[%s6227_s29 + $0x998] sm:$0xff]  ;;  %v519_v26 = vld [vmem:[%s6227_s29 + $0x810] sm:$0xff] }
  0x9b   : > { %4995 = vmatprep.subr.mxu1 %v502_v27  ;;  %4963 = vmatpush3.msra.mxu0 %v453_v29  ;;  %v552_v27 = vld [vmem:[%s6227_s29 + $0x918] sm:$0xff]  ;;  %v567_v29 = vld [vmem:[%s6227_s29 + $0x990] sm:$0xff] }
  0x9c   : > { %2361 = vmatprep.mubr.f32.mxu0 %v1546_v28  ;;  %4996 = vmatpush3.msra.mxu1 %v486_v30  ;;  %v534_v28 = vld [vmem:[%s6227_s29 + $0x888] sm:$0xff] }
  0x9d   : > { %2362 = vmatmul.mubr.f32.vlgmr.msra.gmra.mxu0 %v1538_v18  ;;  %4997 = vmatprep.subr.mxu1 %v501_v31  ;;  %v536_v18 = vld [vmem:[%s6227_s29 + $0x898] sm:$0xff]  ;;  %v518_v30 = vld [vmem:[%s6227_s29 + $0x808] sm:$0xff]  ;;  %v551_v31 = vld [vmem:[%s6227_s29 + $0x910] sm:$0xff] }
  0x9e   : > { %5002 = vmatprep.subr.mxu0 %v548_v32  ;;  %4998 = vmatpush3.msra.mxu1 %v485_v34  ;;  %v1562_v32 = vrot.slane %v1548_v22, %v6276_v52  ;;  %v566_v34 = vld [vmem:[%s6227_s29 + $0x988] sm:$0xff] }
  0x9f   : > { %2431 = vmatprep.mubr.f32.mxu1 %v1547_v33  ;;  %5003 = vmatpush3.msra.mxu0 %v532_v35  ;;  %v533_v33 = vld [vmem:[%s6227_s29 + $0x880] sm:$0xff]  ;;  %v247_v22 = vld [vmem:[%s6222_s25 + $0x28] sm:$0xff] }
  0xa0   : > { %2432 = vmatmul.mubr.f32.vlgmr.msra.gmra.mxu1 %v1545_v25  ;;  %5004 = vmatprep.subr.mxu0 %v547_v36  ;;  %v1555_v25 = vrot.slane %v246_v15, %v6276_v52  ;;  %v517_v36 = vld [vmem:[%s6227_s29 + $0x800] sm:$0xff]  ;;  %v620_v15 = vld [vmem:[%s6227_s29 + $0xb38] sm:$0xff] }
  0xa1   : > { %5037 = vmatprep.subr.mxu1 %v580_v37  ;;  %5005 = vmatpush3.msra.mxu0 %v531_v38  ;;  %v550_v37 = vld [vmem:[%s6227_s29 + $0x908] sm:$0xff]  ;;  %v565_v38 = vld [vmem:[%s6227_s29 + $0x980] sm:$0xff] }
  0xa2   : > { %5038 = vmatpush3.msra.mxu1 %v564_v39  ;;  %5006 = vmatprep.subr.mxu0 %v546_v40  ;;  %v1563_v35 = vcombine.high %v1555_v25, %v1555_v25  ;;  %v612_v39 = vld [vmem:[%s6227_s29 + $0xaf8] sm:$0xff]  ;;  %v1564_v40 = vcombine.high %v1562_v32, %v1562_v32 }
  0xa3   : > { %5039 = vmatprep.subr.mxu1 %v579_v41  ;;  %5007 = vmatpush3.msra.mxu0 %v530_v42  ;;  %v549_v41 = vld [vmem:[%s6227_s29 + $0x900] sm:$0xff]  ;;  %v596_v42 = vld [vmem:[%s6227_s29 + $0xa78] sm:$0xff] }
  0xa4   : > { %5040 = vmatpush3.msra.mxu1 %v563_v43  ;;  %5008 = vmatprep.subr.mxu0 %v545_v44  ;;  %v611_v43 = vld [vmem:[%s6227_s29 + $0xaf0] sm:$0xff]  ;;  %v644_v44 = vld [vmem:[%s6227_s29 + $0xbf8] sm:$0xff] }
  0xa5   : > { %5041 = vmatprep.subr.mxu1 %v578_v45  ;;  %5009 = vmatpush3.msra.mxu0 %v529_v46  ;;  %v595_v45 = vld [vmem:[%s6227_s29 + $0xa70] sm:$0xff]  ;;  %v628_v46 = vld [vmem:[%s6227_s29 + $0xb78] sm:$0xff] }
  0xa6   : > { %5042 = vmatpush3.msra.mxu1 %v562_v47  ;;  %5010 = vmatprep.subr.mxu0 %v544_v48  ;;  %v610_v47 = vld [vmem:[%s6227_s29 + $0xae8] sm:$0xff]  ;;  %v643_v48 = vld [vmem:[%s6227_s29 + $0xbf0] sm:$0xff] }
  0xa7   : > { %5043 = vmatprep.subr.mxu1 %v577_v49  ;;  %5011 = vmatpush3.msra.mxu0 %v528_v50  ;;  %v594_v49 = vld [vmem:[%s6227_s29 + $0xa68] sm:$0xff]  ;;  %v627_v50 = vld [vmem:[%s6227_s29 + $0xb70] sm:$0xff] }
  0xa8   : > { %5044 = vmatpush3.msra.mxu1 %v561_v51  ;;  %5012 = vmatprep.subr.mxu0 %v543_v53  ;;  %v609_v51 = vld [vmem:[%s6227_s29 + $0xae0] sm:$0xff]  ;;  %v642_v53 = vld [vmem:[%s6227_s29 + $0xbe8] sm:$0xff] }
  0xa9   : > { %5045 = vmatprep.subr.mxu1 %v576_v54  ;;  %5013 = vmatpush3.msra.mxu0 %v527_v55  ;;  %v593_v54 = vld [vmem:[%s6227_s29 + $0xa60] sm:$0xff]  ;;  %v626_v55 = vld [vmem:[%s6227_s29 + $0xb68] sm:$0xff] }
  0xaa   : > { %5046 = vmatpush3.msra.mxu1 %v560_v56  ;;  %5014 = vmatprep.subr.mxu0 %v542_v57  ;;  %v608_v56 = vld [vmem:[%s6227_s29 + $0xad8] sm:$0xff]  ;;  %v641_v57 = vld [vmem:[%s6227_s29 + $0xbe0] sm:$0xff] }
  0xab   : > { %5047 = vmatprep.subr.mxu1 %v575_v58  ;;  %5015 = vmatpush3.msra.mxu0 %v526_v59  ;;  %v592_v58 = vld [vmem:[%s6227_s29 + $0xa58] sm:$0xff]  ;;  %v625_v59 = vld [vmem:[%s6227_s29 + $0xb60] sm:$0xff] }
  0xac   : > { %5048 = vmatpush3.msra.mxu1 %v559_v60  ;;  %5016 = vmatprep.subr.mxu0 %v541_v61  ;;  %v607_v60 = vld [vmem:[%s6227_s29 + $0xad0] sm:$0xff]  ;;  %v640_v61 = vld [vmem:[%s6227_s29 + $0xbd8] sm:$0xff] }
  0xad   : > { %5049 = vmatprep.subr.mxu1 %v574_v62  ;;  %5017 = vmatpush3.msra.mxu0 %v525_v63  ;;  %v591_v62 = vld [vmem:[%s6227_s29 + $0xa50] sm:$0xff]  ;;  %v624_v63 = vld [vmem:[%s6227_s29 + $0xb58] sm:$0xff] }
  0xae   : > { %5050 = vmatpush3.msra.mxu1 %v558_v0  ;;  %5018 = vmatprep.subr.mxu0 %v540_v1  ;;  %v606_v0 = vld [vmem:[%s6227_s29 + $0xac8] sm:$0xff]  ;;  %v639_v1 = vld [vmem:[%s6227_s29 + $0xbd0] sm:$0xff] }
  0xaf   : > { %5051 = vmatprep.subr.mxu1 %v573_v2  ;;  %5019 = vmatpush3.msra.mxu0 %v524_v3  ;;  %v590_v2 = vld [vmem:[%s6227_s29 + $0xa48] sm:$0xff]  ;;  %v623_v3 = vld [vmem:[%s6227_s29 + $0xb50] sm:$0xff] }
  0xb0   : > { %5052 = vmatpush3.msra.mxu1 %v557_v4  ;;  %5020 = vmatprep.subr.mxu0 %v539_v5  ;;  %v605_v4 = vld [vmem:[%s6227_s29 + $0xac0] sm:$0xff]  ;;  %v638_v5 = vld [vmem:[%s6227_s29 + $0xbc8] sm:$0xff] }
  0xb1   : > { %5053 = vmatprep.subr.mxu1 %v572_v6  ;;  %5021 = vmatpush3.msra.mxu0 %v523_v7  ;;  %v589_v6 = vld [vmem:[%s6227_s29 + $0xa40] sm:$0xff]  ;;  %v622_v7 = vld [vmem:[%s6227_s29 + $0xb48] sm:$0xff] }
  0xb2   : > { %5054 = vmatpush3.msra.mxu1 %v556_v8  ;;  %5022 = vmatprep.subr.mxu0 %v538_v9  ;;  %v604_v8 = vld [vmem:[%s6227_s29 + $0xab8] sm:$0xff]  ;;  %v637_v9 = vld [vmem:[%s6227_s29 + $0xbc0] sm:$0xff] }
  0xb3   : > { %5055 = vmatprep.subr.mxu1 %v571_v10  ;;  %5023 = vmatpush3.msra.mxu0 %v522_v11  ;;  %v588_v10 = vld [vmem:[%s6227_s29 + $0xa38] sm:$0xff]  ;;  %v621_v11 = vld [vmem:[%s6227_s29 + $0xb40] sm:$0xff] }
  0xb4   : > { %5056 = vmatpush3.msra.mxu1 %v555_v12  ;;  %5024 = vmatprep.subr.mxu0 %v537_v13  ;;  %v603_v12 = vld [vmem:[%s6227_s29 + $0xab0] sm:$0xff]  ;;  %v636_v13 = vld [vmem:[%s6227_s29 + $0xbb8] sm:$0xff] }
  0xb5   : > { %5057 = vmatprep.subr.mxu1 %v570_v14  ;;  %5025 = vmatpush3.msra.mxu0 %v521_v16  ;;  %v587_v14 = vld [vmem:[%s6227_s29 + $0xa30] sm:$0xff]  ;;  %v602_v16 = vld [vmem:[%s6227_s29 + $0xaa8] sm:$0xff] }
  0xb6   : > { %5058 = vmatpush3.msra.mxu1 %v554_v17  ;;  %5026 = vmatprep.subr.mxu0 %v536_v18  ;;  %v635_v17 = vld [vmem:[%s6227_s29 + $0xbb0] sm:$0xff]  ;;  %v586_v18 = vld [vmem:[%s6227_s29 + $0xa28] sm:$0xff] }
  0xb7   : > { %5059 = vmatprep.subr.mxu1 %v569_v19  ;;  %5027 = vmatpush3.msra.mxu0 %v520_v20  ;;  %v619_v19 = vld [vmem:[%s6227_s29 + $0xb30] sm:$0xff]  ;;  %v601_v20 = vld [vmem:[%s6227_s29 + $0xaa0] sm:$0xff] }
  0xb8   : > { %5060 = vmatpush3.msra.mxu1 %v553_v21  ;;  %5028 = vmatprep.subr.mxu0 %v535_v23  ;;  %v634_v21 = vld [vmem:[%s6227_s29 + $0xba8] sm:$0xff]  ;;  %v585_v23 = vld [vmem:[%s6227_s29 + $0xa20] sm:$0xff] }
  0xb9   : > { %5061 = vmatprep.subr.mxu1 %v568_v24  ;;  %5029 = vmatpush3.msra.mxu0 %v519_v26  ;;  %v618_v24 = vld [vmem:[%s6227_s29 + $0xb28] sm:$0xff]  ;;  %v633_v26 = vld [vmem:[%s6227_s29 + $0xba0] sm:$0xff] }
  0xba   : > { %5062 = vmatpush3.msra.mxu1 %v552_v27  ;;  %5030 = vmatprep.subr.mxu0 %v534_v28  ;;  %v584_v27 = vld [vmem:[%s6227_s29 + $0xa18] sm:$0xff]  ;;  %v617_v28 = vld [vmem:[%s6227_s29 + $0xb20] sm:$0xff] }
  0xbb   : > { %5063 = vmatprep.subr.mxu1 %v567_v29  ;;  %5031 = vmatpush3.msra.mxu0 %v518_v30  ;;  %v1565_v29 = vcombine.high %v247_v22, %v247_v22  ;;  %v599_v30 = vld [vmem:[%s6227_s29 + $0xa90] sm:$0xff] }
  0xbc   : > { %5064 = vmatpush3.msra.mxu1 %v551_v31  ;;  %5032 = vmatprep.subr.mxu0 %v533_v33  ;;  %v632_v31 = vld [vmem:[%s6227_s29 + $0xb98] sm:$0xff]  ;;  %v583_v33 = vld [vmem:[%s6227_s29 + $0xa10] sm:$0xff] }
  0xbd   : > { %5065 = vmatprep.subr.mxu1 %v566_v34  ;;  %5033 = vmatpush3.msra.mxu0 %v517_v36  ;;  %v616_v34 = vld [vmem:[%s6227_s29 + $0xb18] sm:$0xff]  ;;  %v631_v36 = vld [vmem:[%s6227_s29 + $0xb90] sm:$0xff] }
  0xbe   : > { %2501 = vmatprep.mubr.f32.mxu0 %v1563_v35  ;;  %5066 = vmatpush3.msra.mxu1 %v550_v37  ;;  %v598_v35 = vld [vmem:[%s6227_s29 + $0xa88] sm:$0xff] }
  0xbf   : > { %2502 = vmatmul.mubr.f32.vlgmr.msra.gmra.mxu0 %v1555_v25  ;;  %5067 = vmatprep.subr.mxu1 %v565_v38  ;;  %v600_v25 = vld [vmem:[%s6227_s29 + $0xa98] sm:$0xff]  ;;  %v582_v37 = vld [vmem:[%s6227_s29 + $0xa08] sm:$0xff]  ;;  %v615_v38 = vld [vmem:[%s6227_s29 + $0xb10] sm:$0xff] }
  0xc0   : > { %5072 = vmatprep.subr.mxu0 %v612_v39  ;;  %5068 = vmatpush3.msra.mxu1 %v549_v41  ;;  %v1579_v39 = vrot.slane %v1565_v29, %v6276_v52  ;;  %v630_v41 = vld [vmem:[%s6227_s29 + $0xb88] sm:$0xff]  ;;  %v248_v29 = vld [vmem:[%s6222_s25 + $0x30] sm:$0xff] }
  0xc1   : > { %2571 = vmatprep.mubr.f32.mxu1 %v1564_v40  ;;  %5073 = vmatpush3.msra.mxu0 %v596_v42  ;;  %v597_v40 = vld [vmem:[%s6227_s29 + $0xa80] sm:$0xff] }
  0xc2   : > { %2572 = vmatmul.mubr.f32.vlgmr.msra.gmra.mxu1 %v1562_v32  ;;  %5074 = vmatprep.subr.mxu0 %v611_v43  ;;  %v1572_v32 = vrot.slane %v247_v22, %v6276_v52  ;;  %v581_v43 = vld [vmem:[%s6227_s29 + $0xa00] sm:$0xff]  ;;  %v684_v22 = vld [vmem:[%s6227_s29 + $0xd38] sm:$0xff] }
  0xc3   : > { %5107 = vmatprep.subr.mxu1 %v644_v44  ;;  %5075 = vmatpush3.msra.mxu0 %v595_v45  ;;  %v614_v44 = vld [vmem:[%s6227_s29 + $0xb08] sm:$0xff]  ;;  %v629_v45 = vld [vmem:[%s6227_s29 + $0xb80] sm:$0xff] }
  0xc4   : > { %5108 = vmatpush3.msra.mxu1 %v628_v46  ;;  %5076 = vmatprep.subr.mxu0 %v610_v47  ;;  %v1580_v42 = vcombine.high %v1572_v32, %v1572_v32  ;;  %v676_v46 = vld [vmem:[%s6227_s29 + $0xcf8] sm:$0xff]  ;;  %v1581_v47 = vcombine.high %v1579_v39, %v1579_v39 }
  0xc5   : > { %5109 = vmatprep.subr.mxu1 %v643_v48  ;;  %5077 = vmatpush3.msra.mxu0 %v594_v49  ;;  %v613_v48 = vld [vmem:[%s6227_s29 + $0xb00] sm:$0xff]  ;;  %v660_v49 = vld [vmem:[%s6227_s29 + $0xc78] sm:$0xff] }
  0xc6   : > { %5110 = vmatpush3.msra.mxu1 %v627_v50  ;;  %5078 = vmatprep.subr.mxu0 %v609_v51  ;;  %v675_v50 = vld [vmem:[%s6227_s29 + $0xcf0] sm:$0xff]  ;;  %v708_v51 = vld [vmem:[%s6227_s29 + $0xdf8] sm:$0xff] }
  0xc7   : > { %5111 = vmatprep.subr.mxu1 %v642_v53  ;;  %5079 = vmatpush3.msra.mxu0 %v593_v54  ;;  %v659_v53 = vld [vmem:[%s6227_s29 + $0xc70] sm:$0xff]  ;;  %v692_v54 = vld [vmem:[%s6227_s29 + $0xd78] sm:$0xff] }
  0xc8   : > { %5112 = vmatpush3.msra.mxu1 %v626_v55  ;;  %5080 = vmatprep.subr.mxu0 %v608_v56  ;;  %v674_v55 = vld [vmem:[%s6227_s29 + $0xce8] sm:$0xff]  ;;  %v707_v56 = vld [vmem:[%s6227_s29 + $0xdf0] sm:$0xff] }
  0xc9   : > { %5113 = vmatprep.subr.mxu1 %v641_v57  ;;  %5081 = vmatpush3.msra.mxu0 %v592_v58  ;;  %v658_v57 = vld [vmem:[%s6227_s29 + $0xc68] sm:$0xff]  ;;  %v691_v58 = vld [vmem:[%s6227_s29 + $0xd70] sm:$0xff] }
  0xca   : > { %5114 = vmatpush3.msra.mxu1 %v625_v59  ;;  %5082 = vmatprep.subr.mxu0 %v607_v60  ;;  %v673_v59 = vld [vmem:[%s6227_s29 + $0xce0] sm:$0xff]  ;;  %v706_v60 = vld [vmem:[%s6227_s29 + $0xde8] sm:$0xff] }
  0xcb   : > { %5115 = vmatprep.subr.mxu1 %v640_v61  ;;  %5083 = vmatpush3.msra.mxu0 %v591_v62  ;;  %v657_v61 = vld [vmem:[%s6227_s29 + $0xc60] sm:$0xff]  ;;  %v690_v62 = vld [vmem:[%s6227_s29 + $0xd68] sm:$0xff] }
  0xcc   : > { %5116 = vmatpush3.msra.mxu1 %v624_v63  ;;  %5084 = vmatprep.subr.mxu0 %v606_v0  ;;  %v672_v63 = vld [vmem:[%s6227_s29 + $0xcd8] sm:$0xff]  ;;  %v705_v0 = vld [vmem:[%s6227_s29 + $0xde0] sm:$0xff] }
  0xcd   : > { %5117 = vmatprep.subr.mxu1 %v639_v1  ;;  %5085 = vmatpush3.msra.mxu0 %v590_v2  ;;  %v656_v1 = vld [vmem:[%s6227_s29 + $0xc58] sm:$0xff]  ;;  %v689_v2 = vld [vmem:[%s6227_s29 + $0xd60] sm:$0xff] }
  0xce   : > { %5118 = vmatpush3.msra.mxu1 %v623_v3  ;;  %5086 = vmatprep.subr.mxu0 %v605_v4  ;;  %v671_v3 = vld [vmem:[%s6227_s29 + $0xcd0] sm:$0xff]  ;;  %v704_v4 = vld [vmem:[%s6227_s29 + $0xdd8] sm:$0xff] }
  0xcf   : > { %5119 = vmatprep.subr.mxu1 %v638_v5  ;;  %5087 = vmatpush3.msra.mxu0 %v589_v6  ;;  %v655_v5 = vld [vmem:[%s6227_s29 + $0xc50] sm:$0xff]  ;;  %v688_v6 = vld [vmem:[%s6227_s29 + $0xd58] sm:$0xff] }
  0xd0   : > { %5120 = vmatpush3.msra.mxu1 %v622_v7  ;;  %5088 = vmatprep.subr.mxu0 %v604_v8  ;;  %v670_v7 = vld [vmem:[%s6227_s29 + $0xcc8] sm:$0xff]  ;;  %v703_v8 = vld [vmem:[%s6227_s29 + $0xdd0] sm:$0xff] }
  0xd1   : > { %5121 = vmatprep.subr.mxu1 %v637_v9  ;;  %5089 = vmatpush3.msra.mxu0 %v588_v10  ;;  %v654_v9 = vld [vmem:[%s6227_s29 + $0xc48] sm:$0xff]  ;;  %v687_v10 = vld [vmem:[%s6227_s29 + $0xd50] sm:$0xff] }
  0xd2   : > { %5122 = vmatpush3.msra.mxu1 %v621_v11  ;;  %5090 = vmatprep.subr.mxu0 %v603_v12  ;;  %v669_v11 = vld [vmem:[%s6227_s29 + $0xcc0] sm:$0xff]  ;;  %v702_v12 = vld [vmem:[%s6227_s29 + $0xdc8] sm:$0xff] }
  0xd3   : > { %5123 = vmatprep.subr.mxu1 %v636_v13  ;;  %5091 = vmatpush3.msra.mxu0 %v587_v14  ;;  %v653_v13 = vld [vmem:[%s6227_s29 + $0xc40] sm:$0xff]  ;;  %v686_v14 = vld [vmem:[%s6227_s29 + $0xd48] sm:$0xff] }
  0xd4   : > { %5124 = vmatpush3.msra.mxu1 %v620_v15  ;;  %5092 = vmatprep.subr.mxu0 %v602_v16  ;;  %v668_v15 = vld [vmem:[%s6227_s29 + $0xcb8] sm:$0xff]  ;;  %v701_v16 = vld [vmem:[%s6227_s29 + $0xdc0] sm:$0xff] }
  0xd5   : > { %5125 = vmatprep.subr.mxu1 %v635_v17  ;;  %5093 = vmatpush3.msra.mxu0 %v586_v18  ;;  %v652_v17 = vld [vmem:[%s6227_s29 + $0xc38] sm:$0xff]  ;;  %v685_v18 = vld [vmem:[%s6227_s29 + $0xd40] sm:$0xff] }
  0xd6   : > { %5126 = vmatpush3.msra.mxu1 %v619_v19  ;;  %5094 = vmatprep.subr.mxu0 %v601_v20  ;;  %v667_v19 = vld [vmem:[%s6227_s29 + $0xcb0] sm:$0xff]  ;;  %v700_v20 = vld [vmem:[%s6227_s29 + $0xdb8] sm:$0xff] }
  0xd7   : > { %5127 = vmatprep.subr.mxu1 %v634_v21  ;;  %5095 = vmatpush3.msra.mxu0 %v585_v23  ;;  %v651_v21 = vld [vmem:[%s6227_s29 + $0xc30] sm:$0xff]  ;;  %v666_v23 = vld [vmem:[%s6227_s29 + $0xca8] sm:$0xff] }
  0xd8   : > { %5128 = vmatpush3.msra.mxu1 %v618_v24  ;;  %5096 = vmatprep.subr.mxu0 %v600_v25  ;;  %v699_v24 = vld [vmem:[%s6227_s29 + $0xdb0] sm:$0xff]  ;;  %v650_v25 = vld [vmem:[%s6227_s29 + $0xc28] sm:$0xff] }
  0xd9   : > { %5129 = vmatprep.subr.mxu1 %v633_v26  ;;  %5097 = vmatpush3.msra.mxu0 %v584_v27  ;;  %v683_v26 = vld [vmem:[%s6227_s29 + $0xd30] sm:$0xff]  ;;  %v665_v27 = vld [vmem:[%s6227_s29 + $0xca0] sm:$0xff] }
  0xda   : > { %5130 = vmatpush3.msra.mxu1 %v617_v28  ;;  %5098 = vmatprep.subr.mxu0 %v599_v30  ;;  %v698_v28 = vld [vmem:[%s6227_s29 + $0xda8] sm:$0xff]  ;;  %v649_v30 = vld [vmem:[%s6227_s29 + $0xc20] sm:$0xff] }
  0xdb   : > { %5131 = vmatprep.subr.mxu1 %v632_v31  ;;  %5099 = vmatpush3.msra.mxu0 %v583_v33  ;;  %v682_v31 = vld [vmem:[%s6227_s29 + $0xd28] sm:$0xff]  ;;  %v697_v33 = vld [vmem:[%s6227_s29 + $0xda0] sm:$0xff] }
  0xdc   : > { %5132 = vmatpush3.msra.mxu1 %v616_v34  ;;  %5100 = vmatprep.subr.mxu0 %v598_v35  ;;  %v648_v34 = vld [vmem:[%s6227_s29 + $0xc18] sm:$0xff]  ;;  %v681_v35 = vld [vmem:[%s6227_s29 + $0xd20] sm:$0xff] }
  0xdd   : > { %5133 = vmatprep.subr.mxu1 %v631_v36  ;;  %5101 = vmatpush3.msra.mxu0 %v582_v37  ;;  %v1582_v36 = vcombine.high %v248_v29, %v248_v29  ;;  %v663_v37 = vld [vmem:[%s6227_s29 + $0xc90] sm:$0xff] }
  0xde   : > { %5134 = vmatpush3.msra.mxu1 %v615_v38  ;;  %5102 = vmatprep.subr.mxu0 %v597_v40  ;;  %v696_v38 = vld [vmem:[%s6227_s29 + $0xd98] sm:$0xff]  ;;  %v647_v40 = vld [vmem:[%s6227_s29 + $0xc10] sm:$0xff] }
  0xdf   : > { %5135 = vmatprep.subr.mxu1 %v630_v41  ;;  %5103 = vmatpush3.msra.mxu0 %v581_v43  ;;  %v680_v41 = vld [vmem:[%s6227_s29 + $0xd18] sm:$0xff]  ;;  %v695_v43 = vld [vmem:[%s6227_s29 + $0xd90] sm:$0xff] }
  0xe0   : > { %2641 = vmatprep.mubr.f32.mxu0 %v1580_v42  ;;  %5136 = vmatpush3.msra.mxu1 %v614_v44  ;;  %v662_v42 = vld [vmem:[%s6227_s29 + $0xc88] sm:$0xff] }
  0xe1   : > { %2642 = vmatmul.mubr.f32.vlgmr.msra.gmra.mxu0 %v1572_v32  ;;  %5137 = vmatprep.subr.mxu1 %v629_v45  ;;  %v664_v32 = vld [vmem:[%s6227_s29 + $0xc98] sm:$0xff]  ;;  %v646_v44 = vld [vmem:[%s6227_s29 + $0xc08] sm:$0xff]  ;;  %v679_v45 = vld [vmem:[%s6227_s29 + $0xd10] sm:$0xff] }
  0xe2   : > { %5142 = vmatprep.subr.mxu0 %v676_v46  ;;  %5138 = vmatpush3.msra.mxu1 %v613_v48  ;;  %v1596_v46 = vrot.slane %v1582_v36, %v6276_v52  ;;  %v694_v48 = vld [vmem:[%s6227_s29 + $0xd88] sm:$0xff]  ;;  %v249_v36 = vld [vmem:[%s6222_s25 + $0x38] sm:$0xff] }
  0xe3   : > { %2711 = vmatprep.mubr.f32.mxu1 %v1581_v47  ;;  %5143 = vmatpush3.msra.mxu0 %v660_v49  ;;  %v661_v47 = vld [vmem:[%s6227_s29 + $0xc80] sm:$0xff] }
  0xe4   : > { %2712 = vmatmul.mubr.f32.vlgmr.msra.gmra.mxu1 %v1579_v39  ;;  %5144 = vmatprep.subr.mxu0 %v675_v50  ;;  %v1589_v39 = vrot.slane %v248_v29, %v6276_v52  ;;  %v645_v50 = vld [vmem:[%s6227_s29 + $0xc00] sm:$0xff]  ;;  %v748_v29 = vld [vmem:[%s6227_s29 + $0xf38] sm:$0xff] }
  0xe5   : > { %5177 = vmatprep.subr.mxu1 %v708_v51  ;;  %5145 = vmatpush3.msra.mxu0 %v659_v53  ;;  %v678_v51 = vld [vmem:[%s6227_s29 + $0xd08] sm:$0xff]  ;;  %v693_v53 = vld [vmem:[%s6227_s29 + $0xd80] sm:$0xff] }
  0xe6   : > { %5178 = vmatpush3.msra.mxu1 %v692_v54  ;;  %5146 = vmatprep.subr.mxu0 %v674_v55  ;;  %v1597_v49 = vcombine.high %v1589_v39, %v1589_v39  ;;  %v740_v54 = vld [vmem:[%s6227_s29 + $0xef8] sm:$0xff]  ;;  %v1598_v55 = vcombine.high %v1596_v46, %v1596_v46 }
  0xe7   : > { %5179 = vmatprep.subr.mxu1 %v707_v56  ;;  %5147 = vmatpush3.msra.mxu0 %v658_v57  ;;  %v677_v56 = vld [vmem:[%s6227_s29 + $0xd00] sm:$0xff]  ;;  %v724_v57 = vld [vmem:[%s6227_s29 + $0xe78] sm:$0xff] }
  0xe8   : > { %5180 = vmatpush3.msra.mxu1 %v691_v58  ;;  %5148 = vmatprep.subr.mxu0 %v673_v59  ;;  %v739_v58 = vld [vmem:[%s6227_s29 + $0xef0] sm:$0xff]  ;;  %v772_v59 = vld [vmem:[%s6227_s29 + $0xff8] sm:$0xff] }
  0xe9   : > { %5181 = vmatprep.subr.mxu1 %v706_v60  ;;  %5149 = vmatpush3.msra.mxu0 %v657_v61  ;;  %v723_v60 = vld [vmem:[%s6227_s29 + $0xe70] sm:$0xff]  ;;  %v756_v61 = vld [vmem:[%s6227_s29 + $0xf78] sm:$0xff] }
  0xea   : > { %5182 = vmatpush3.msra.mxu1 %v690_v62  ;;  %5150 = vmatprep.subr.mxu0 %v672_v63  ;;  %v738_v62 = vld [vmem:[%s6227_s29 + $0xee8] sm:$0xff]  ;;  %v771_v63 = vld [vmem:[%s6227_s29 + $0xff0] sm:$0xff] }
  0xeb   : > { %5183 = vmatprep.subr.mxu1 %v705_v0  ;;  %5151 = vmatpush3.msra.mxu0 %v656_v1  ;;  %v722_v0 = vld [vmem:[%s6227_s29 + $0xe68] sm:$0xff]  ;;  %v755_v1 = vld [vmem:[%s6227_s29 + $0xf70] sm:$0xff] }
  0xec   : > { %5184 = vmatpush3.msra.mxu1 %v689_v2  ;;  %5152 = vmatprep.subr.mxu0 %v671_v3  ;;  %v737_v2 = vld [vmem:[%s6227_s29 + $0xee0] sm:$0xff]  ;;  %v770_v3 = vld [vmem:[%s6227_s29 + $0xfe8] sm:$0xff] }
  0xed   : > { %5185 = vmatprep.subr.mxu1 %v704_v4  ;;  %5153 = vmatpush3.msra.mxu0 %v655_v5  ;;  %v721_v4 = vld [vmem:[%s6227_s29 + $0xe60] sm:$0xff]  ;;  %v754_v5 = vld [vmem:[%s6227_s29 + $0xf68] sm:$0xff] }
  0xee   : > { %5186 = vmatpush3.msra.mxu1 %v688_v6  ;;  %5154 = vmatprep.subr.mxu0 %v670_v7  ;;  %v736_v6 = vld [vmem:[%s6227_s29 + $0xed8] sm:$0xff]  ;;  %v769_v7 = vld [vmem:[%s6227_s29 + $0xfe0] sm:$0xff] }
  0xef   : > { %5187 = vmatprep.subr.mxu1 %v703_v8  ;;  %5155 = vmatpush3.msra.mxu0 %v654_v9  ;;  %v720_v8 = vld [vmem:[%s6227_s29 + $0xe58] sm:$0xff]  ;;  %v753_v9 = vld [vmem:[%s6227_s29 + $0xf60] sm:$0xff] }
  0xf0   : > { %5188 = vmatpush3.msra.mxu1 %v687_v10  ;;  %5156 = vmatprep.subr.mxu0 %v669_v11  ;;  %v735_v10 = vld [vmem:[%s6227_s29 + $0xed0] sm:$0xff]  ;;  %v768_v11 = vld [vmem:[%s6227_s29 + $0xfd8] sm:$0xff] }
  0xf1   : > { %5189 = vmatprep.subr.mxu1 %v702_v12  ;;  %5157 = vmatpush3.msra.mxu0 %v653_v13  ;;  %v719_v12 = vld [vmem:[%s6227_s29 + $0xe50] sm:$0xff]  ;;  %v752_v13 = vld [vmem:[%s6227_s29 + $0xf58] sm:$0xff] }
  0xf2   : > { %5190 = vmatpush3.msra.mxu1 %v686_v14  ;;  %5158 = vmatprep.subr.mxu0 %v668_v15  ;;  %v734_v14 = vld [vmem:[%s6227_s29 + $0xec8] sm:$0xff]  ;;  %v767_v15 = vld [vmem:[%s6227_s29 + $0xfd0] sm:$0xff] }
  0xf3   : > { %5191 = vmatprep.subr.mxu1 %v701_v16  ;;  %5159 = vmatpush3.msra.mxu0 %v652_v17  ;;  %v718_v16 = vld [vmem:[%s6227_s29 + $0xe48] sm:$0xff]  ;;  %v751_v17 = vld [vmem:[%s6227_s29 + $0xf50] sm:$0xff] }
  0xf4   : > { %5192 = vmatpush3.msra.mxu1 %v685_v18  ;;  %5160 = vmatprep.subr.mxu0 %v667_v19  ;;  %v733_v18 = vld [vmem:[%s6227_s29 + $0xec0] sm:$0xff]  ;;  %v766_v19 = vld [vmem:[%s6227_s29 + $0xfc8] sm:$0xff] }
  0xf5   : > { %5193 = vmatprep.subr.mxu1 %v700_v20  ;;  %5161 = vmatpush3.msra.mxu0 %v651_v21  ;;  %v717_v20 = vld [vmem:[%s6227_s29 + $0xe40] sm:$0xff]  ;;  %v750_v21 = vld [vmem:[%s6227_s29 + $0xf48] sm:$0xff] }
  0xf6   : > { %5194 = vmatpush3.msra.mxu1 %v684_v22  ;;  %5162 = vmatprep.subr.mxu0 %v666_v23  ;;  %v732_v22 = vld [vmem:[%s6227_s29 + $0xeb8] sm:$0xff]  ;;  %v765_v23 = vld [vmem:[%s6227_s29 + $0xfc0] sm:$0xff] }
  0xf7   : > { %5195 = vmatprep.subr.mxu1 %v699_v24  ;;  %5163 = vmatpush3.msra.mxu0 %v650_v25  ;;  %v716_v24 = vld [vmem:[%s6227_s29 + $0xe38] sm:$0xff]  ;;  %v749_v25 = vld [vmem:[%s6227_s29 + $0xf40] sm:$0xff] }
  0xf8   : > { %5196 = vmatpush3.msra.mxu1 %v683_v26  ;;  %5164 = vmatprep.subr.mxu0 %v665_v27  ;;  %v731_v26 = vld [vmem:[%s6227_s29 + $0xeb0] sm:$0xff]  ;;  %v764_v27 = vld [vmem:[%s6227_s29 + $0xfb8] sm:$0xff] }
  0xf9   : > { %5197 = vmatprep.subr.mxu1 %v698_v28  ;;  %5165 = vmatpush3.msra.mxu0 %v649_v30  ;;  %v715_v28 = vld [vmem:[%s6227_s29 + $0xe30] sm:$0xff]  ;;  %v730_v30 = vld [vmem:[%s6227_s29 + $0xea8] sm:$0xff] }
  0xfa   : > { %5198 = vmatpush3.msra.mxu1 %v682_v31  ;;  %5166 = vmatprep.subr.mxu0 %v664_v32  ;;  %v763_v31 = vld [vmem:[%s6227_s29 + $0xfb0] sm:$0xff]  ;;  %v714_v32 = vld [vmem:[%s6227_s29 + $0xe28] sm:$0xff] }
  0xfb   : > { %5199 = vmatprep.subr.mxu1 %v697_v33  ;;  %5167 = vmatpush3.msra.mxu0 %v648_v34  ;;  %v747_v33 = vld [vmem:[%s6227_s29 + $0xf30] sm:$0xff]  ;;  %v729_v34 = vld [vmem:[%s6227_s29 + $0xea0] sm:$0xff] }
  0xfc   : > { %5200 = vmatpush3.msra.mxu1 %v681_v35  ;;  %5168 = vmatprep.subr.mxu0 %v663_v37  ;;  %v762_v35 = vld [vmem:[%s6227_s29 + $0xfa8] sm:$0xff]  ;;  %v713_v37 = vld [vmem:[%s6227_s29 + $0xe20] sm:$0xff] }
  0xfd   : > { %5201 = vmatprep.subr.mxu1 %v696_v38  ;;  %5169 = vmatpush3.msra.mxu0 %v647_v40  ;;  %v746_v38 = vld [vmem:[%s6227_s29 + $0xf28] sm:$0xff]  ;;  %v761_v40 = vld [vmem:[%s6227_s29 + $0xfa0] sm:$0xff] }
  0xfe   : > { %5202 = vmatpush3.msra.mxu1 %v680_v41  ;;  %5170 = vmatprep.subr.mxu0 %v662_v42  ;;  %v712_v41 = vld [vmem:[%s6227_s29 + $0xe18] sm:$0xff]  ;;  %v745_v42 = vld [vmem:[%s6227_s29 + $0xf20] sm:$0xff] }
  0xff   : > { %5203 = vmatprep.subr.mxu1 %v695_v43  ;;  %5171 = vmatpush3.msra.mxu0 %v646_v44  ;;  %v1599_v43 = vcombine.high %v249_v36, %v249_v36  ;;  %v727_v44 = vld [vmem:[%s6227_s29 + $0xe90] sm:$0xff] }
 0x100   : > { %5204 = vmatpush3.msra.mxu1 %v679_v45  ;;  %5172 = vmatprep.subr.mxu0 %v661_v47  ;;  %v760_v45 = vld [vmem:[%s6227_s29 + $0xf98] sm:$0xff]  ;;  %v711_v47 = vld [vmem:[%s6227_s29 + $0xe10] sm:$0xff] }
 0x101   : > { %5205 = vmatprep.subr.mxu1 %v694_v48  ;;  %5173 = vmatpush3.msra.mxu0 %v645_v50  ;;  %v744_v48 = vld [vmem:[%s6227_s29 + $0xf18] sm:$0xff]  ;;  %v759_v50 = vld [vmem:[%s6227_s29 + $0xf90] sm:$0xff] }
 0x102   : > { %2781 = vmatprep.mubr.f32.mxu0 %v1597_v49  ;;  %5206 = vmatpush3.msra.mxu1 %v678_v51  ;;  %v726_v49 = vld [vmem:[%s6227_s29 + $0xe88] sm:$0xff] }
 0x103   : > { %2782 = vmatmul.mubr.f32.vlgmr.msra.gmra.mxu0 %v1589_v39  ;;  %5207 = vmatprep.subr.mxu1 %v693_v53  ;;  %v728_v39 = vld [vmem:[%s6227_s29 + $0xe98] sm:$0xff]  ;;  %v710_v51 = vld [vmem:[%s6227_s29 + $0xe08] sm:$0xff]  ;;  %v743_v53 = vld [vmem:[%s6227_s29 + $0xf10] sm:$0xff] }
 0x104   : > { %5212 = vmatprep.subr.mxu0 %v740_v54  ;;  %5208 = vmatpush3.msra.mxu1 %v677_v56  ;;  %v1613_v54 = vrot.slane %v1599_v43, %v6276_v52  ;;  %v758_v56 = vld [vmem:[%s6227_s29 + $0xf88] sm:$0xff]  ;;  %v250_v43 = vld [vmem:[%s6222_s25 + $0x40] sm:$0xff] }
 0x105   : > { %2851 = vmatprep.mubr.f32.mxu1 %v1598_v55  ;;  %5213 = vmatpush3.msra.mxu0 %v724_v57  ;;  %v725_v55 = vld [vmem:[%s6227_s29 + $0xe80] sm:$0xff] }
 0x106   : > { %2852 = vmatmul.mubr.f32.vlgmr.msra.gmra.mxu1 %v1596_v46  ;;  %5214 = vmatprep.subr.mxu0 %v739_v58  ;;  %v1606_v46 = vrot.slane %v249_v36, %v6276_v52  ;;  %v709_v58 = vld [vmem:[%s6227_s29 + $0xe00] sm:$0xff]  ;;  %v812_v36 = vld [vmem:[%s6227_s29 + $0x1138] sm:$0xff] }
 0x107   : > { %5247 = vmatprep.subr.mxu1 %v772_v59  ;;  %5215 = vmatpush3.msra.mxu0 %v723_v60  ;;  %v742_v59 = vld [vmem:[%s6227_s29 + $0xf08] sm:$0xff]  ;;  %v757_v60 = vld [vmem:[%s6227_s29 + $0xf80] sm:$0xff] }
 0x108   : > { %5248 = vmatpush3.msra.mxu1 %v756_v61  ;;  %5216 = vmatprep.subr.mxu0 %v738_v62  ;;  %v1614_v57 = vcombine.high %v1606_v46, %v1606_v46  ;;  %v804_v61 = vld [vmem:[%s6227_s29 + $0x10f8] sm:$0xff]  ;;  %v1615_v62 = vcombine.high %v1613_v54, %v1613_v54 }
 0x109   : > { %5249 = vmatprep.subr.mxu1 %v771_v63  ;;  %5217 = vmatpush3.msra.mxu0 %v722_v0  ;;  %v741_v63 = vld [vmem:[%s6227_s29 + $0xf00] sm:$0xff]  ;;  %v788_v0 = vld [vmem:[%s6227_s29 + $0x1078] sm:$0xff] }
 0x10a   : > { %5250 = vmatpush3.msra.mxu1 %v755_v1  ;;  %5218 = vmatprep.subr.mxu0 %v737_v2  ;;  %v803_v1 = vld [vmem:[%s6227_s29 + $0x10f0] sm:$0xff]  ;;  %v836_v2 = vld [vmem:[%s6227_s29 + $0x11f8] sm:$0xff] }
 0x10b   : > { %5251 = vmatprep.subr.mxu1 %v770_v3  ;;  %5219 = vmatpush3.msra.mxu0 %v721_v4  ;;  %v787_v3 = vld [vmem:[%s6227_s29 + $0x1070] sm:$0xff]  ;;  %v820_v4 = vld [vmem:[%s6227_s29 + $0x1178] sm:$0xff] }
 0x10c   : > { %5252 = vmatpush3.msra.mxu1 %v754_v5  ;;  %5220 = vmatprep.subr.mxu0 %v736_v6  ;;  %v802_v5 = vld [vmem:[%s6227_s29 + $0x10e8] sm:$0xff]  ;;  %v835_v6 = vld [vmem:[%s6227_s29 + $0x11f0] sm:$0xff] }
 0x10d   : > { %5253 = vmatprep.subr.mxu1 %v769_v7  ;;  %5221 = vmatpush3.msra.mxu0 %v720_v8  ;;  %v786_v7 = vld [vmem:[%s6227_s29 + $0x1068] sm:$0xff]  ;;  %v819_v8 = vld [vmem:[%s6227_s29 + $0x1170] sm:$0xff] }
 0x10e   : > { %5254 = vmatpush3.msra.mxu1 %v753_v9  ;;  %5222 = vmatprep.subr.mxu0 %v735_v10  ;;  %v801_v9 = vld [vmem:[%s6227_s29 + $0x10e0] sm:$0xff]  ;;  %v834_v10 = vld [vmem:[%s6227_s29 + $0x11e8] sm:$0xff] }
 0x10f   : > { %5255 = vmatprep.subr.mxu1 %v768_v11  ;;  %5223 = vmatpush3.msra.mxu0 %v719_v12  ;;  %v785_v11 = vld [vmem:[%s6227_s29 + $0x1060] sm:$0xff]  ;;  %v818_v12 = vld [vmem:[%s6227_s29 + $0x1168] sm:$0xff] }
 0x110   : > { %5256 = vmatpush3.msra.mxu1 %v752_v13  ;;  %5224 = vmatprep.subr.mxu0 %v734_v14  ;;  %v800_v13 = vld [vmem:[%s6227_s29 + $0x10d8] sm:$0xff]  ;;  %v833_v14 = vld [vmem:[%s6227_s29 + $0x11e0] sm:$0xff] }
 0x111   : > { %5257 = vmatprep.subr.mxu1 %v767_v15  ;;  %5225 = vmatpush3.msra.mxu0 %v718_v16  ;;  %v784_v15 = vld [vmem:[%s6227_s29 + $0x1058] sm:$0xff]  ;;  %v817_v16 = vld [vmem:[%s6227_s29 + $0x1160] sm:$0xff] }
 0x112   : > { %5258 = vmatpush3.msra.mxu1 %v751_v17  ;;  %5226 = vmatprep.subr.mxu0 %v733_v18  ;;  %v799_v17 = vld [vmem:[%s6227_s29 + $0x10d0] sm:$0xff]  ;;  %v832_v18 = vld [vmem:[%s6227_s29 + $0x11d8] sm:$0xff] }
 0x113   : > { %5259 = vmatprep.subr.mxu1 %v766_v19  ;;  %5227 = vmatpush3.msra.mxu0 %v717_v20  ;;  %v783_v19 = vld [vmem:[%s6227_s29 + $0x1050] sm:$0xff]  ;;  %v816_v20 = vld [vmem:[%s6227_s29 + $0x1158] sm:$0xff] }
 0x114   : > { %5260 = vmatpush3.msra.mxu1 %v750_v21  ;;  %5228 = vmatprep.subr.mxu0 %v732_v22  ;;  %v798_v21 = vld [vmem:[%s6227_s29 + $0x10c8] sm:$0xff]  ;;  %v831_v22 = vld [vmem:[%s6227_s29 + $0x11d0] sm:$0xff] }
 0x115   : > { %5261 = vmatprep.subr.mxu1 %v765_v23  ;;  %5229 = vmatpush3.msra.mxu0 %v716_v24  ;;  %v782_v23 = vld [vmem:[%s6227_s29 + $0x1048] sm:$0xff]  ;;  %v815_v24 = vld [vmem:[%s6227_s29 + $0x1150] sm:$0xff] }
 0x116   : > { %5262 = vmatpush3.msra.mxu1 %v749_v25  ;;  %5230 = vmatprep.subr.mxu0 %v731_v26  ;;  %v797_v25 = vld [vmem:[%s6227_s29 + $0x10c0] sm:$0xff]  ;;  %v830_v26 = vld [vmem:[%s6227_s29 + $0x11c8] sm:$0xff] }
 0x117   : > { %5263 = vmatprep.subr.mxu1 %v764_v27  ;;  %5231 = vmatpush3.msra.mxu0 %v715_v28  ;;  %v781_v27 = vld [vmem:[%s6227_s29 + $0x1040] sm:$0xff]  ;;  %v814_v28 = vld [vmem:[%s6227_s29 + $0x1148] sm:$0xff] }
 0x118   : > { %5264 = vmatpush3.msra.mxu1 %v748_v29  ;;  %5232 = vmatprep.subr.mxu0 %v730_v30  ;;  %v796_v29 = vld [vmem:[%s6227_s29 + $0x10b8] sm:$0xff]  ;;  %v829_v30 = vld [vmem:[%s6227_s29 + $0x11c0] sm:$0xff] }
 0x119   : > { %5265 = vmatprep.subr.mxu1 %v763_v31  ;;  %5233 = vmatpush3.msra.mxu0 %v714_v32  ;;  %v780_v31 = vld [vmem:[%s6227_s29 + $0x1038] sm:$0xff]  ;;  %v813_v32 = vld [vmem:[%s6227_s29 + $0x1140] sm:$0xff] }
 0x11a   : > { %5266 = vmatpush3.msra.mxu1 %v747_v33  ;;  %5234 = vmatprep.subr.mxu0 %v729_v34  ;;  %v795_v33 = vld [vmem:[%s6227_s29 + $0x10b0] sm:$0xff]  ;;  %v828_v34 = vld [vmem:[%s6227_s29 + $0x11b8] sm:$0xff] }
 0x11b   : > { %5267 = vmatprep.subr.mxu1 %v762_v35  ;;  %5235 = vmatpush3.msra.mxu0 %v713_v37  ;;  %v779_v35 = vld [vmem:[%s6227_s29 + $0x1030] sm:$0xff]  ;;  %v794_v37 = vld [vmem:[%s6227_s29 + $0x10a8] sm:$0xff] }
 0x11c   : > { %5268 = vmatpush3.msra.mxu1 %v746_v38  ;;  %5236 = vmatprep.subr.mxu0 %v728_v39  ;;  %v827_v38 = vld [vmem:[%s6227_s29 + $0x11b0] sm:$0xff]  ;;  %v778_v39 = vld [vmem:[%s6227_s29 + $0x1028] sm:$0xff] }
 0x11d   : > { %5269 = vmatprep.subr.mxu1 %v761_v40  ;;  %5237 = vmatpush3.msra.mxu0 %v712_v41  ;;  %v811_v40 = vld [vmem:[%s6227_s29 + $0x1130] sm:$0xff]  ;;  %v793_v41 = vld [vmem:[%s6227_s29 + $0x10a0] sm:$0xff] }
 0x11e   : > { %5270 = vmatpush3.msra.mxu1 %v745_v42  ;;  %5238 = vmatprep.subr.mxu0 %v727_v44  ;;  %v826_v42 = vld [vmem:[%s6227_s29 + $0x11a8] sm:$0xff]  ;;  %v777_v44 = vld [vmem:[%s6227_s29 + $0x1020] sm:$0xff] }
 0x11f   : > { %5271 = vmatprep.subr.mxu1 %v760_v45  ;;  %5239 = vmatpush3.msra.mxu0 %v711_v47  ;;  %v810_v45 = vld [vmem:[%s6227_s29 + $0x1128] sm:$0xff]  ;;  %v825_v47 = vld [vmem:[%s6227_s29 + $0x11a0] sm:$0xff] }
 0x120   : > { %5272 = vmatpush3.msra.mxu1 %v744_v48  ;;  %5240 = vmatprep.subr.mxu0 %v726_v49  ;;  %v776_v48 = vld [vmem:[%s6227_s29 + $0x1018] sm:$0xff]  ;;  %v809_v49 = vld [vmem:[%s6227_s29 + $0x1120] sm:$0xff] }
 0x121   : > { %5273 = vmatprep.subr.mxu1 %v759_v50  ;;  %5241 = vmatpush3.msra.mxu0 %v710_v51  ;;  %v1616_v50 = vcombine.high %v250_v43, %v250_v43  ;;  %v791_v51 = vld [vmem:[%s6227_s29 + $0x1090] sm:$0xff] }
 0x122   : > { %5274 = vmatpush3.msra.mxu1 %v743_v53  ;;  %5242 = vmatprep.subr.mxu0 %v725_v55  ;;  %v824_v53 = vld [vmem:[%s6227_s29 + $0x1198] sm:$0xff]  ;;  %v775_v55 = vld [vmem:[%s6227_s29 + $0x1010] sm:$0xff] }
 0x123   : > { %5275 = vmatprep.subr.mxu1 %v758_v56  ;;  %5243 = vmatpush3.msra.mxu0 %v709_v58  ;;  %v808_v56 = vld [vmem:[%s6227_s29 + $0x1118] sm:$0xff]  ;;  %v823_v58 = vld [vmem:[%s6227_s29 + $0x1190] sm:$0xff] }
 0x124   : > { %2921 = vmatprep.mubr.f32.mxu0 %v1614_v57  ;;  %5276 = vmatpush3.msra.mxu1 %v742_v59  ;;  %v790_v57 = vld [vmem:[%s6227_s29 + $0x1088] sm:$0xff] }
 0x125   : > { %2922 = vmatmul.mubr.f32.vlgmr.msra.gmra.mxu0 %v1606_v46  ;;  %5277 = vmatprep.subr.mxu1 %v757_v60  ;;  %v792_v46 = vld [vmem:[%s6227_s29 + $0x1098] sm:$0xff]  ;;  %v774_v59 = vld [vmem:[%s6227_s29 + $0x1008] sm:$0xff]  ;;  %v807_v60 = vld [vmem:[%s6227_s29 + $0x1110] sm:$0xff] }
 0x126   : > { %5282 = vmatprep.subr.mxu0 %v804_v61  ;;  %5278 = vmatpush3.msra.mxu1 %v741_v63  ;;  %v1630_v61 = vrot.slane %v1616_v50, %v6276_v52  ;;  %v822_v63 = vld [vmem:[%s6227_s29 + $0x1188] sm:$0xff] }
 0x127   : > { %2991 = vmatprep.mubr.f32.mxu1 %v1615_v62  ;;  %5283 = vmatpush3.msra.mxu0 %v788_v0  ;;  %v789_v62 = vld [vmem:[%s6227_s29 + $0x1080] sm:$0xff]  ;;  %v251_v50 = vld [vmem:[%s6222_s25 + $0x48] sm:$0xff] }
 0x128   : > { %2992 = vmatmul.mubr.f32.vlgmr.msra.gmra.mxu1 %v1613_v54  ;;  %5284 = vmatprep.subr.mxu0 %v803_v1  ;;  %v1623_v54 = vrot.slane %v250_v43, %v6276_v52  ;;  %v773_v1 = vld [vmem:[%s6227_s29 + $0x1000] sm:$0xff]  ;;  %v876_v43 = vld [vmem:[%s6227_s29 + $0x1338] sm:$0xff] }
 0x129   : > { %5317 = vmatprep.subr.mxu1 %v836_v2  ;;  %5285 = vmatpush3.msra.mxu0 %v787_v3  ;;  %v806_v2 = vld [vmem:[%s6227_s29 + $0x1108] sm:$0xff]  ;;  %v821_v3 = vld [vmem:[%s6227_s29 + $0x1180] sm:$0xff] }
 0x12a   : > { %5318 = vmatpush3.msra.mxu1 %v820_v4  ;;  %5286 = vmatprep.subr.mxu0 %v802_v5  ;;  %v1631_v0 = vcombine.high %v1623_v54, %v1623_v54  ;;  %v868_v4 = vld [vmem:[%s6227_s29 + $0x12f8] sm:$0xff]  ;;  %v1632_v5 = vcombine.high %v1630_v61, %v1630_v61 }
 0x12b   : > { %5319 = vmatprep.subr.mxu1 %v835_v6  ;;  %5287 = vmatpush3.msra.mxu0 %v786_v7  ;;  %v805_v6 = vld [vmem:[%s6227_s29 + $0x1100] sm:$0xff]  ;;  %v852_v7 = vld [vmem:[%s6227_s29 + $0x1278] sm:$0xff] }
 0x12c   : > { %5320 = vmatpush3.msra.mxu1 %v819_v8  ;;  %5288 = vmatprep.subr.mxu0 %v801_v9  ;;  %v867_v8 = vld [vmem:[%s6227_s29 + $0x12f0] sm:$0xff]  ;;  %v900_v9 = vld [vmem:[%s6227_s29 + $0x13f8] sm:$0xff] }
 0x12d   : > { %5321 = vmatprep.subr.mxu1 %v834_v10  ;;  %5289 = vmatpush3.msra.mxu0 %v785_v11  ;;  %v851_v10 = vld [vmem:[%s6227_s29 + $0x1270] sm:$0xff]  ;;  %v884_v11 = vld [vmem:[%s6227_s29 + $0x1378] sm:$0xff] }
 0x12e   : > { %5322 = vmatpush3.msra.mxu1 %v818_v12  ;;  %5290 = vmatprep.subr.mxu0 %v800_v13  ;;  %v866_v12 = vld [vmem:[%s6227_s29 + $0x12e8] sm:$0xff]  ;;  %v899_v13 = vld [vmem:[%s6227_s29 + $0x13f0] sm:$0xff] }
 0x12f   : > { %5323 = vmatprep.subr.mxu1 %v833_v14  ;;  %5291 = vmatpush3.msra.mxu0 %v784_v15  ;;  %v850_v14 = vld [vmem:[%s6227_s29 + $0x1268] sm:$0xff]  ;;  %v883_v15 = vld [vmem:[%s6227_s29 + $0x1370] sm:$0xff] }
 0x130   : > { %5324 = vmatpush3.msra.mxu1 %v817_v16  ;;  %5292 = vmatprep.subr.mxu0 %v799_v17  ;;  %v865_v16 = vld [vmem:[%s6227_s29 + $0x12e0] sm:$0xff]  ;;  %v898_v17 = vld [vmem:[%s6227_s29 + $0x13e8] sm:$0xff] }
 0x131   : > { %5325 = vmatprep.subr.mxu1 %v832_v18  ;;  %5293 = vmatpush3.msra.mxu0 %v783_v19  ;;  %v849_v18 = vld [vmem:[%s6227_s29 + $0x1260] sm:$0xff]  ;;  %v882_v19 = vld [vmem:[%s6227_s29 + $0x1368] sm:$0xff] }
 0x132   : > { %5326 = vmatpush3.msra.mxu1 %v816_v20  ;;  %5294 = vmatprep.subr.mxu0 %v798_v21  ;;  %v864_v20 = vld [vmem:[%s6227_s29 + $0x12d8] sm:$0xff]  ;;  %v897_v21 = vld [vmem:[%s6227_s29 + $0x13e0] sm:$0xff] }
 0x133   : > { %5327 = vmatprep.subr.mxu1 %v831_v22  ;;  %5295 = vmatpush3.msra.mxu0 %v782_v23  ;;  %v848_v22 = vld [vmem:[%s6227_s29 + $0x1258] sm:$0xff]  ;;  %v881_v23 = vld [vmem:[%s6227_s29 + $0x1360] sm:$0xff] }
 0x134   : > { %5328 = vmatpush3.msra.mxu1 %v815_v24  ;;  %5296 = vmatprep.subr.mxu0 %v797_v25  ;;  %v863_v24 = vld [vmem:[%s6227_s29 + $0x12d0] sm:$0xff]  ;;  %v896_v25 = vld [vmem:[%s6227_s29 + $0x13d8] sm:$0xff] }
 0x135   : > { %5329 = vmatprep.subr.mxu1 %v830_v26  ;;  %5297 = vmatpush3.msra.mxu0 %v781_v27  ;;  %v847_v26 = vld [vmem:[%s6227_s29 + $0x1250] sm:$0xff]  ;;  %v880_v27 = vld [vmem:[%s6227_s29 + $0x1358] sm:$0xff] }
 0x136   : > { %5330 = vmatpush3.msra.mxu1 %v814_v28  ;;  %5298 = vmatprep.subr.mxu0 %v796_v29  ;;  %v862_v28 = vld [vmem:[%s6227_s29 + $0x12c8] sm:$0xff]  ;;  %v895_v29 = vld [vmem:[%s6227_s29 + $0x13d0] sm:$0xff] }
 0x137   : > { %5331 = vmatprep.subr.mxu1 %v829_v30  ;;  %5299 = vmatpush3.msra.mxu0 %v780_v31  ;;  %v846_v30 = vld [vmem:[%s6227_s29 + $0x1248] sm:$0xff]  ;;  %v879_v31 = vld [vmem:[%s6227_s29 + $0x1350] sm:$0xff] }
 0x138   : > { %5332 = vmatpush3.msra.mxu1 %v813_v32  ;;  %5300 = vmatprep.subr.mxu0 %v795_v33  ;;  %v861_v32 = vld [vmem:[%s6227_s29 + $0x12c0] sm:$0xff]  ;;  %v894_v33 = vld [vmem:[%s6227_s29 + $0x13c8] sm:$0xff] }
 0x139   : > { %5333 = vmatprep.subr.mxu1 %v828_v34  ;;  %5301 = vmatpush3.msra.mxu0 %v779_v35  ;;  %v845_v34 = vld [vmem:[%s6227_s29 + $0x1240] sm:$0xff]  ;;  %v878_v35 = vld [vmem:[%s6227_s29 + $0x1348] sm:$0xff] }
 0x13a   : > { %5334 = vmatpush3.msra.mxu1 %v812_v36  ;;  %5302 = vmatprep.subr.mxu0 %v794_v37  ;;  %v860_v36 = vld [vmem:[%s6227_s29 + $0x12b8] sm:$0xff]  ;;  %v893_v37 = vld [vmem:[%s6227_s29 + $0x13c0] sm:$0xff] }
 0x13b   : > { %5335 = vmatprep.subr.mxu1 %v827_v38  ;;  %5303 = vmatpush3.msra.mxu0 %v778_v39  ;;  %v844_v38 = vld [vmem:[%s6227_s29 + $0x1238] sm:$0xff]  ;;  %v877_v39 = vld [vmem:[%s6227_s29 + $0x1340] sm:$0xff] }
 0x13c   : > { %5336 = vmatpush3.msra.mxu1 %v811_v40  ;;  %5304 = vmatprep.subr.mxu0 %v793_v41  ;;  %v859_v40 = vld [vmem:[%s6227_s29 + $0x12b0] sm:$0xff]  ;;  %v892_v41 = vld [vmem:[%s6227_s29 + $0x13b8] sm:$0xff] }
 0x13d   : > { %5337 = vmatprep.subr.mxu1 %v826_v42  ;;  %5305 = vmatpush3.msra.mxu0 %v777_v44  ;;  %v843_v42 = vld [vmem:[%s6227_s29 + $0x1230] sm:$0xff]  ;;  %v858_v44 = vld [vmem:[%s6227_s29 + $0x12a8] sm:$0xff] }
 0x13e   : > { %5338 = vmatpush3.msra.mxu1 %v810_v45  ;;  %5306 = vmatprep.subr.mxu0 %v792_v46  ;;  %v891_v45 = vld [vmem:[%s6227_s29 + $0x13b0] sm:$0xff]  ;;  %v842_v46 = vld [vmem:[%s6227_s29 + $0x1228] sm:$0xff] }
 0x13f   : > { %5339 = vmatprep.subr.mxu1 %v825_v47  ;;  %5307 = vmatpush3.msra.mxu0 %v776_v48  ;;  %v875_v47 = vld [vmem:[%s6227_s29 + $0x1330] sm:$0xff]  ;;  %v857_v48 = vld [vmem:[%s6227_s29 + $0x12a0] sm:$0xff] }
 0x140   : > { %5340 = vmatpush3.msra.mxu1 %v809_v49  ;;  %5308 = vmatprep.subr.mxu0 %v791_v51  ;;  %v890_v49 = vld [vmem:[%s6227_s29 + $0x13a8] sm:$0xff]  ;;  %v841_v51 = vld [vmem:[%s6227_s29 + $0x1220] sm:$0xff] }
 0x141   : > { %5341 = vmatprep.subr.mxu1 %v824_v53  ;;  %5309 = vmatpush3.msra.mxu0 %v775_v55  ;;  %v874_v53 = vld [vmem:[%s6227_s29 + $0x1328] sm:$0xff]  ;;  %v889_v55 = vld [vmem:[%s6227_s29 + $0x13a0] sm:$0xff] }
 0x142   : > { %5342 = vmatpush3.msra.mxu1 %v808_v56  ;;  %5310 = vmatprep.subr.mxu0 %v790_v57  ;;  %v840_v56 = vld [vmem:[%s6227_s29 + $0x1218] sm:$0xff]  ;;  %v873_v57 = vld [vmem:[%s6227_s29 + $0x1320] sm:$0xff] }
 0x143   : > { %5343 = vmatprep.subr.mxu1 %v823_v58  ;;  %5311 = vmatpush3.msra.mxu0 %v774_v59  ;;  %v1633_v58 = vcombine.high %v251_v50, %v251_v50  ;;  %v855_v59 = vld [vmem:[%s6227_s29 + $0x1290] sm:$0xff] }
 0x144   : > { %5344 = vmatpush3.msra.mxu1 %v807_v60  ;;  %5312 = vmatprep.subr.mxu0 %v789_v62  ;;  %v888_v60 = vld [vmem:[%s6227_s29 + $0x1398] sm:$0xff]  ;;  %v839_v62 = vld [vmem:[%s6227_s29 + $0x1210] sm:$0xff] }
 0x145   : > { %5345 = vmatprep.subr.mxu1 %v822_v63  ;;  %5313 = vmatpush3.msra.mxu0 %v773_v1  ;;  %v872_v63 = vld [vmem:[%s6227_s29 + $0x1318] sm:$0xff]  ;;  %v887_v1 = vld [vmem:[%s6227_s29 + $0x1390] sm:$0xff] }
 0x146   : > { %3061 = vmatprep.mubr.f32.mxu0 %v1631_v0  ;;  %5346 = vmatpush3.msra.mxu1 %v806_v2  ;;  %v854_v0 = vld [vmem:[%s6227_s29 + $0x1288] sm:$0xff] }
 0x147   : > { %3062 = vmatmul.mubr.f32.vlgmr.msra.gmra.mxu0 %v1623_v54  ;;  %5347 = vmatprep.subr.mxu1 %v821_v3  ;;  %v856_v54 = vld [vmem:[%s6227_s29 + $0x1298] sm:$0xff]  ;;  %v838_v2 = vld [vmem:[%s6227_s29 + $0x1208] sm:$0xff]  ;;  %v871_v3 = vld [vmem:[%s6227_s29 + $0x1310] sm:$0xff] }
 0x148   : > { %5352 = vmatprep.subr.mxu0 %v868_v4  ;;  %5348 = vmatpush3.msra.mxu1 %v805_v6  ;;  %v1647_v4 = vrot.slane %v1633_v58, %v6276_v52  ;;  %v886_v6 = vld [vmem:[%s6227_s29 + $0x1388] sm:$0xff]  ;;  %v252_v58 = vld [vmem:[%s6222_s25 + $0x50] sm:$0xff] }
 0x149   : > { %3131 = vmatprep.mubr.f32.mxu1 %v1632_v5  ;;  %5353 = vmatpush3.msra.mxu0 %v852_v7  ;;  %v853_v5 = vld [vmem:[%s6227_s29 + $0x1280] sm:$0xff] }
 0x14a   : > { %3132 = vmatmul.mubr.f32.vlgmr.msra.gmra.mxu1 %v1630_v61  ;;  %5354 = vmatprep.subr.mxu0 %v867_v8  ;;  %v1640_v61 = vrot.slane %v251_v50, %v6276_v52  ;;  %v837_v8 = vld [vmem:[%s6227_s29 + $0x1200] sm:$0xff]  ;;  %v940_v50 = vld [vmem:[%s6227_s29 + $0x1538] sm:$0xff] }
 0x14b   : > { %5387 = vmatprep.subr.mxu1 %v900_v9  ;;  %5355 = vmatpush3.msra.mxu0 %v851_v10  ;;  %v870_v9 = vld [vmem:[%s6227_s29 + $0x1308] sm:$0xff]  ;;  %v885_v10 = vld [vmem:[%s6227_s29 + $0x1380] sm:$0xff] }
 0x14c   : > { %5388 = vmatpush3.msra.mxu1 %v884_v11  ;;  %5356 = vmatprep.subr.mxu0 %v866_v12  ;;  %v1648_v7 = vcombine.high %v1640_v61, %v1640_v61  ;;  %v932_v11 = vld [vmem:[%s6227_s29 + $0x14f8] sm:$0xff]  ;;  %v1649_v12 = vcombine.high %v1647_v4, %v1647_v4 }
 0x14d   : > { %5389 = vmatprep.subr.mxu1 %v899_v13  ;;  %5357 = vmatpush3.msra.mxu0 %v850_v14  ;;  %v869_v13 = vld [vmem:[%s6227_s29 + $0x1300] sm:$0xff]  ;;  %v916_v14 = vld [vmem:[%s6227_s29 + $0x1478] sm:$0xff] }
 0x14e   : > { %5390 = vmatpush3.msra.mxu1 %v883_v15  ;;  %5358 = vmatprep.subr.mxu0 %v865_v16  ;;  %v931_v15 = vld [vmem:[%s6227_s29 + $0x14f0] sm:$0xff]  ;;  %v964_v16 = vld [vmem:[%s6227_s29 + $0x15f8] sm:$0xff] }
 0x14f   : > { %5391 = vmatprep.subr.mxu1 %v898_v17  ;;  %5359 = vmatpush3.msra.mxu0 %v849_v18  ;;  %v915_v17 = vld [vmem:[%s6227_s29 + $0x1470] sm:$0xff]  ;;  %v948_v18 = vld [vmem:[%s6227_s29 + $0x1578] sm:$0xff] }
 0x150   : > { %5392 = vmatpush3.msra.mxu1 %v882_v19  ;;  %5360 = vmatprep.subr.mxu0 %v864_v20  ;;  %v930_v19 = vld [vmem:[%s6227_s29 + $0x14e8] sm:$0xff]  ;;  %v963_v20 = vld [vmem:[%s6227_s29 + $0x15f0] sm:$0xff] }
 0x151   : > { %5393 = vmatprep.subr.mxu1 %v897_v21  ;;  %5361 = vmatpush3.msra.mxu0 %v848_v22  ;;  %v914_v21 = vld [vmem:[%s6227_s29 + $0x1468] sm:$0xff]  ;;  %v947_v22 = vld [vmem:[%s6227_s29 + $0x1570] sm:$0xff] }
 0x152   : > { %5394 = vmatpush3.msra.mxu1 %v881_v23  ;;  %5362 = vmatprep.subr.mxu0 %v863_v24  ;;  %v929_v23 = vld [vmem:[%s6227_s29 + $0x14e0] sm:$0xff]  ;;  %v962_v24 = vld [vmem:[%s6227_s29 + $0x15e8] sm:$0xff] }
 0x153   : > { %5395 = vmatprep.subr.mxu1 %v896_v25  ;;  %5363 = vmatpush3.msra.mxu0 %v847_v26  ;;  %v913_v25 = vld [vmem:[%s6227_s29 + $0x1460] sm:$0xff]  ;;  %v946_v26 = vld [vmem:[%s6227_s29 + $0x1568] sm:$0xff] }
 0x154   : > { %5396 = vmatpush3.msra.mxu1 %v880_v27  ;;  %5364 = vmatprep.subr.mxu0 %v862_v28  ;;  %v928_v27 = vld [vmem:[%s6227_s29 + $0x14d8] sm:$0xff]  ;;  %v961_v28 = vld [vmem:[%s6227_s29 + $0x15e0] sm:$0xff] }
 0x155   : > { %5397 = vmatprep.subr.mxu1 %v895_v29  ;;  %5365 = vmatpush3.msra.mxu0 %v846_v30  ;;  %v912_v29 = vld [vmem:[%s6227_s29 + $0x1458] sm:$0xff]  ;;  %v945_v30 = vld [vmem:[%s6227_s29 + $0x1560] sm:$0xff] }
 0x156   : > { %5398 = vmatpush3.msra.mxu1 %v879_v31  ;;  %5366 = vmatprep.subr.mxu0 %v861_v32  ;;  %v927_v31 = vld [vmem:[%s6227_s29 + $0x14d0] sm:$0xff]  ;;  %v960_v32 = vld [vmem:[%s6227_s29 + $0x15d8] sm:$0xff] }
 0x157   : > { %5399 = vmatprep.subr.mxu1 %v894_v33  ;;  %5367 = vmatpush3.msra.mxu0 %v845_v34  ;;  %v911_v33 = vld [vmem:[%s6227_s29 + $0x1450] sm:$0xff]  ;;  %v944_v34 = vld [vmem:[%s6227_s29 + $0x1558] sm:$0xff] }
 0x158   : > { %5400 = vmatpush3.msra.mxu1 %v878_v35  ;;  %5368 = vmatprep.subr.mxu0 %v860_v36  ;;  %v926_v35 = vld [vmem:[%s6227_s29 + $0x14c8] sm:$0xff]  ;;  %v959_v36 = vld [vmem:[%s6227_s29 + $0x15d0] sm:$0xff] }
 0x159   : > { %5401 = vmatprep.subr.mxu1 %v893_v37  ;;  %5369 = vmatpush3.msra.mxu0 %v844_v38  ;;  %v910_v37 = vld [vmem:[%s6227_s29 + $0x1448] sm:$0xff]  ;;  %v943_v38 = vld [vmem:[%s6227_s29 + $0x1550] sm:$0xff] }
 0x15a   : > { %5402 = vmatpush3.msra.mxu1 %v877_v39  ;;  %5370 = vmatprep.subr.mxu0 %v859_v40  ;;  %v925_v39 = vld [vmem:[%s6227_s29 + $0x14c0] sm:$0xff]  ;;  %v958_v40 = vld [vmem:[%s6227_s29 + $0x15c8] sm:$0xff] }
 0x15b   : > { %5403 = vmatprep.subr.mxu1 %v892_v41  ;;  %5371 = vmatpush3.msra.mxu0 %v843_v42  ;;  %v909_v41 = vld [vmem:[%s6227_s29 + $0x1440] sm:$0xff]  ;;  %v942_v42 = vld [vmem:[%s6227_s29 + $0x1548] sm:$0xff] }
 0x15c   : > { %5404 = vmatpush3.msra.mxu1 %v876_v43  ;;  %5372 = vmatprep.subr.mxu0 %v858_v44  ;;  %v924_v43 = vld [vmem:[%s6227_s29 + $0x14b8] sm:$0xff]  ;;  %v957_v44 = vld [vmem:[%s6227_s29 + $0x15c0] sm:$0xff] }
 0x15d   : > { %5405 = vmatprep.subr.mxu1 %v891_v45  ;;  %5373 = vmatpush3.msra.mxu0 %v842_v46  ;;  %v908_v45 = vld [vmem:[%s6227_s29 + $0x1438] sm:$0xff]  ;;  %v941_v46 = vld [vmem:[%s6227_s29 + $0x1540] sm:$0xff] }
 0x15e   : > { %5406 = vmatpush3.msra.mxu1 %v875_v47  ;;  %5374 = vmatprep.subr.mxu0 %v857_v48  ;;  %v923_v47 = vld [vmem:[%s6227_s29 + $0x14b0] sm:$0xff]  ;;  %v956_v48 = vld [vmem:[%s6227_s29 + $0x15b8] sm:$0xff] }
 0x15f   : > { %5407 = vmatprep.subr.mxu1 %v890_v49  ;;  %5375 = vmatpush3.msra.mxu0 %v841_v51  ;;  %v907_v49 = vld [vmem:[%s6227_s29 + $0x1430] sm:$0xff]  ;;  %v922_v51 = vld [vmem:[%s6227_s29 + $0x14a8] sm:$0xff] }
 0x160   : > { %5408 = vmatpush3.msra.mxu1 %v874_v53  ;;  %5376 = vmatprep.subr.mxu0 %v856_v54  ;;  %v955_v53 = vld [vmem:[%s6227_s29 + $0x15b0] sm:$0xff]  ;;  %v906_v54 = vld [vmem:[%s6227_s29 + $0x1428] sm:$0xff] }
 0x161   : > { %5409 = vmatprep.subr.mxu1 %v889_v55  ;;  %5377 = vmatpush3.msra.mxu0 %v840_v56  ;;  %v939_v55 = vld [vmem:[%s6227_s29 + $0x1530] sm:$0xff]  ;;  %v921_v56 = vld [vmem:[%s6227_s29 + $0x14a0] sm:$0xff] }
 0x162   : > { %5410 = vmatpush3.msra.mxu1 %v873_v57  ;;  %5378 = vmatprep.subr.mxu0 %v855_v59  ;;  %v954_v57 = vld [vmem:[%s6227_s29 + $0x15a8] sm:$0xff]  ;;  %v905_v59 = vld [vmem:[%s6227_s29 + $0x1420] sm:$0xff] }
 0x163   : > { %5411 = vmatprep.subr.mxu1 %v888_v60  ;;  %5379 = vmatpush3.msra.mxu0 %v839_v62  ;;  %v938_v60 = vld [vmem:[%s6227_s29 + $0x1528] sm:$0xff]  ;;  %v953_v62 = vld [vmem:[%s6227_s29 + $0x15a0] sm:$0xff] }
 0x164   : > { %5412 = vmatpush3.msra.mxu1 %v872_v63  ;;  %5380 = vmatprep.subr.mxu0 %v854_v0  ;;  %v904_v63 = vld [vmem:[%s6227_s29 + $0x1418] sm:$0xff]  ;;  %v937_v0 = vld [vmem:[%s6227_s29 + $0x1520] sm:$0xff] }
 0x165   : > { %5413 = vmatprep.subr.mxu1 %v887_v1  ;;  %5381 = vmatpush3.msra.mxu0 %v838_v2  ;;  %v1650_v1 = vcombine.high %v252_v58, %v252_v58  ;;  %v919_v2 = vld [vmem:[%s6227_s29 + $0x1490] sm:$0xff] }
 0x166   : > { %5414 = vmatpush3.msra.mxu1 %v871_v3  ;;  %5382 = vmatprep.subr.mxu0 %v853_v5  ;;  %v952_v3 = vld [vmem:[%s6227_s29 + $0x1598] sm:$0xff]  ;;  %v903_v5 = vld [vmem:[%s6227_s29 + $0x1410] sm:$0xff] }
 0x167   : > { %5415 = vmatprep.subr.mxu1 %v886_v6  ;;  %5383 = vmatpush3.msra.mxu0 %v837_v8  ;;  %v936_v6 = vld [vmem:[%s6227_s29 + $0x1518] sm:$0xff]  ;;  %v951_v8 = vld [vmem:[%s6227_s29 + $0x1590] sm:$0xff] }
 0x168   : > { %3201 = vmatprep.mubr.f32.mxu0 %v1648_v7  ;;  %5416 = vmatpush3.msra.mxu1 %v870_v9  ;;  %v918_v7 = vld [vmem:[%s6227_s29 + $0x1488] sm:$0xff] }
 0x169   : > { %3202 = vmatmul.mubr.f32.vlgmr.msra.gmra.mxu0 %v1640_v61  ;;  %5417 = vmatprep.subr.mxu1 %v885_v10  ;;  %v920_v61 = vld [vmem:[%s6227_s29 + $0x1498] sm:$0xff]  ;;  %v902_v9 = vld [vmem:[%s6227_s29 + $0x1408] sm:$0xff]  ;;  %v935_v10 = vld [vmem:[%s6227_s29 + $0x1510] sm:$0xff] }
 0x16a   : > { %5422 = vmatprep.subr.mxu0 %v932_v11  ;;  %5418 = vmatpush3.msra.mxu1 %v869_v13  ;;  %v1664_v11 = vrot.slane %v1650_v1, %v6276_v52  ;;  %v950_v13 = vld [vmem:[%s6227_s29 + $0x1588] sm:$0xff]  ;;  %v253_v1 = vld [vmem:[%s6222_s25 + $0x58] sm:$0xff] }
 0x16b   : > { %3271 = vmatprep.mubr.f32.mxu1 %v1649_v12  ;;  %5423 = vmatpush3.msra.mxu0 %v916_v14  ;;  %v917_v12 = vld [vmem:[%s6227_s29 + $0x1480] sm:$0xff] }
 0x16c   : > { %3272 = vmatmul.mubr.f32.vlgmr.msra.gmra.mxu1 %v1647_v4  ;;  %5424 = vmatprep.subr.mxu0 %v931_v15  ;;  %v1657_v4 = vrot.slane %v252_v58, %v6276_v52  ;;  %v901_v15 = vld [vmem:[%s6227_s29 + $0x1400] sm:$0xff]  ;;  %v1004_v58 = vld [vmem:[%s6227_s29 + $0x1738] sm:$0xff] }
 0x16d   : > { %5457 = vmatprep.subr.mxu1 %v964_v16  ;;  %5425 = vmatpush3.msra.mxu0 %v915_v17  ;;  %v934_v16 = vld [vmem:[%s6227_s29 + $0x1508] sm:$0xff]  ;;  %v949_v17 = vld [vmem:[%s6227_s29 + $0x1580] sm:$0xff] }
 0x16e   : > { %5458 = vmatpush3.msra.mxu1 %v948_v18  ;;  %5426 = vmatprep.subr.mxu0 %v930_v19  ;;  %v1665_v14 = vcombine.high %v1657_v4, %v1657_v4  ;;  %v996_v18 = vld [vmem:[%s6227_s29 + $0x16f8] sm:$0xff]  ;;  %v1666_v19 = vcombine.high %v1664_v11, %v1664_v11 }
 0x16f   : > { %5459 = vmatprep.subr.mxu1 %v963_v20  ;;  %5427 = vmatpush3.msra.mxu0 %v914_v21  ;;  %v933_v20 = vld [vmem:[%s6227_s29 + $0x1500] sm:$0xff]  ;;  %v980_v21 = vld [vmem:[%s6227_s29 + $0x1678] sm:$0xff] }
 0x170   : > { %5460 = vmatpush3.msra.mxu1 %v947_v22  ;;  %5428 = vmatprep.subr.mxu0 %v929_v23  ;;  %v995_v22 = vld [vmem:[%s6227_s29 + $0x16f0] sm:$0xff]  ;;  %v1028_v23 = vld [vmem:[%s6227_s29 + $0x17f8] sm:$0xff] }
 0x171   : > { %5461 = vmatprep.subr.mxu1 %v962_v24  ;;  %5429 = vmatpush3.msra.mxu0 %v913_v25  ;;  %v979_v24 = vld [vmem:[%s6227_s29 + $0x1670] sm:$0xff]  ;;  %v1012_v25 = vld [vmem:[%s6227_s29 + $0x1778] sm:$0xff] }
 0x172   : > { %5462 = vmatpush3.msra.mxu1 %v946_v26  ;;  %5430 = vmatprep.subr.mxu0 %v928_v27  ;;  %v994_v26 = vld [vmem:[%s6227_s29 + $0x16e8] sm:$0xff]  ;;  %v1027_v27 = vld [vmem:[%s6227_s29 + $0x17f0] sm:$0xff] }
 0x173   : > { %5463 = vmatprep.subr.mxu1 %v961_v28  ;;  %5431 = vmatpush3.msra.mxu0 %v912_v29  ;;  %v978_v28 = vld [vmem:[%s6227_s29 + $0x1668] sm:$0xff]  ;;  %v1011_v29 = vld [vmem:[%s6227_s29 + $0x1770] sm:$0xff] }
 0x174   : > { %5464 = vmatpush3.msra.mxu1 %v945_v30  ;;  %5432 = vmatprep.subr.mxu0 %v927_v31  ;;  %v993_v30 = vld [vmem:[%s6227_s29 + $0x16e0] sm:$0xff]  ;;  %v1026_v31 = vld [vmem:[%s6227_s29 + $0x17e8] sm:$0xff] }
 0x175   : > { %5465 = vmatprep.subr.mxu1 %v960_v32  ;;  %5433 = vmatpush3.msra.mxu0 %v911_v33  ;;  %v977_v32 = vld [vmem:[%s6227_s29 + $0x1660] sm:$0xff]  ;;  %v1010_v33 = vld [vmem:[%s6227_s29 + $0x1768] sm:$0xff] }
 0x176   : > { %5466 = vmatpush3.msra.mxu1 %v944_v34  ;;  %5434 = vmatprep.subr.mxu0 %v926_v35  ;;  %v992_v34 = vld [vmem:[%s6227_s29 + $0x16d8] sm:$0xff]  ;;  %v1025_v35 = vld [vmem:[%s6227_s29 + $0x17e0] sm:$0xff] }
 0x177   : > { %5467 = vmatprep.subr.mxu1 %v959_v36  ;;  %5435 = vmatpush3.msra.mxu0 %v910_v37  ;;  %v976_v36 = vld [vmem:[%s6227_s29 + $0x1658] sm:$0xff]  ;;  %v1009_v37 = vld [vmem:[%s6227_s29 + $0x1760] sm:$0xff] }
 0x178   : > { %5468 = vmatpush3.msra.mxu1 %v943_v38  ;;  %5436 = vmatprep.subr.mxu0 %v925_v39  ;;  %v991_v38 = vld [vmem:[%s6227_s29 + $0x16d0] sm:$0xff]  ;;  %v1024_v39 = vld [vmem:[%s6227_s29 + $0x17d8] sm:$0xff] }
 0x179   : > { %5469 = vmatprep.subr.mxu1 %v958_v40  ;;  %5437 = vmatpush3.msra.mxu0 %v909_v41  ;;  %v975_v40 = vld [vmem:[%s6227_s29 + $0x1650] sm:$0xff]  ;;  %v1008_v41 = vld [vmem:[%s6227_s29 + $0x1758] sm:$0xff] }
 0x17a   : > { %5470 = vmatpush3.msra.mxu1 %v942_v42  ;;  %5438 = vmatprep.subr.mxu0 %v924_v43  ;;  %v990_v42 = vld [vmem:[%s6227_s29 + $0x16c8] sm:$0xff]  ;;  %v1023_v43 = vld [vmem:[%s6227_s29 + $0x17d0] sm:$0xff] }
 0x17b   : > { %5471 = vmatprep.subr.mxu1 %v957_v44  ;;  %5439 = vmatpush3.msra.mxu0 %v908_v45  ;;  %v974_v44 = vld [vmem:[%s6227_s29 + $0x1648] sm:$0xff]  ;;  %v1007_v45 = vld [vmem:[%s6227_s29 + $0x1750] sm:$0xff] }
 0x17c   : > { %5472 = vmatpush3.msra.mxu1 %v941_v46  ;;  %5440 = vmatprep.subr.mxu0 %v923_v47  ;;  %v989_v46 = vld [vmem:[%s6227_s29 + $0x16c0] sm:$0xff]  ;;  %v1022_v47 = vld [vmem:[%s6227_s29 + $0x17c8] sm:$0xff] }
 0x17d   : > { %5473 = vmatprep.subr.mxu1 %v956_v48  ;;  %5441 = vmatpush3.msra.mxu0 %v907_v49  ;;  %v973_v48 = vld [vmem:[%s6227_s29 + $0x1640] sm:$0xff]  ;;  %v1006_v49 = vld [vmem:[%s6227_s29 + $0x1748] sm:$0xff] }
 0x17e   : > { %5474 = vmatpush3.msra.mxu1 %v940_v50  ;;  %5442 = vmatprep.subr.mxu0 %v922_v51  ;;  %v988_v50 = vld [vmem:[%s6227_s29 + $0x16b8] sm:$0xff]  ;;  %v1021_v51 = vld [vmem:[%s6227_s29 + $0x17c0] sm:$0xff] }
 0x17f   : > { %5475 = vmatprep.subr.mxu1 %v955_v53  ;;  %5443 = vmatpush3.msra.mxu0 %v906_v54  ;;  %v972_v53 = vld [vmem:[%s6227_s29 + $0x1638] sm:$0xff]  ;;  %v1005_v54 = vld [vmem:[%s6227_s29 + $0x1740] sm:$0xff] }
 0x180   : > { %5476 = vmatpush3.msra.mxu1 %v939_v55  ;;  %5444 = vmatprep.subr.mxu0 %v921_v56  ;;  %v987_v55 = vld [vmem:[%s6227_s29 + $0x16b0] sm:$0xff]  ;;  %v1020_v56 = vld [vmem:[%s6227_s29 + $0x17b8] sm:$0xff] }
 0x181   : > { %5477 = vmatprep.subr.mxu1 %v954_v57  ;;  %5445 = vmatpush3.msra.mxu0 %v905_v59  ;;  %v971_v57 = vld [vmem:[%s6227_s29 + $0x1630] sm:$0xff]  ;;  %v986_v59 = vld [vmem:[%s6227_s29 + $0x16a8] sm:$0xff] }
 0x182   : > { %5478 = vmatpush3.msra.mxu1 %v938_v60  ;;  %5446 = vmatprep.subr.mxu0 %v920_v61  ;;  %v1019_v60 = vld [vmem:[%s6227_s29 + $0x17b0] sm:$0xff]  ;;  %v970_v61 = vld [vmem:[%s6227_s29 + $0x1628] sm:$0xff] }
 0x183   : > { %5479 = vmatprep.subr.mxu1 %v953_v62  ;;  %5447 = vmatpush3.msra.mxu0 %v904_v63  ;;  %v1003_v62 = vld [vmem:[%s6227_s29 + $0x1730] sm:$0xff]  ;;  %v985_v63 = vld [vmem:[%s6227_s29 + $0x16a0] sm:$0xff] }
 0x184   : > { %5480 = vmatpush3.msra.mxu1 %v937_v0  ;;  %5448 = vmatprep.subr.mxu0 %v919_v2  ;;  %v1018_v0 = vld [vmem:[%s6227_s29 + $0x17a8] sm:$0xff]  ;;  %v969_v2 = vld [vmem:[%s6227_s29 + $0x1620] sm:$0xff] }
 0x185   : > { %5481 = vmatprep.subr.mxu1 %v952_v3  ;;  %5449 = vmatpush3.msra.mxu0 %v903_v5  ;;  %v1002_v3 = vld [vmem:[%s6227_s29 + $0x1728] sm:$0xff]  ;;  %v1017_v5 = vld [vmem:[%s6227_s29 + $0x17a0] sm:$0xff] }
 0x186   : > { %5482 = vmatpush3.msra.mxu1 %v936_v6  ;;  %5450 = vmatprep.subr.mxu0 %v918_v7  ;;  %v968_v6 = vld [vmem:[%s6227_s29 + $0x1618] sm:$0xff]  ;;  %v1001_v7 = vld [vmem:[%s6227_s29 + $0x1720] sm:$0xff] }
 0x187   : > { %5483 = vmatprep.subr.mxu1 %v951_v8  ;;  %5451 = vmatpush3.msra.mxu0 %v902_v9  ;;  %v1667_v8 = vcombine.high %v253_v1, %v253_v1  ;;  %v983_v9 = vld [vmem:[%s6227_s29 + $0x1690] sm:$0xff] }
 0x188   : > { %5484 = vmatpush3.msra.mxu1 %v935_v10  ;;  %5452 = vmatprep.subr.mxu0 %v917_v12  ;;  %v1016_v10 = vld [vmem:[%s6227_s29 + $0x1798] sm:$0xff]  ;;  %v967_v12 = vld [vmem:[%s6227_s29 + $0x1610] sm:$0xff] }
 0x189   : > { %5485 = vmatprep.subr.mxu1 %v950_v13  ;;  %5453 = vmatpush3.msra.mxu0 %v901_v15  ;;  %v1000_v13 = vld [vmem:[%s6227_s29 + $0x1718] sm:$0xff]  ;;  %v1015_v15 = vld [vmem:[%s6227_s29 + $0x1790] sm:$0xff] }
 0x18a   : > { %3341 = vmatprep.mubr.f32.mxu0 %v1665_v14  ;;  %5486 = vmatpush3.msra.mxu1 %v934_v16  ;;  %v982_v14 = vld [vmem:[%s6227_s29 + $0x1688] sm:$0xff] }
 0x18b   : > { %3342 = vmatmul.mubr.f32.vlgmr.msra.gmra.mxu0 %v1657_v4  ;;  %5487 = vmatprep.subr.mxu1 %v949_v17  ;;  %v984_v4 = vld [vmem:[%s6227_s29 + $0x1698] sm:$0xff]  ;;  %v966_v16 = vld [vmem:[%s6227_s29 + $0x1608] sm:$0xff]  ;;  %v999_v17 = vld [vmem:[%s6227_s29 + $0x1710] sm:$0xff] }
 0x18c   : > { %5492 = vmatprep.subr.mxu0 %v996_v18  ;;  %5488 = vmatpush3.msra.mxu1 %v933_v20  ;;  %v1681_v18 = vrot.slane %v1667_v8, %v6276_v52  ;;  %v1014_v20 = vld [vmem:[%s6227_s29 + $0x1788] sm:$0xff]  ;;  %v254_v8 = vld [vmem:[%s6222_s25 + $0x60] sm:$0xff] }
 0x18d   : > { %3411 = vmatprep.mubr.f32.mxu1 %v1666_v19  ;;  %5493 = vmatpush3.msra.mxu0 %v980_v21  ;;  %v981_v19 = vld [vmem:[%s6227_s29 + $0x1680] sm:$0xff] }
 0x18e   : > { %3412 = vmatmul.mubr.f32.vlgmr.msra.gmra.mxu1 %v1664_v11  ;;  %5494 = vmatprep.subr.mxu0 %v995_v22  ;;  %v1674_v11 = vrot.slane %v253_v1, %v6276_v52  ;;  %v965_v22 = vld [vmem:[%s6227_s29 + $0x1600] sm:$0xff]  ;;  %v1068_v1 = vld [vmem:[%s6227_s29 + $0x1938] sm:$0xff] }
 0x18f   : > { %5527 = vmatprep.subr.mxu1 %v1028_v23  ;;  %5495 = vmatpush3.msra.mxu0 %v979_v24  ;;  %v998_v23 = vld [vmem:[%s6227_s29 + $0x1708] sm:$0xff]  ;;  %v1013_v24 = vld [vmem:[%s6227_s29 + $0x1780] sm:$0xff] }
 0x190   : > { %5528 = vmatpush3.msra.mxu1 %v1012_v25  ;;  %5496 = vmatprep.subr.mxu0 %v994_v26  ;;  %v1682_v21 = vcombine.high %v1674_v11, %v1674_v11  ;;  %v1060_v25 = vld [vmem:[%s6227_s29 + $0x18f8] sm:$0xff]  ;;  %v1683_v26 = vcombine.high %v1681_v18, %v1681_v18 }
 0x191   : > { %5529 = vmatprep.subr.mxu1 %v1027_v27  ;;  %5497 = vmatpush3.msra.mxu0 %v978_v28  ;;  %v997_v27 = vld [vmem:[%s6227_s29 + $0x1700] sm:$0xff]  ;;  %v1044_v28 = vld [vmem:[%s6227_s29 + $0x1878] sm:$0xff] }
 0x192   : > { %5530 = vmatpush3.msra.mxu1 %v1011_v29  ;;  %5498 = vmatprep.subr.mxu0 %v993_v30  ;;  %v1059_v29 = vld [vmem:[%s6227_s29 + $0x18f0] sm:$0xff]  ;;  %v1092_v30 = vld [vmem:[%s6227_s29 + $0x19f8] sm:$0xff] }
 0x193   : > { %5531 = vmatprep.subr.mxu1 %v1026_v31  ;;  %5499 = vmatpush3.msra.mxu0 %v977_v32  ;;  %v1043_v31 = vld [vmem:[%s6227_s29 + $0x1870] sm:$0xff]  ;;  %v1076_v32 = vld [vmem:[%s6227_s29 + $0x1978] sm:$0xff] }
 0x194   : > { %5532 = vmatpush3.msra.mxu1 %v1010_v33  ;;  %5500 = vmatprep.subr.mxu0 %v992_v34  ;;  %v1058_v33 = vld [vmem:[%s6227_s29 + $0x18e8] sm:$0xff]  ;;  %v1091_v34 = vld [vmem:[%s6227_s29 + $0x19f0] sm:$0xff] }
 0x195   : > { %5533 = vmatprep.subr.mxu1 %v1025_v35  ;;  %5501 = vmatpush3.msra.mxu0 %v976_v36  ;;  %v1042_v35 = vld [vmem:[%s6227_s29 + $0x1868] sm:$0xff]  ;;  %v1075_v36 = vld [vmem:[%s6227_s29 + $0x1970] sm:$0xff] }
 0x196   : > { %5534 = vmatpush3.msra.mxu1 %v1009_v37  ;;  %5502 = vmatprep.subr.mxu0 %v991_v38  ;;  %v1057_v37 = vld [vmem:[%s6227_s29 + $0x18e0] sm:$0xff]  ;;  %v1090_v38 = vld [vmem:[%s6227_s29 + $0x19e8] sm:$0xff] }
 0x197   : > { %5535 = vmatprep.subr.mxu1 %v1024_v39  ;;  %5503 = vmatpush3.msra.mxu0 %v975_v40  ;;  %v1041_v39 = vld [vmem:[%s6227_s29 + $0x1860] sm:$0xff]  ;;  %v1074_v40 = vld [vmem:[%s6227_s29 + $0x1968] sm:$0xff] }
 0x198   : > { %5536 = vmatpush3.msra.mxu1 %v1008_v41  ;;  %5504 = vmatprep.subr.mxu0 %v990_v42  ;;  %v1056_v41 = vld [vmem:[%s6227_s29 + $0x18d8] sm:$0xff]  ;;  %v1089_v42 = vld [vmem:[%s6227_s29 + $0x19e0] sm:$0xff] }
 0x199   : > { %5537 = vmatprep.subr.mxu1 %v1023_v43  ;;  %5505 = vmatpush3.msra.mxu0 %v974_v44  ;;  %v1040_v43 = vld [vmem:[%s6227_s29 + $0x1858] sm:$0xff]  ;;  %v1073_v44 = vld [vmem:[%s6227_s29 + $0x1960] sm:$0xff] }
 0x19a   : > { %5538 = vmatpush3.msra.mxu1 %v1007_v45  ;;  %5506 = vmatprep.subr.mxu0 %v989_v46  ;;  %v1055_v45 = vld [vmem:[%s6227_s29 + $0x18d0] sm:$0xff]  ;;  %v1088_v46 = vld [vmem:[%s6227_s29 + $0x19d8] sm:$0xff] }
 0x19b   : > { %5539 = vmatprep.subr.mxu1 %v1022_v47  ;;  %5507 = vmatpush3.msra.mxu0 %v973_v48  ;;  %v1039_v47 = vld [vmem:[%s6227_s29 + $0x1850] sm:$0xff]  ;;  %v1072_v48 = vld [vmem:[%s6227_s29 + $0x1958] sm:$0xff] }
 0x19c   : > { %5540 = vmatpush3.msra.mxu1 %v1006_v49  ;;  %5508 = vmatprep.subr.mxu0 %v988_v50  ;;  %v1054_v49 = vld [vmem:[%s6227_s29 + $0x18c8] sm:$0xff]  ;;  %v1087_v50 = vld [vmem:[%s6227_s29 + $0x19d0] sm:$0xff] }
 0x19d   : > { %5541 = vmatprep.subr.mxu1 %v1021_v51  ;;  %5509 = vmatpush3.msra.mxu0 %v972_v53  ;;  %v1038_v51 = vld [vmem:[%s6227_s29 + $0x1848] sm:$0xff]  ;;  %v1071_v53 = vld [vmem:[%s6227_s29 + $0x1950] sm:$0xff] }
 0x19e   : > { %5542 = vmatpush3.msra.mxu1 %v1005_v54  ;;  %5510 = vmatprep.subr.mxu0 %v987_v55  ;;  %v1053_v54 = vld [vmem:[%s6227_s29 + $0x18c0] sm:$0xff]  ;;  %v1086_v55 = vld [vmem:[%s6227_s29 + $0x19c8] sm:$0xff] }
 0x19f   : > { %5543 = vmatprep.subr.mxu1 %v1020_v56  ;;  %5511 = vmatpush3.msra.mxu0 %v971_v57  ;;  %v1037_v56 = vld [vmem:[%s6227_s29 + $0x1840] sm:$0xff]  ;;  %v1070_v57 = vld [vmem:[%s6227_s29 + $0x1948] sm:$0xff] }
 0x1a0   : > { %5544 = vmatpush3.msra.mxu1 %v1004_v58  ;;  %5512 = vmatprep.subr.mxu0 %v986_v59  ;;  %v1052_v58 = vld [vmem:[%s6227_s29 + $0x18b8] sm:$0xff]  ;;  %v1085_v59 = vld [vmem:[%s6227_s29 + $0x19c0] sm:$0xff] }
 0x1a1   : > { %5545 = vmatprep.subr.mxu1 %v1019_v60  ;;  %5513 = vmatpush3.msra.mxu0 %v970_v61  ;;  %v1036_v60 = vld [vmem:[%s6227_s29 + $0x1838] sm:$0xff]  ;;  %v1069_v61 = vld [vmem:[%s6227_s29 + $0x1940] sm:$0xff] }
 0x1a2   : > { %5546 = vmatpush3.msra.mxu1 %v1003_v62  ;;  %5514 = vmatprep.subr.mxu0 %v985_v63  ;;  %v1051_v62 = vld [vmem:[%s6227_s29 + $0x18b0] sm:$0xff]  ;;  %v1084_v63 = vld [vmem:[%s6227_s29 + $0x19b8] sm:$0xff] }
 0x1a3   : > { %5547 = vmatprep.subr.mxu1 %v1018_v0  ;;  %5515 = vmatpush3.msra.mxu0 %v969_v2  ;;  %v1035_v0 = vld [vmem:[%s6227_s29 + $0x1830] sm:$0xff]  ;;  %v1050_v2 = vld [vmem:[%s6227_s29 + $0x18a8] sm:$0xff] }
 0x1a4   : > { %5548 = vmatpush3.msra.mxu1 %v1002_v3  ;;  %5516 = vmatprep.subr.mxu0 %v984_v4  ;;  %v1083_v3 = vld [vmem:[%s6227_s29 + $0x19b0] sm:$0xff]  ;;  %v1034_v4 = vld [vmem:[%s6227_s29 + $0x1828] sm:$0xff] }
 0x1a5   : > { %5549 = vmatprep.subr.mxu1 %v1017_v5  ;;  %5517 = vmatpush3.msra.mxu0 %v968_v6  ;;  %v1067_v5 = vld [vmem:[%s6227_s29 + $0x1930] sm:$0xff]  ;;  %v1049_v6 = vld [vmem:[%s6227_s29 + $0x18a0] sm:$0xff] }
 0x1a6   : > { %5550 = vmatpush3.msra.mxu1 %v1001_v7  ;;  %5518 = vmatprep.subr.mxu0 %v983_v9  ;;  %v1082_v7 = vld [vmem:[%s6227_s29 + $0x19a8] sm:$0xff]  ;;  %v1033_v9 = vld [vmem:[%s6227_s29 + $0x1820] sm:$0xff] }
 0x1a7   : > { %5551 = vmatprep.subr.mxu1 %v1016_v10  ;;  %5519 = vmatpush3.msra.mxu0 %v967_v12  ;;  %v1066_v10 = vld [vmem:[%s6227_s29 + $0x1928] sm:$0xff]  ;;  %v1081_v12 = vld [vmem:[%s6227_s29 + $0x19a0] sm:$0xff] }
 0x1a8   : > { %5552 = vmatpush3.msra.mxu1 %v1000_v13  ;;  %5520 = vmatprep.subr.mxu0 %v982_v14  ;;  %v1032_v13 = vld [vmem:[%s6227_s29 + $0x1818] sm:$0xff]  ;;  %v1065_v14 = vld [vmem:[%s6227_s29 + $0x1920] sm:$0xff] }
 0x1a9   : > { %5553 = vmatprep.subr.mxu1 %v1015_v15  ;;  %5521 = vmatpush3.msra.mxu0 %v966_v16  ;;  %v1684_v15 = vcombine.high %v254_v8, %v254_v8  ;;  %v1047_v16 = vld [vmem:[%s6227_s29 + $0x1890] sm:$0xff] }
 0x1aa   : > { %5554 = vmatpush3.msra.mxu1 %v999_v17  ;;  %5522 = vmatprep.subr.mxu0 %v981_v19  ;;  %v1080_v17 = vld [vmem:[%s6227_s29 + $0x1998] sm:$0xff]  ;;  %v1031_v19 = vld [vmem:[%s6227_s29 + $0x1810] sm:$0xff] }
 0x1ab   : > { %5555 = vmatprep.subr.mxu1 %v1014_v20  ;;  %5523 = vmatpush3.msra.mxu0 %v965_v22  ;;  %v1064_v20 = vld [vmem:[%s6227_s29 + $0x1918] sm:$0xff]  ;;  %v1079_v22 = vld [vmem:[%s6227_s29 + $0x1990] sm:$0xff] }
 0x1ac   : > { %3481 = vmatprep.mubr.f32.mxu0 %v1682_v21  ;;  %5556 = vmatpush3.msra.mxu1 %v998_v23  ;;  %v1046_v21 = vld [vmem:[%s6227_s29 + $0x1888] sm:$0xff] }
 0x1ad   : > { %3482 = vmatmul.mubr.f32.vlgmr.msra.gmra.mxu0 %v1674_v11  ;;  %5557 = vmatprep.subr.mxu1 %v1013_v24  ;;  %v1048_v11 = vld [vmem:[%s6227_s29 + $0x1898] sm:$0xff]  ;;  %v1030_v23 = vld [vmem:[%s6227_s29 + $0x1808] sm:$0xff]  ;;  %v1063_v24 = vld [vmem:[%s6227_s29 + $0x1910] sm:$0xff] }
 0x1ae   : > { %5562 = vmatprep.subr.mxu0 %v1060_v25  ;;  %5558 = vmatpush3.msra.mxu1 %v997_v27  ;;  %v1698_v25 = vrot.slane %v1684_v15, %v6276_v52  ;;  %v1078_v27 = vld [vmem:[%s6227_s29 + $0x1988] sm:$0xff] }
 0x1af   : > { %3551 = vmatprep.mubr.f32.mxu1 %v1683_v26  ;;  %5563 = vmatpush3.msra.mxu0 %v1044_v28  ;;  %v1045_v26 = vld [vmem:[%s6227_s29 + $0x1880] sm:$0xff]  ;;  %v255_v15 = vld [vmem:[%s6222_s25 + $0x68] sm:$0xff] }
 0x1b0   : > { %3552 = vmatmul.mubr.f32.vlgmr.msra.gmra.mxu1 %v1681_v18  ;;  %5564 = vmatprep.subr.mxu0 %v1059_v29  ;;  %v1691_v18 = vrot.slane %v254_v8, %v6276_v52  ;;  %v1029_v29 = vld [vmem:[%s6227_s29 + $0x1800] sm:$0xff]  ;;  %v1132_v8 = vld [vmem:[%s6227_s29 + $0x1b38] sm:$0xff] }
 0x1b1   : > { %5597 = vmatprep.subr.mxu1 %v1092_v30  ;;  %5565 = vmatpush3.msra.mxu0 %v1043_v31  ;;  %v1062_v30 = vld [vmem:[%s6227_s29 + $0x1908] sm:$0xff]  ;;  %v1077_v31 = vld [vmem:[%s6227_s29 + $0x1980] sm:$0xff] }
 0x1b2   : > { %5598 = vmatpush3.msra.mxu1 %v1076_v32  ;;  %5566 = vmatprep.subr.mxu0 %v1058_v33  ;;  %v1699_v28 = vcombine.high %v1691_v18, %v1691_v18  ;;  %v1124_v32 = vld [vmem:[%s6227_s29 + $0x1af8] sm:$0xff]  ;;  %v1700_v33 = vcombine.high %v1698_v25, %v1698_v25 }
 0x1b3   : > { %5599 = vmatprep.subr.mxu1 %v1091_v34  ;;  %5567 = vmatpush3.msra.mxu0 %v1042_v35  ;;  %v1061_v34 = vld [vmem:[%s6227_s29 + $0x1900] sm:$0xff]  ;;  %v1108_v35 = vld [vmem:[%s6227_s29 + $0x1a78] sm:$0xff] }
 0x1b4   : > { %5600 = vmatpush3.msra.mxu1 %v1075_v36  ;;  %5568 = vmatprep.subr.mxu0 %v1057_v37  ;;  %v1123_v36 = vld [vmem:[%s6227_s29 + $0x1af0] sm:$0xff]  ;;  %v1156_v37 = vld [vmem:[%s6227_s29 + $0x1bf8] sm:$0xff] }
 0x1b5   : > { %5601 = vmatprep.subr.mxu1 %v1090_v38  ;;  %5569 = vmatpush3.msra.mxu0 %v1041_v39  ;;  %v1107_v38 = vld [vmem:[%s6227_s29 + $0x1a70] sm:$0xff]  ;;  %v1140_v39 = vld [vmem:[%s6227_s29 + $0x1b78] sm:$0xff] }
 0x1b6   : > { %5602 = vmatpush3.msra.mxu1 %v1074_v40  ;;  %5570 = vmatprep.subr.mxu0 %v1056_v41  ;;  %v1122_v40 = vld [vmem:[%s6227_s29 + $0x1ae8] sm:$0xff]  ;;  %v1155_v41 = vld [vmem:[%s6227_s29 + $0x1bf0] sm:$0xff] }
 0x1b7   : > { %5603 = vmatprep.subr.mxu1 %v1089_v42  ;;  %5571 = vmatpush3.msra.mxu0 %v1040_v43  ;;  %v1106_v42 = vld [vmem:[%s6227_s29 + $0x1a68] sm:$0xff]  ;;  %v1139_v43 = vld [vmem:[%s6227_s29 + $0x1b70] sm:$0xff] }
 0x1b8   : > { %5604 = vmatpush3.msra.mxu1 %v1073_v44  ;;  %5572 = vmatprep.subr.mxu0 %v1055_v45  ;;  %v1121_v44 = vld [vmem:[%s6227_s29 + $0x1ae0] sm:$0xff]  ;;  %v1154_v45 = vld [vmem:[%s6227_s29 + $0x1be8] sm:$0xff] }
 0x1b9   : > { %5605 = vmatprep.subr.mxu1 %v1088_v46  ;;  %5573 = vmatpush3.msra.mxu0 %v1039_v47  ;;  %v1105_v46 = vld [vmem:[%s6227_s29 + $0x1a60] sm:$0xff]  ;;  %v1138_v47 = vld [vmem:[%s6227_s29 + $0x1b68] sm:$0xff] }
 0x1ba   : > { %5606 = vmatpush3.msra.mxu1 %v1072_v48  ;;  %5574 = vmatprep.subr.mxu0 %v1054_v49  ;;  %v1120_v48 = vld [vmem:[%s6227_s29 + $0x1ad8] sm:$0xff]  ;;  %v1153_v49 = vld [vmem:[%s6227_s29 + $0x1be0] sm:$0xff] }
 0x1bb   : > { %5607 = vmatprep.subr.mxu1 %v1087_v50  ;;  %5575 = vmatpush3.msra.mxu0 %v1038_v51  ;;  %v1104_v50 = vld [vmem:[%s6227_s29 + $0x1a58] sm:$0xff]  ;;  %v1137_v51 = vld [vmem:[%s6227_s29 + $0x1b60] sm:$0xff] }
 0x1bc   : > { %5608 = vmatpush3.msra.mxu1 %v1071_v53  ;;  %5576 = vmatprep.subr.mxu0 %v1053_v54  ;;  %v1119_v53 = vld [vmem:[%s6227_s29 + $0x1ad0] sm:$0xff]  ;;  %v1152_v54 = vld [vmem:[%s6227_s29 + $0x1bd8] sm:$0xff] }
 0x1bd   : > { %5609 = vmatprep.subr.mxu1 %v1086_v55  ;;  %5577 = vmatpush3.msra.mxu0 %v1037_v56  ;;  %v1103_v55 = vld [vmem:[%s6227_s29 + $0x1a50] sm:$0xff]  ;;  %v1136_v56 = vld [vmem:[%s6227_s29 + $0x1b58] sm:$0xff] }
 0x1be   : > { %5610 = vmatpush3.msra.mxu1 %v1070_v57  ;;  %5578 = vmatprep.subr.mxu0 %v1052_v58  ;;  %v1118_v57 = vld [vmem:[%s6227_s29 + $0x1ac8] sm:$0xff]  ;;  %v1151_v58 = vld [vmem:[%s6227_s29 + $0x1bd0] sm:$0xff] }
 0x1bf   : > { %5611 = vmatprep.subr.mxu1 %v1085_v59  ;;  %5579 = vmatpush3.msra.mxu0 %v1036_v60  ;;  %v1102_v59 = vld [vmem:[%s6227_s29 + $0x1a48] sm:$0xff]  ;;  %v1135_v60 = vld [vmem:[%s6227_s29 + $0x1b50] sm:$0xff] }
 0x1c0   : > { %5612 = vmatpush3.msra.mxu1 %v1069_v61  ;;  %5580 = vmatprep.subr.mxu0 %v1051_v62  ;;  %v1117_v61 = vld [vmem:[%s6227_s29 + $0x1ac0] sm:$0xff]  ;;  %v1150_v62 = vld [vmem:[%s6227_s29 + $0x1bc8] sm:$0xff] }
 0x1c1   : > { %5613 = vmatprep.subr.mxu1 %v1084_v63  ;;  %5581 = vmatpush3.msra.mxu0 %v1035_v0  ;;  %v1101_v63 = vld [vmem:[%s6227_s29 + $0x1a40] sm:$0xff]  ;;  %v1134_v0 = vld [vmem:[%s6227_s29 + $0x1b48] sm:$0xff] }
 0x1c2   : > { %5614 = vmatpush3.msra.mxu1 %v1068_v1  ;;  %5582 = vmatprep.subr.mxu0 %v1050_v2  ;;  %v1116_v1 = vld [vmem:[%s6227_s29 + $0x1ab8] sm:$0xff]  ;;  %v1149_v2 = vld [vmem:[%s6227_s29 + $0x1bc0] sm:$0xff] }
 0x1c3   : > { %5615 = vmatprep.subr.mxu1 %v1083_v3  ;;  %5583 = vmatpush3.msra.mxu0 %v1034_v4  ;;  %v1100_v3 = vld [vmem:[%s6227_s29 + $0x1a38] sm:$0xff]  ;;  %v1133_v4 = vld [vmem:[%s6227_s29 + $0x1b40] sm:$0xff] }
 0x1c4   : > { %5616 = vmatpush3.msra.mxu1 %v1067_v5  ;;  %5584 = vmatprep.subr.mxu0 %v1049_v6  ;;  %v1115_v5 = vld [vmem:[%s6227_s29 + $0x1ab0] sm:$0xff]  ;;  %v1148_v6 = vld [vmem:[%s6227_s29 + $0x1bb8] sm:$0xff] }
 0x1c5   : > { %5617 = vmatprep.subr.mxu1 %v1082_v7  ;;  %5585 = vmatpush3.msra.mxu0 %v1033_v9  ;;  %v1099_v7 = vld [vmem:[%s6227_s29 + $0x1a30] sm:$0xff]  ;;  %v1114_v9 = vld [vmem:[%s6227_s29 + $0x1aa8] sm:$0xff] }
 0x1c6   : > { %5618 = vmatpush3.msra.mxu1 %v1066_v10  ;;  %5586 = vmatprep.subr.mxu0 %v1048_v11  ;;  %v1147_v10 = vld [vmem:[%s6227_s29 + $0x1bb0] sm:$0xff]  ;;  %v1098_v11 = vld [vmem:[%s6227_s29 + $0x1a28] sm:$0xff] }
 0x1c7   : > { %5619 = vmatprep.subr.mxu1 %v1081_v12  ;;  %5587 = vmatpush3.msra.mxu0 %v1032_v13  ;;  %v1131_v12 = vld [vmem:[%s6227_s29 + $0x1b30] sm:$0xff]  ;;  %v1113_v13 = vld [vmem:[%s6227_s29 + $0x1aa0] sm:$0xff] }
 0x1c8   : > { %5620 = vmatpush3.msra.mxu1 %v1065_v14  ;;  %5588 = vmatprep.subr.mxu0 %v1047_v16  ;;  %v1146_v14 = vld [vmem:[%s6227_s29 + $0x1ba8] sm:$0xff]  ;;  %v1097_v16 = vld [vmem:[%s6227_s29 + $0x1a20] sm:$0xff] }
 0x1c9   : > { %5621 = vmatprep.subr.mxu1 %v1080_v17  ;;  %5589 = vmatpush3.msra.mxu0 %v1031_v19  ;;  %v1130_v17 = vld [vmem:[%s6227_s29 + $0x1b28] sm:$0xff]  ;;  %v1145_v19 = vld [vmem:[%s6227_s29 + $0x1ba0] sm:$0xff] }
 0x1ca   : > { %5622 = vmatpush3.msra.mxu1 %v1064_v20  ;;  %5590 = vmatprep.subr.mxu0 %v1046_v21  ;;  %v1096_v20 = vld [vmem:[%s6227_s29 + $0x1a18] sm:$0xff]  ;;  %v1129_v21 = vld [vmem:[%s6227_s29 + $0x1b20] sm:$0xff] }
 0x1cb   : > { %5623 = vmatprep.subr.mxu1 %v1079_v22  ;;  %5591 = vmatpush3.msra.mxu0 %v1030_v23  ;;  %v1701_v22 = vcombine.high %v255_v15, %v255_v15  ;;  %v1111_v23 = vld [vmem:[%s6227_s29 + $0x1a90] sm:$0xff] }
 0x1cc   : > { %5624 = vmatpush3.msra.mxu1 %v1063_v24  ;;  %5592 = vmatprep.subr.mxu0 %v1045_v26  ;;  %v1144_v24 = vld [vmem:[%s6227_s29 + $0x1b98] sm:$0xff]  ;;  %v1095_v26 = vld [vmem:[%s6227_s29 + $0x1a10] sm:$0xff] }
 0x1cd   : > { %5625 = vmatprep.subr.mxu1 %v1078_v27  ;;  %5593 = vmatpush3.msra.mxu0 %v1029_v29  ;;  %v1128_v27 = vld [vmem:[%s6227_s29 + $0x1b18] sm:$0xff]  ;;  %v1143_v29 = vld [vmem:[%s6227_s29 + $0x1b90] sm:$0xff] }
 0x1ce   : > { %3621 = vmatprep.mubr.f32.mxu0 %v1699_v28  ;;  %5626 = vmatpush3.msra.mxu1 %v1062_v30  ;;  %v1110_v28 = vld [vmem:[%s6227_s29 + $0x1a88] sm:$0xff] }
 0x1cf   : > { %3622 = vmatmul.mubr.f32.vlgmr.msra.gmra.mxu0 %v1691_v18  ;;  %5627 = vmatprep.subr.mxu1 %v1077_v31  ;;  %v1112_v18 = vld [vmem:[%s6227_s29 + $0x1a98] sm:$0xff]  ;;  %v1094_v30 = vld [vmem:[%s6227_s29 + $0x1a08] sm:$0xff]  ;;  %v1127_v31 = vld [vmem:[%s6227_s29 + $0x1b10] sm:$0xff] }
 0x1d0   : > { %5632 = vmatprep.subr.mxu0 %v1124_v32  ;;  %5628 = vmatpush3.msra.mxu1 %v1061_v34  ;;  %v1715_v32 = vrot.slane %v1701_v22, %v6276_v52  ;;  %v1142_v34 = vld [vmem:[%s6227_s29 + $0x1b88] sm:$0xff]  ;;  %v256_v22 = vld [vmem:[%s6222_s25 + $0x70] sm:$0xff] }
 0x1d1   : > { %3691 = vmatprep.mubr.f32.mxu1 %v1700_v33  ;;  %5633 = vmatpush3.msra.mxu0 %v1108_v35  ;;  %v1109_v33 = vld [vmem:[%s6227_s29 + $0x1a80] sm:$0xff] }
 0x1d2   : > { %3692 = vmatmul.mubr.f32.vlgmr.msra.gmra.mxu1 %v1698_v25  ;;  %5634 = vmatprep.subr.mxu0 %v1123_v36  ;;  %v1708_v25 = vrot.slane %v255_v15, %v6276_v52  ;;  %v1093_v36 = vld [vmem:[%s6227_s29 + $0x1a00] sm:$0xff]  ;;  %v1196_v15 = vld [vmem:[%s6227_s29 + $0x1d38] sm:$0xff] }
 0x1d3   : > { %5667 = vmatprep.subr.mxu1 %v1156_v37  ;;  %5635 = vmatpush3.msra.mxu0 %v1107_v38  ;;  %v1126_v37 = vld [vmem:[%s6227_s29 + $0x1b08] sm:$0xff]  ;;  %v1141_v38 = vld [vmem:[%s6227_s29 + $0x1b80] sm:$0xff] }
 0x1d4   : > { %5668 = vmatpush3.msra.mxu1 %v1140_v39  ;;  %5636 = vmatprep.subr.mxu0 %v1122_v40  ;;  %v1716_v35 = vcombine.high %v1708_v25, %v1708_v25  ;;  %v1188_v39 = vld [vmem:[%s6227_s29 + $0x1cf8] sm:$0xff]  ;;  %v1717_v40 = vcombine.high %v1715_v32, %v1715_v32 }
 0x1d5   : > { %5669 = vmatprep.subr.mxu1 %v1155_v41  ;;  %5637 = vmatpush3.msra.mxu0 %v1106_v42  ;;  %v1125_v41 = vld [vmem:[%s6227_s29 + $0x1b00] sm:$0xff]  ;;  %v1172_v42 = vld [vmem:[%s6227_s29 + $0x1c78] sm:$0xff] }
 0x1d6   : > { %5670 = vmatpush3.msra.mxu1 %v1139_v43  ;;  %5638 = vmatprep.subr.mxu0 %v1121_v44  ;;  %v1187_v43 = vld [vmem:[%s6227_s29 + $0x1cf0] sm:$0xff]  ;;  %v1220_v44 = vld [vmem:[%s6227_s29 + $0x1df8] sm:$0xff] }
 0x1d7   : > { %5671 = vmatprep.subr.mxu1 %v1154_v45  ;;  %5639 = vmatpush3.msra.mxu0 %v1105_v46  ;;  %v1171_v45 = vld [vmem:[%s6227_s29 + $0x1c70] sm:$0xff]  ;;  %v1204_v46 = vld [vmem:[%s6227_s29 + $0x1d78] sm:$0xff] }
 0x1d8   : > { %5672 = vmatpush3.msra.mxu1 %v1138_v47  ;;  %5640 = vmatprep.subr.mxu0 %v1120_v48  ;;  %v1186_v47 = vld [vmem:[%s6227_s29 + $0x1ce8] sm:$0xff]  ;;  %v1219_v48 = vld [vmem:[%s6227_s29 + $0x1df0] sm:$0xff] }
 0x1d9   : > { %5673 = vmatprep.subr.mxu1 %v1153_v49  ;;  %5641 = vmatpush3.msra.mxu0 %v1104_v50  ;;  %v1170_v49 = vld [vmem:[%s6227_s29 + $0x1c68] sm:$0xff]  ;;  %v1203_v50 = vld [vmem:[%s6227_s29 + $0x1d70] sm:$0xff] }
 0x1da   : > { %5674 = vmatpush3.msra.mxu1 %v1137_v51  ;;  %5642 = vmatprep.subr.mxu0 %v1119_v53  ;;  %v1185_v51 = vld [vmem:[%s6227_s29 + $0x1ce0] sm:$0xff]  ;;  %v1218_v53 = vld [vmem:[%s6227_s29 + $0x1de8] sm:$0xff] }
 0x1db   : > { %5675 = vmatprep.subr.mxu1 %v1152_v54  ;;  %5643 = vmatpush3.msra.mxu0 %v1103_v55  ;;  %v1169_v54 = vld [vmem:[%s6227_s29 + $0x1c60] sm:$0xff]  ;;  %v1202_v55 = vld [vmem:[%s6227_s29 + $0x1d68] sm:$0xff] }
 0x1dc   : > { %5676 = vmatpush3.msra.mxu1 %v1136_v56  ;;  %5644 = vmatprep.subr.mxu0 %v1118_v57  ;;  %v1184_v56 = vld [vmem:[%s6227_s29 + $0x1cd8] sm:$0xff]  ;;  %v1217_v57 = vld [vmem:[%s6227_s29 + $0x1de0] sm:$0xff] }
 0x1dd   : > { %5677 = vmatprep.subr.mxu1 %v1151_v58  ;;  %5645 = vmatpush3.msra.mxu0 %v1102_v59  ;;  %v1168_v58 = vld [vmem:[%s6227_s29 + $0x1c58] sm:$0xff]  ;;  %v1201_v59 = vld [vmem:[%s6227_s29 + $0x1d60] sm:$0xff] }
 0x1de   : > { %5678 = vmatpush3.msra.mxu1 %v1135_v60  ;;  %5646 = vmatprep.subr.mxu0 %v1117_v61  ;;  %v1183_v60 = vld [vmem:[%s6227_s29 + $0x1cd0] sm:$0xff]  ;;  %v1216_v61 = vld [vmem:[%s6227_s29 + $0x1dd8] sm:$0xff] }
 0x1df   : > { %5679 = vmatprep.subr.mxu1 %v1150_v62  ;;  %5647 = vmatpush3.msra.mxu0 %v1101_v63  ;;  %v1167_v62 = vld [vmem:[%s6227_s29 + $0x1c50] sm:$0xff]  ;;  %v1200_v63 = vld [vmem:[%s6227_s29 + $0x1d58] sm:$0xff] }
 0x1e0   : > { %5680 = vmatpush3.msra.mxu1 %v1134_v0  ;;  %5648 = vmatprep.subr.mxu0 %v1116_v1  ;;  %v1182_v0 = vld [vmem:[%s6227_s29 + $0x1cc8] sm:$0xff]  ;;  %v1215_v1 = vld [vmem:[%s6227_s29 + $0x1dd0] sm:$0xff] }
 0x1e1   : > { %5681 = vmatprep.subr.mxu1 %v1149_v2  ;;  %5649 = vmatpush3.msra.mxu0 %v1100_v3  ;;  %v1166_v2 = vld [vmem:[%s6227_s29 + $0x1c48] sm:$0xff]  ;;  %v1199_v3 = vld [vmem:[%s6227_s29 + $0x1d50] sm:$0xff] }
 0x1e2   : > { %5682 = vmatpush3.msra.mxu1 %v1133_v4  ;;  %5650 = vmatprep.subr.mxu0 %v1115_v5  ;;  %v1181_v4 = vld [vmem:[%s6227_s29 + $0x1cc0] sm:$0xff]  ;;  %v1214_v5 = vld [vmem:[%s6227_s29 + $0x1dc8] sm:$0xff] }
 0x1e3   : > { %5683 = vmatprep.subr.mxu1 %v1148_v6  ;;  %5651 = vmatpush3.msra.mxu0 %v1099_v7  ;;  %v1165_v6 = vld [vmem:[%s6227_s29 + $0x1c40] sm:$0xff]  ;;  %v1198_v7 = vld [vmem:[%s6227_s29 + $0x1d48] sm:$0xff] }
 0x1e4   : > { %5684 = vmatpush3.msra.mxu1 %v1132_v8  ;;  %5652 = vmatprep.subr.mxu0 %v1114_v9  ;;  %v1180_v8 = vld [vmem:[%s6227_s29 + $0x1cb8] sm:$0xff]  ;;  %v1213_v9 = vld [vmem:[%s6227_s29 + $0x1dc0] sm:$0xff] }
 0x1e5   : > { %5685 = vmatprep.subr.mxu1 %v1147_v10  ;;  %5653 = vmatpush3.msra.mxu0 %v1098_v11  ;;  %v1164_v10 = vld [vmem:[%s6227_s29 + $0x1c38] sm:$0xff]  ;;  %v1197_v11 = vld [vmem:[%s6227_s29 + $0x1d40] sm:$0xff] }
 0x1e6   : > { %5686 = vmatpush3.msra.mxu1 %v1131_v12  ;;  %5654 = vmatprep.subr.mxu0 %v1113_v13  ;;  %v1179_v12 = vld [vmem:[%s6227_s29 + $0x1cb0] sm:$0xff]  ;;  %v1212_v13 = vld [vmem:[%s6227_s29 + $0x1db8] sm:$0xff] }
 0x1e7   : > { %5687 = vmatprep.subr.mxu1 %v1146_v14  ;;  %5655 = vmatpush3.msra.mxu0 %v1097_v16  ;;  %v1163_v14 = vld [vmem:[%s6227_s29 + $0x1c30] sm:$0xff]  ;;  %v1178_v16 = vld [vmem:[%s6227_s29 + $0x1ca8] sm:$0xff] }
 0x1e8   : > { %5688 = vmatpush3.msra.mxu1 %v1130_v17  ;;  %5656 = vmatprep.subr.mxu0 %v1112_v18  ;;  %v1211_v17 = vld [vmem:[%s6227_s29 + $0x1db0] sm:$0xff]  ;;  %v1162_v18 = vld [vmem:[%s6227_s29 + $0x1c28] sm:$0xff] }
 0x1e9   : > { %5689 = vmatprep.subr.mxu1 %v1145_v19  ;;  %5657 = vmatpush3.msra.mxu0 %v1096_v20  ;;  %v1195_v19 = vld [vmem:[%s6227_s29 + $0x1d30] sm:$0xff]  ;;  %v1177_v20 = vld [vmem:[%s6227_s29 + $0x1ca0] sm:$0xff] }
 0x1ea   : > { %5690 = vmatpush3.msra.mxu1 %v1129_v21  ;;  %5658 = vmatprep.subr.mxu0 %v1111_v23  ;;  %v1210_v21 = vld [vmem:[%s6227_s29 + $0x1da8] sm:$0xff]  ;;  %v1161_v23 = vld [vmem:[%s6227_s29 + $0x1c20] sm:$0xff] }
 0x1eb   : > { %5691 = vmatprep.subr.mxu1 %v1144_v24  ;;  %5659 = vmatpush3.msra.mxu0 %v1095_v26  ;;  %v1194_v24 = vld [vmem:[%s6227_s29 + $0x1d28] sm:$0xff]  ;;  %v1209_v26 = vld [vmem:[%s6227_s29 + $0x1da0] sm:$0xff] }
 0x1ec   : > { %5692 = vmatpush3.msra.mxu1 %v1128_v27  ;;  %5660 = vmatprep.subr.mxu0 %v1110_v28  ;;  %v1160_v27 = vld [vmem:[%s6227_s29 + $0x1c18] sm:$0xff]  ;;  %v1193_v28 = vld [vmem:[%s6227_s29 + $0x1d20] sm:$0xff] }
 0x1ed   : > { %5693 = vmatprep.subr.mxu1 %v1143_v29  ;;  %5661 = vmatpush3.msra.mxu0 %v1094_v30  ;;  %v1718_v29 = vcombine.high %v256_v22, %v256_v22  ;;  %v1175_v30 = vld [vmem:[%s6227_s29 + $0x1c90] sm:$0xff] }
 0x1ee   : > { %5694 = vmatpush3.msra.mxu1 %v1127_v31  ;;  %5662 = vmatprep.subr.mxu0 %v1109_v33  ;;  %v1208_v31 = vld [vmem:[%s6227_s29 + $0x1d98] sm:$0xff]  ;;  %v1159_v33 = vld [vmem:[%s6227_s29 + $0x1c10] sm:$0xff] }
 0x1ef   : > { %5695 = vmatprep.subr.mxu1 %v1142_v34  ;;  %5663 = vmatpush3.msra.mxu0 %v1093_v36  ;;  %v1192_v34 = vld [vmem:[%s6227_s29 + $0x1d18] sm:$0xff]  ;;  %v1207_v36 = vld [vmem:[%s6227_s29 + $0x1d90] sm:$0xff] }
 0x1f0   : > { %3761 = vmatprep.mubr.f32.mxu0 %v1716_v35  ;;  %5696 = vmatpush3.msra.mxu1 %v1126_v37  ;;  %v1174_v35 = vld [vmem:[%s6227_s29 + $0x1c88] sm:$0xff] }
 0x1f1   : > { %3762 = vmatmul.mubr.f32.vlgmr.msra.gmra.mxu0 %v1708_v25  ;;  %5697 = vmatprep.subr.mxu1 %v1141_v38  ;;  %v1176_v25 = vld [vmem:[%s6227_s29 + $0x1c98] sm:$0xff]  ;;  %v1158_v37 = vld [vmem:[%s6227_s29 + $0x1c08] sm:$0xff]  ;;  %v1191_v38 = vld [vmem:[%s6227_s29 + $0x1d10] sm:$0xff] }
 0x1f2   : > { %5702 = vmatprep.subr.mxu0 %v1188_v39  ;;  %5698 = vmatpush3.msra.mxu1 %v1125_v41  ;;  %v1732_v39 = vrot.slane %v1718_v29, %v6276_v52  ;;  %v1206_v41 = vld [vmem:[%s6227_s29 + $0x1d88] sm:$0xff]  ;;  %v257_v29 = vld [vmem:[%s6222_s25 + $0x78] sm:$0xff] }
 0x1f3   : > { %3831 = vmatprep.mubr.f32.mxu1 %v1717_v40  ;;  %5703 = vmatpush3.msra.mxu0 %v1172_v42  ;;  %v1173_v40 = vld [vmem:[%s6227_s29 + $0x1c80] sm:$0xff] }
 0x1f4   : > { %3832 = vmatmul.mubr.f32.vlgmr.msra.gmra.mxu1 %v1715_v32  ;;  %5704 = vmatprep.subr.mxu0 %v1187_v43  ;;  %v1725_v32 = vrot.slane %v256_v22, %v6276_v52  ;;  %v1157_v43 = vld [vmem:[%s6227_s29 + $0x1c00] sm:$0xff]  ;;  %v1260_v22 = vld [vmem:[%s6227_s29 + $0x1f38] sm:$0xff] }
 0x1f5   : > { %5737 = vmatprep.subr.mxu1 %v1220_v44  ;;  %5705 = vmatpush3.msra.mxu0 %v1171_v45  ;;  %v1190_v44 = vld [vmem:[%s6227_s29 + $0x1d08] sm:$0xff]  ;;  %v1205_v45 = vld [vmem:[%s6227_s29 + $0x1d80] sm:$0xff] }
 0x1f6   : > { %5738 = vmatpush3.msra.mxu1 %v1204_v46  ;;  %5706 = vmatprep.subr.mxu0 %v1186_v47  ;;  %v1733_v42 = vcombine.high %v1725_v32, %v1725_v32  ;;  %v1252_v46 = vld [vmem:[%s6227_s29 + $0x1ef8] sm:$0xff]  ;;  %v1734_v47 = vcombine.high %v1732_v39, %v1732_v39 }
 0x1f7   : > { %5739 = vmatprep.subr.mxu1 %v1219_v48  ;;  %5707 = vmatpush3.msra.mxu0 %v1170_v49  ;;  %v1189_v48 = vld [vmem:[%s6227_s29 + $0x1d00] sm:$0xff]  ;;  %v1236_v49 = vld [vmem:[%s6227_s29 + $0x1e78] sm:$0xff] }
 0x1f8   : > { %5740 = vmatpush3.msra.mxu1 %v1203_v50  ;;  %5708 = vmatprep.subr.mxu0 %v1185_v51  ;;  %v1251_v50 = vld [vmem:[%s6227_s29 + $0x1ef0] sm:$0xff]  ;;  %v1284_v51 = vld [vmem:[%s6227_s29 + $0x1ff8] sm:$0xff] }
 0x1f9   : > { %5741 = vmatprep.subr.mxu1 %v1218_v53  ;;  %5709 = vmatpush3.msra.mxu0 %v1169_v54  ;;  %v1235_v53 = vld [vmem:[%s6227_s29 + $0x1e70] sm:$0xff]  ;;  %v1268_v54 = vld [vmem:[%s6227_s29 + $0x1f78] sm:$0xff] }
 0x1fa   : > { %5742 = vmatpush3.msra.mxu1 %v1202_v55  ;;  %5710 = vmatprep.subr.mxu0 %v1184_v56  ;;  %v1250_v55 = vld [vmem:[%s6227_s29 + $0x1ee8] sm:$0xff]  ;;  %v1283_v56 = vld [vmem:[%s6227_s29 + $0x1ff0] sm:$0xff] }
 0x1fb   : > { %5743 = vmatprep.subr.mxu1 %v1217_v57  ;;  %5711 = vmatpush3.msra.mxu0 %v1168_v58  ;;  %v1234_v57 = vld [vmem:[%s6227_s29 + $0x1e68] sm:$0xff]  ;;  %v1267_v58 = vld [vmem:[%s6227_s29 + $0x1f70] sm:$0xff] }
 0x1fc   : > { %5744 = vmatpush3.msra.mxu1 %v1201_v59  ;;  %5712 = vmatprep.subr.mxu0 %v1183_v60  ;;  %v1249_v59 = vld [vmem:[%s6227_s29 + $0x1ee0] sm:$0xff]  ;;  %v1282_v60 = vld [vmem:[%s6227_s29 + $0x1fe8] sm:$0xff] }
 0x1fd   : > { %5745 = vmatprep.subr.mxu1 %v1216_v61  ;;  %5713 = vmatpush3.msra.mxu0 %v1167_v62  ;;  %v1233_v61 = vld [vmem:[%s6227_s29 + $0x1e60] sm:$0xff]  ;;  %v1266_v62 = vld [vmem:[%s6227_s29 + $0x1f68] sm:$0xff] }
 0x1fe   : > { %5746 = vmatpush3.msra.mxu1 %v1200_v63  ;;  %5714 = vmatprep.subr.mxu0 %v1182_v0  ;;  %v1248_v63 = vld [vmem:[%s6227_s29 + $0x1ed8] sm:$0xff]  ;;  %v1281_v0 = vld [vmem:[%s6227_s29 + $0x1fe0] sm:$0xff] }
 0x1ff   : > { %5747 = vmatprep.subr.mxu1 %v1215_v1  ;;  %5715 = vmatpush3.msra.mxu0 %v1166_v2  ;;  %v1232_v1 = vld [vmem:[%s6227_s29 + $0x1e58] sm:$0xff]  ;;  %v1265_v2 = vld [vmem:[%s6227_s29 + $0x1f60] sm:$0xff] }
 0x200   : > { %5748 = vmatpush3.msra.mxu1 %v1199_v3  ;;  %5716 = vmatprep.subr.mxu0 %v1181_v4  ;;  %v1247_v3 = vld [vmem:[%s6227_s29 + $0x1ed0] sm:$0xff]  ;;  %v1280_v4 = vld [vmem:[%s6227_s29 + $0x1fd8] sm:$0xff] }
 0x201   : > { %5749 = vmatprep.subr.mxu1 %v1214_v5  ;;  %5717 = vmatpush3.msra.mxu0 %v1165_v6  ;;  %v1231_v5 = vld [vmem:[%s6227_s29 + $0x1e50] sm:$0xff]  ;;  %v1264_v6 = vld [vmem:[%s6227_s29 + $0x1f58] sm:$0xff] }
 0x202   : > { %5750 = vmatpush3.msra.mxu1 %v1198_v7  ;;  %5718 = vmatprep.subr.mxu0 %v1180_v8  ;;  %v1246_v7 = vld [vmem:[%s6227_s29 + $0x1ec8] sm:$0xff]  ;;  %v1279_v8 = vld [vmem:[%s6227_s29 + $0x1fd0] sm:$0xff] }
 0x203   : > { %5751 = vmatprep.subr.mxu1 %v1213_v9  ;;  %5719 = vmatpush3.msra.mxu0 %v1164_v10  ;;  %v1230_v9 = vld [vmem:[%s6227_s29 + $0x1e48] sm:$0xff]  ;;  %v1263_v10 = vld [vmem:[%s6227_s29 + $0x1f50] sm:$0xff] }
 0x204   : > { %5752 = vmatpush3.msra.mxu1 %v1197_v11  ;;  %5720 = vmatprep.subr.mxu0 %v1179_v12  ;;  %v1245_v11 = vld [vmem:[%s6227_s29 + $0x1ec0] sm:$0xff]  ;;  %v1278_v12 = vld [vmem:[%s6227_s29 + $0x1fc8] sm:$0xff] }
 0x205   : > { %5753 = vmatprep.subr.mxu1 %v1212_v13  ;;  %5721 = vmatpush3.msra.mxu0 %v1163_v14  ;;  %v1229_v13 = vld [vmem:[%s6227_s29 + $0x1e40] sm:$0xff]  ;;  %v1262_v14 = vld [vmem:[%s6227_s29 + $0x1f48] sm:$0xff] }
 0x206   : > { %5754 = vmatpush3.msra.mxu1 %v1196_v15  ;;  %5722 = vmatprep.subr.mxu0 %v1178_v16  ;;  %v1244_v15 = vld [vmem:[%s6227_s29 + $0x1eb8] sm:$0xff]  ;;  %v1277_v16 = vld [vmem:[%s6227_s29 + $0x1fc0] sm:$0xff] }
 0x207   : > { %5755 = vmatprep.subr.mxu1 %v1211_v17  ;;  %5723 = vmatpush3.msra.mxu0 %v1162_v18  ;;  %v1228_v17 = vld [vmem:[%s6227_s29 + $0x1e38] sm:$0xff]  ;;  %v1261_v18 = vld [vmem:[%s6227_s29 + $0x1f40] sm:$0xff] }
 0x208   : > { %5756 = vmatpush3.msra.mxu1 %v1195_v19  ;;  %5724 = vmatprep.subr.mxu0 %v1177_v20  ;;  %v1243_v19 = vld [vmem:[%s6227_s29 + $0x1eb0] sm:$0xff]  ;;  %v1276_v20 = vld [vmem:[%s6227_s29 + $0x1fb8] sm:$0xff] }
 0x209   : > { %5757 = vmatprep.subr.mxu1 %v1210_v21  ;;  %5725 = vmatpush3.msra.mxu0 %v1161_v23  ;;  %v1227_v21 = vld [vmem:[%s6227_s29 + $0x1e30] sm:$0xff]  ;;  %v1242_v23 = vld [vmem:[%s6227_s29 + $0x1ea8] sm:$0xff] }
 0x20a   : > { %5758 = vmatpush3.msra.mxu1 %v1194_v24  ;;  %5726 = vmatprep.subr.mxu0 %v1176_v25  ;;  %v1275_v24 = vld [vmem:[%s6227_s29 + $0x1fb0] sm:$0xff]  ;;  %v1226_v25 = vld [vmem:[%s6227_s29 + $0x1e28] sm:$0xff] }
 0x20b   : > { %5759 = vmatprep.subr.mxu1 %v1209_v26  ;;  %5727 = vmatpush3.msra.mxu0 %v1160_v27  ;;  %v1259_v26 = vld [vmem:[%s6227_s29 + $0x1f30] sm:$0xff]  ;;  %v1241_v27 = vld [vmem:[%s6227_s29 + $0x1ea0] sm:$0xff] }
 0x20c   : > { %5760 = vmatpush3.msra.mxu1 %v1193_v28  ;;  %5728 = vmatprep.subr.mxu0 %v1175_v30  ;;  %v1274_v28 = vld [vmem:[%s6227_s29 + $0x1fa8] sm:$0xff]  ;;  %v1225_v30 = vld [vmem:[%s6227_s29 + $0x1e20] sm:$0xff] }
 0x20d   : > { %5761 = vmatprep.subr.mxu1 %v1208_v31  ;;  %5729 = vmatpush3.msra.mxu0 %v1159_v33  ;;  %v1258_v31 = vld [vmem:[%s6227_s29 + $0x1f28] sm:$0xff]  ;;  %v1273_v33 = vld [vmem:[%s6227_s29 + $0x1fa0] sm:$0xff] }
 0x20e   : > { %5762 = vmatpush3.msra.mxu1 %v1192_v34  ;;  %5730 = vmatprep.subr.mxu0 %v1174_v35  ;;  %v1224_v34 = vld [vmem:[%s6227_s29 + $0x1e18] sm:$0xff]  ;;  %v1257_v35 = vld [vmem:[%s6227_s29 + $0x1f20] sm:$0xff] }
 0x20f   : > { %5763 = vmatprep.subr.mxu1 %v1207_v36  ;;  %5731 = vmatpush3.msra.mxu0 %v1158_v37  ;;  %v1735_v36 = vcombine.high %v257_v29, %v257_v29  ;;  %v1239_v37 = vld [vmem:[%s6227_s29 + $0x1e90] sm:$0xff] }
 0x210   : > { %5764 = vmatpush3.msra.mxu1 %v1191_v38  ;;  %5732 = vmatprep.subr.mxu0 %v1173_v40  ;;  %v1272_v38 = vld [vmem:[%s6227_s29 + $0x1f98] sm:$0xff]  ;;  %v1223_v40 = vld [vmem:[%s6227_s29 + $0x1e10] sm:$0xff] }
 0x211   : > { %5765 = vmatprep.subr.mxu1 %v1206_v41  ;;  %5733 = vmatpush3.msra.mxu0 %v1157_v43  ;;  %v1256_v41 = vld [vmem:[%s6227_s29 + $0x1f18] sm:$0xff]  ;;  %v1271_v43 = vld [vmem:[%s6227_s29 + $0x1f90] sm:$0xff] }
 0x212   : > { %3901 = vmatprep.mubr.f32.mxu0 %v1733_v42  ;;  %5766 = vmatpush3.msra.mxu1 %v1190_v44  ;;  %v1238_v42 = vld [vmem:[%s6227_s29 + $0x1e88] sm:$0xff] }
 0x213   : > { %3902 = vmatmul.mubr.f32.vlgmr.msra.gmra.mxu0 %v1725_v32  ;;  %5767 = vmatprep.subr.mxu1 %v1205_v45  ;;  %v1240_v32 = vld [vmem:[%s6227_s29 + $0x1e98] sm:$0xff]  ;;  %v1222_v44 = vld [vmem:[%s6227_s29 + $0x1e08] sm:$0xff]  ;;  %v1255_v45 = vld [vmem:[%s6227_s29 + $0x1f10] sm:$0xff] }
 0x214   : > { %5772 = vmatprep.subr.mxu0 %v1252_v46  ;;  %5768 = vmatpush3.msra.mxu1 %v1189_v48  ;;  %v1749_v46 = vrot.slane %v1735_v36, %v6276_v52  ;;  %v1270_v48 = vld [vmem:[%s6227_s29 + $0x1f88] sm:$0xff]  ;;  %v258_v36 = vld [vmem:[%s6222_s25 + $0x80] sm:$0xff] }
 0x215   : > { %3971 = vmatprep.mubr.f32.mxu1 %v1734_v47  ;;  %5773 = vmatpush3.msra.mxu0 %v1236_v49  ;;  %v1237_v47 = vld [vmem:[%s6227_s29 + $0x1e80] sm:$0xff] }
 0x216   : > { %3972 = vmatmul.mubr.f32.vlgmr.msra.gmra.mxu1 %v1732_v39  ;;  %5774 = vmatprep.subr.mxu0 %v1251_v50  ;;  %v1742_v39 = vrot.slane %v257_v29, %v6276_v52  ;;  %v1221_v50 = vld [vmem:[%s6227_s29 + $0x1e00] sm:$0xff]  ;;  %v1324_v29 = vld [vmem:[%s6227_s29 + $0x2138] sm:$0xff] }
 0x217   : > { %5807 = vmatprep.subr.mxu1 %v1284_v51  ;;  %5775 = vmatpush3.msra.mxu0 %v1235_v53  ;;  %v1254_v51 = vld [vmem:[%s6227_s29 + $0x1f08] sm:$0xff]  ;;  %v1269_v53 = vld [vmem:[%s6227_s29 + $0x1f80] sm:$0xff] }
 0x218   : > { %5808 = vmatpush3.msra.mxu1 %v1268_v54  ;;  %5776 = vmatprep.subr.mxu0 %v1250_v55  ;;  %v1750_v49 = vcombine.high %v1742_v39, %v1742_v39  ;;  %v1316_v54 = vld [vmem:[%s6227_s29 + $0x20f8] sm:$0xff]  ;;  %v1751_v55 = vcombine.high %v1749_v46, %v1749_v46 }
 0x219   : > { %5809 = vmatprep.subr.mxu1 %v1283_v56  ;;  %5777 = vmatpush3.msra.mxu0 %v1234_v57  ;;  %v1253_v56 = vld [vmem:[%s6227_s29 + $0x1f00] sm:$0xff]  ;;  %v1300_v57 = vld [vmem:[%s6227_s29 + $0x2078] sm:$0xff] }
 0x21a   : > { %5810 = vmatpush3.msra.mxu1 %v1267_v58  ;;  %5778 = vmatprep.subr.mxu0 %v1249_v59  ;;  %v1315_v58 = vld [vmem:[%s6227_s29 + $0x20f0] sm:$0xff]  ;;  %v1348_v59 = vld [vmem:[%s6227_s29 + $0x21f8] sm:$0xff] }
 0x21b   : > { %5811 = vmatprep.subr.mxu1 %v1282_v60  ;;  %5779 = vmatpush3.msra.mxu0 %v1233_v61  ;;  %v1299_v60 = vld [vmem:[%s6227_s29 + $0x2070] sm:$0xff]  ;;  %v1332_v61 = vld [vmem:[%s6227_s29 + $0x2178] sm:$0xff] }
 0x21c   : > { %5812 = vmatpush3.msra.mxu1 %v1266_v62  ;;  %5780 = vmatprep.subr.mxu0 %v1248_v63  ;;  %v1314_v62 = vld [vmem:[%s6227_s29 + $0x20e8] sm:$0xff]  ;;  %v1347_v63 = vld [vmem:[%s6227_s29 + $0x21f0] sm:$0xff] }
 0x21d   : > { %5813 = vmatprep.subr.mxu1 %v1281_v0  ;;  %5781 = vmatpush3.msra.mxu0 %v1232_v1  ;;  %v1298_v0 = vld [vmem:[%s6227_s29 + $0x2068] sm:$0xff]  ;;  %v1331_v1 = vld [vmem:[%s6227_s29 + $0x2170] sm:$0xff] }
 0x21e   : > { %5814 = vmatpush3.msra.mxu1 %v1265_v2  ;;  %5782 = vmatprep.subr.mxu0 %v1247_v3  ;;  %v1313_v2 = vld [vmem:[%s6227_s29 + $0x20e0] sm:$0xff]  ;;  %v1346_v3 = vld [vmem:[%s6227_s29 + $0x21e8] sm:$0xff] }
 0x21f   : > { %5815 = vmatprep.subr.mxu1 %v1280_v4  ;;  %5783 = vmatpush3.msra.mxu0 %v1231_v5  ;;  %v1297_v4 = vld [vmem:[%s6227_s29 + $0x2060] sm:$0xff]  ;;  %v1330_v5 = vld [vmem:[%s6227_s29 + $0x2168] sm:$0xff] }
 0x220   : > { %5816 = vmatpush3.msra.mxu1 %v1264_v6  ;;  %5784 = vmatprep.subr.mxu0 %v1246_v7  ;;  %v1312_v6 = vld [vmem:[%s6227_s29 + $0x20d8] sm:$0xff]  ;;  %v1345_v7 = vld [vmem:[%s6227_s29 + $0x21e0] sm:$0xff] }
 0x221   : > { %5817 = vmatprep.subr.mxu1 %v1279_v8  ;;  %5785 = vmatpush3.msra.mxu0 %v1230_v9  ;;  %v1296_v8 = vld [vmem:[%s6227_s29 + $0x2058] sm:$0xff]  ;;  %v1329_v9 = vld [vmem:[%s6227_s29 + $0x2160] sm:$0xff] }
 0x222   : > { %5818 = vmatpush3.msra.mxu1 %v1263_v10  ;;  %5786 = vmatprep.subr.mxu0 %v1245_v11  ;;  %v1311_v10 = vld [vmem:[%s6227_s29 + $0x20d0] sm:$0xff]  ;;  %v1344_v11 = vld [vmem:[%s6227_s29 + $0x21d8] sm:$0xff] }
 0x223   : > { %5819 = vmatprep.subr.mxu1 %v1278_v12  ;;  %5787 = vmatpush3.msra.mxu0 %v1229_v13  ;;  %v1295_v12 = vld [vmem:[%s6227_s29 + $0x2050] sm:$0xff]  ;;  %v1328_v13 = vld [vmem:[%s6227_s29 + $0x2158] sm:$0xff] }
 0x224   : > { %5820 = vmatpush3.msra.mxu1 %v1262_v14  ;;  %5788 = vmatprep.subr.mxu0 %v1244_v15  ;;  %v1310_v14 = vld [vmem:[%s6227_s29 + $0x20c8] sm:$0xff]  ;;  %v1343_v15 = vld [vmem:[%s6227_s29 + $0x21d0] sm:$0xff] }
 0x225   : > { %5821 = vmatprep.subr.mxu1 %v1277_v16  ;;  %5789 = vmatpush3.msra.mxu0 %v1228_v17  ;;  %v1294_v16 = vld [vmem:[%s6227_s29 + $0x2048] sm:$0xff]  ;;  %v1327_v17 = vld [vmem:[%s6227_s29 + $0x2150] sm:$0xff] }
 0x226   : > { %5822 = vmatpush3.msra.mxu1 %v1261_v18  ;;  %5790 = vmatprep.subr.mxu0 %v1243_v19  ;;  %v1309_v18 = vld [vmem:[%s6227_s29 + $0x20c0] sm:$0xff]  ;;  %v1342_v19 = vld [vmem:[%s6227_s29 + $0x21c8] sm:$0xff] }
 0x227   : > { %5823 = vmatprep.subr.mxu1 %v1276_v20  ;;  %5791 = vmatpush3.msra.mxu0 %v1227_v21  ;;  %v1293_v20 = vld [vmem:[%s6227_s29 + $0x2040] sm:$0xff]  ;;  %v1326_v21 = vld [vmem:[%s6227_s29 + $0x2148] sm:$0xff] }
 0x228   : > { %5824 = vmatpush3.msra.mxu1 %v1260_v22  ;;  %5792 = vmatprep.subr.mxu0 %v1242_v23  ;;  %v1308_v22 = vld [vmem:[%s6227_s29 + $0x20b8] sm:$0xff]  ;;  %v1341_v23 = vld [vmem:[%s6227_s29 + $0x21c0] sm:$0xff] }
 0x229   : > { %5825 = vmatprep.subr.mxu1 %v1275_v24  ;;  %5793 = vmatpush3.msra.mxu0 %v1226_v25  ;;  %v1292_v24 = vld [vmem:[%s6227_s29 + $0x2038] sm:$0xff]  ;;  %v1325_v25 = vld [vmem:[%s6227_s29 + $0x2140] sm:$0xff] }
 0x22a   : > { %5826 = vmatpush3.msra.mxu1 %v1259_v26  ;;  %5794 = vmatprep.subr.mxu0 %v1241_v27  ;;  %v1307_v26 = vld [vmem:[%s6227_s29 + $0x20b0] sm:$0xff]  ;;  %v1340_v27 = vld [vmem:[%s6227_s29 + $0x21b8] sm:$0xff] }
 0x22b   : > { %5827 = vmatprep.subr.mxu1 %v1274_v28  ;;  %5795 = vmatpush3.msra.mxu0 %v1225_v30  ;;  %v1291_v28 = vld [vmem:[%s6227_s29 + $0x2030] sm:$0xff]  ;;  %v1306_v30 = vld [vmem:[%s6227_s29 + $0x20a8] sm:$0xff] }
 0x22c   : > { %5828 = vmatpush3.msra.mxu1 %v1258_v31  ;;  %5796 = vmatprep.subr.mxu0 %v1240_v32  ;;  %v1339_v31 = vld [vmem:[%s6227_s29 + $0x21b0] sm:$0xff]  ;;  %v1290_v32 = vld [vmem:[%s6227_s29 + $0x2028] sm:$0xff] }
 0x22d   : > { %5829 = vmatprep.subr.mxu1 %v1273_v33  ;;  %5797 = vmatpush3.msra.mxu0 %v1224_v34  ;;  %v1323_v33 = vld [vmem:[%s6227_s29 + $0x2130] sm:$0xff]  ;;  %v1305_v34 = vld [vmem:[%s6227_s29 + $0x20a0] sm:$0xff] }
 0x22e   : > { %5830 = vmatpush3.msra.mxu1 %v1257_v35  ;;  %5798 = vmatprep.subr.mxu0 %v1239_v37  ;;  %v1338_v35 = vld [vmem:[%s6227_s29 + $0x21a8] sm:$0xff]  ;;  %v1289_v37 = vld [vmem:[%s6227_s29 + $0x2020] sm:$0xff] }
 0x22f   : > { %5831 = vmatprep.subr.mxu1 %v1272_v38  ;;  %5799 = vmatpush3.msra.mxu0 %v1223_v40  ;;  %v1322_v38 = vld [vmem:[%s6227_s29 + $0x2128] sm:$0xff]  ;;  %v1337_v40 = vld [vmem:[%s6227_s29 + $0x21a0] sm:$0xff] }
 0x230   : > { %5832 = vmatpush3.msra.mxu1 %v1256_v41  ;;  %5800 = vmatprep.subr.mxu0 %v1238_v42  ;;  %v1288_v41 = vld [vmem:[%s6227_s29 + $0x2018] sm:$0xff]  ;;  %v1321_v42 = vld [vmem:[%s6227_s29 + $0x2120] sm:$0xff] }
 0x231   : > { %5833 = vmatprep.subr.mxu1 %v1271_v43  ;;  %5801 = vmatpush3.msra.mxu0 %v1222_v44  ;;  %v1752_v43 = vcombine.high %v258_v36, %v258_v36  ;;  %v1303_v44 = vld [vmem:[%s6227_s29 + $0x2090] sm:$0xff] }
 0x232   : > { %5834 = vmatpush3.msra.mxu1 %v1255_v45  ;;  %5802 = vmatprep.subr.mxu0 %v1237_v47  ;;  %v1336_v45 = vld [vmem:[%s6227_s29 + $0x2198] sm:$0xff]  ;;  %v1287_v47 = vld [vmem:[%s6227_s29 + $0x2010] sm:$0xff] }
 0x233   : > { %5835 = vmatprep.subr.mxu1 %v1270_v48  ;;  %5803 = vmatpush3.msra.mxu0 %v1221_v50  ;;  %v1320_v48 = vld [vmem:[%s6227_s29 + $0x2118] sm:$0xff]  ;;  %v1335_v50 = vld [vmem:[%s6227_s29 + $0x2190] sm:$0xff] }
 0x234   : > { %4041 = vmatprep.mubr.f32.mxu0 %v1750_v49  ;;  %5836 = vmatpush3.msra.mxu1 %v1254_v51  ;;  %v1302_v49 = vld [vmem:[%s6227_s29 + $0x2088] sm:$0xff] }
 0x235   : > { %4042 = vmatmul.mubr.f32.vlgmr.msra.gmra.mxu0 %v1742_v39  ;;  %5837 = vmatprep.subr.mxu1 %v1269_v53  ;;  %v1304_v39 = vld [vmem:[%s6227_s29 + $0x2098] sm:$0xff]  ;;  %v1286_v51 = vld [vmem:[%s6227_s29 + $0x2008] sm:$0xff]  ;;  %v1319_v53 = vld [vmem:[%s6227_s29 + $0x2110] sm:$0xff] }
 0x236   : > { %5842 = vmatprep.subr.mxu0 %v1316_v54  ;;  %5838 = vmatpush3.msra.mxu1 %v1253_v56  ;;  %v1766_v54 = vrot.slane %v1752_v43, %v6276_v52  ;;  %v1334_v56 = vld [vmem:[%s6227_s29 + $0x2188] sm:$0xff] }
 0x237   : > { %4111 = vmatprep.mubr.f32.mxu1 %v1751_v55  ;;  %5843 = vmatpush3.msra.mxu0 %v1300_v57  ;;  %v1301_v55 = vld [vmem:[%s6227_s29 + $0x2080] sm:$0xff]  ;;  %v259_v43 = vld [vmem:[%s6222_s25 + $0x88] sm:$0xff] }
 0x238   : > { %4112 = vmatmul.mubr.f32.vlgmr.msra.gmra.mxu1 %v1749_v46  ;;  %5844 = vmatprep.subr.mxu0 %v1315_v58  ;;  %v1759_v46 = vrot.slane %v258_v36, %v6276_v52  ;;  %v1285_v58 = vld [vmem:[%s6227_s29 + $0x2000] sm:$0xff]  ;;  %v1388_v36 = vld [vmem:[%s6227_s29 + $0x2338] sm:$0xff] }
 0x239   : > { %5877 = vmatprep.subr.mxu1 %v1348_v59  ;;  %5845 = vmatpush3.msra.mxu0 %v1299_v60  ;;  %v1318_v59 = vld [vmem:[%s6227_s29 + $0x2108] sm:$0xff]  ;;  %v1333_v60 = vld [vmem:[%s6227_s29 + $0x2180] sm:$0xff] }
 0x23a   : > { %5878 = vmatpush3.msra.mxu1 %v1332_v61  ;;  %5846 = vmatprep.subr.mxu0 %v1314_v62  ;;  %v1767_v57 = vcombine.high %v1759_v46, %v1759_v46  ;;  %v1380_v61 = vld [vmem:[%s6227_s29 + $0x22f8] sm:$0xff]  ;;  %v1768_v62 = vcombine.high %v1766_v54, %v1766_v54 }
 0x23b   : > { %5879 = vmatprep.subr.mxu1 %v1347_v63  ;;  %5847 = vmatpush3.msra.mxu0 %v1298_v0  ;;  %v1317_v63 = vld [vmem:[%s6227_s29 + $0x2100] sm:$0xff]  ;;  %v1364_v0 = vld [vmem:[%s6227_s29 + $0x2278] sm:$0xff] }
 0x23c   : > { %5880 = vmatpush3.msra.mxu1 %v1331_v1  ;;  %5848 = vmatprep.subr.mxu0 %v1313_v2  ;;  %v1379_v1 = vld [vmem:[%s6227_s29 + $0x22f0] sm:$0xff]  ;;  %v1412_v2 = vld [vmem:[%s6227_s29 + $0x23f8] sm:$0xff] }
 0x23d   : > { %5881 = vmatprep.subr.mxu1 %v1346_v3  ;;  %5849 = vmatpush3.msra.mxu0 %v1297_v4  ;;  %v1363_v3 = vld [vmem:[%s6227_s29 + $0x2270] sm:$0xff]  ;;  %v1396_v4 = vld [vmem:[%s6227_s29 + $0x2378] sm:$0xff] }
 0x23e   : > { %5882 = vmatpush3.msra.mxu1 %v1330_v5  ;;  %5850 = vmatprep.subr.mxu0 %v1312_v6  ;;  %v1378_v5 = vld [vmem:[%s6227_s29 + $0x22e8] sm:$0xff]  ;;  %v1411_v6 = vld [vmem:[%s6227_s29 + $0x23f0] sm:$0xff] }
 0x23f   : > { %5883 = vmatprep.subr.mxu1 %v1345_v7  ;;  %5851 = vmatpush3.msra.mxu0 %v1296_v8  ;;  %v1362_v7 = vld [vmem:[%s6227_s29 + $0x2268] sm:$0xff]  ;;  %v1395_v8 = vld [vmem:[%s6227_s29 + $0x2370] sm:$0xff] }
 0x240   : > { %5884 = vmatpush3.msra.mxu1 %v1329_v9  ;;  %5852 = vmatprep.subr.mxu0 %v1311_v10  ;;  %v1377_v9 = vld [vmem:[%s6227_s29 + $0x22e0] sm:$0xff]  ;;  %v1410_v10 = vld [vmem:[%s6227_s29 + $0x23e8] sm:$0xff] }
 0x241   : > { %5885 = vmatprep.subr.mxu1 %v1344_v11  ;;  %5853 = vmatpush3.msra.mxu0 %v1295_v12  ;;  %v1361_v11 = vld [vmem:[%s6227_s29 + $0x2260] sm:$0xff]  ;;  %v1394_v12 = vld [vmem:[%s6227_s29 + $0x2368] sm:$0xff] }
 0x242   : > { %5886 = vmatpush3.msra.mxu1 %v1328_v13  ;;  %5854 = vmatprep.subr.mxu0 %v1310_v14  ;;  %v1376_v13 = vld [vmem:[%s6227_s29 + $0x22d8] sm:$0xff]  ;;  %v1409_v14 = vld [vmem:[%s6227_s29 + $0x23e0] sm:$0xff] }
 0x243   : > { %5887 = vmatprep.subr.mxu1 %v1343_v15  ;;  %5855 = vmatpush3.msra.mxu0 %v1294_v16  ;;  %v1360_v15 = vld [vmem:[%s6227_s29 + $0x2258] sm:$0xff]  ;;  %v1393_v16 = vld [vmem:[%s6227_s29 + $0x2360] sm:$0xff] }
 0x244   : > { %5888 = vmatpush3.msra.mxu1 %v1327_v17  ;;  %5856 = vmatprep.subr.mxu0 %v1309_v18  ;;  %v1375_v17 = vld [vmem:[%s6227_s29 + $0x22d0] sm:$0xff]  ;;  %v1408_v18 = vld [vmem:[%s6227_s29 + $0x23d8] sm:$0xff] }
 0x245   : > { %5889 = vmatprep.subr.mxu1 %v1342_v19  ;;  %5857 = vmatpush3.msra.mxu0 %v1293_v20  ;;  %v1359_v19 = vld [vmem:[%s6227_s29 + $0x2250] sm:$0xff]  ;;  %v1392_v20 = vld [vmem:[%s6227_s29 + $0x2358] sm:$0xff] }
 0x246   : > { %5890 = vmatpush3.msra.mxu1 %v1326_v21  ;;  %5858 = vmatprep.subr.mxu0 %v1308_v22  ;;  %v1374_v21 = vld [vmem:[%s6227_s29 + $0x22c8] sm:$0xff]  ;;  %v1407_v22 = vld [vmem:[%s6227_s29 + $0x23d0] sm:$0xff] }
 0x247   : > { %5891 = vmatprep.subr.mxu1 %v1341_v23  ;;  %5859 = vmatpush3.msra.mxu0 %v1292_v24  ;;  %v1358_v23 = vld [vmem:[%s6227_s29 + $0x2248] sm:$0xff]  ;;  %v1391_v24 = vld [vmem:[%s6227_s29 + $0x2350] sm:$0xff] }
 0x248   : > { %5892 = vmatpush3.msra.mxu1 %v1325_v25  ;;  %5860 = vmatprep.subr.mxu0 %v1307_v26  ;;  %v1373_v25 = vld [vmem:[%s6227_s29 + $0x22c0] sm:$0xff]  ;;  %v1406_v26 = vld [vmem:[%s6227_s29 + $0x23c8] sm:$0xff] }
 0x249   : > { %5893 = vmatprep.subr.mxu1 %v1340_v27  ;;  %5861 = vmatpush3.msra.mxu0 %v1291_v28  ;;  %v1357_v27 = vld [vmem:[%s6227_s29 + $0x2240] sm:$0xff]  ;;  %v1390_v28 = vld [vmem:[%s6227_s29 + $0x2348] sm:$0xff] }
 0x24a   : > { %5894 = vmatpush3.msra.mxu1 %v1324_v29  ;;  %5862 = vmatprep.subr.mxu0 %v1306_v30  ;;  %v1372_v29 = vld [vmem:[%s6227_s29 + $0x22b8] sm:$0xff]  ;;  %v1405_v30 = vld [vmem:[%s6227_s29 + $0x23c0] sm:$0xff] }
 0x24b   : > { %5895 = vmatprep.subr.mxu1 %v1339_v31  ;;  %5863 = vmatpush3.msra.mxu0 %v1290_v32  ;;  %v1356_v31 = vld [vmem:[%s6227_s29 + $0x2238] sm:$0xff]  ;;  %v1389_v32 = vld [vmem:[%s6227_s29 + $0x2340] sm:$0xff] }
 0x24c   : > { %5896 = vmatpush3.msra.mxu1 %v1323_v33  ;;  %5864 = vmatprep.subr.mxu0 %v1305_v34  ;;  %v1371_v33 = vld [vmem:[%s6227_s29 + $0x22b0] sm:$0xff]  ;;  %v1404_v34 = vld [vmem:[%s6227_s29 + $0x23b8] sm:$0xff] }
 0x24d   : > { %5897 = vmatprep.subr.mxu1 %v1338_v35  ;;  %5865 = vmatpush3.msra.mxu0 %v1289_v37  ;;  %v1355_v35 = vld [vmem:[%s6227_s29 + $0x2230] sm:$0xff]  ;;  %v1370_v37 = vld [vmem:[%s6227_s29 + $0x22a8] sm:$0xff] }
 0x24e   : > { %5898 = vmatpush3.msra.mxu1 %v1322_v38  ;;  %5866 = vmatprep.subr.mxu0 %v1304_v39  ;;  %v1403_v38 = vld [vmem:[%s6227_s29 + $0x23b0] sm:$0xff]  ;;  %v1354_v39 = vld [vmem:[%s6227_s29 + $0x2228] sm:$0xff] }
 0x24f   : > { %5899 = vmatprep.subr.mxu1 %v1337_v40  ;;  %5867 = vmatpush3.msra.mxu0 %v1288_v41  ;;  %v1387_v40 = vld [vmem:[%s6227_s29 + $0x2330] sm:$0xff]  ;;  %v1369_v41 = vld [vmem:[%s6227_s29 + $0x22a0] sm:$0xff] }
 0x250   : > { %5900 = vmatpush3.msra.mxu1 %v1321_v42  ;;  %5868 = vmatprep.subr.mxu0 %v1303_v44  ;;  %v1402_v42 = vld [vmem:[%s6227_s29 + $0x23a8] sm:$0xff]  ;;  %v1353_v44 = vld [vmem:[%s6227_s29 + $0x2220] sm:$0xff] }
 0x251   : > { %5901 = vmatprep.subr.mxu1 %v1336_v45  ;;  %5869 = vmatpush3.msra.mxu0 %v1287_v47  ;;  %v1386_v45 = vld [vmem:[%s6227_s29 + $0x2328] sm:$0xff]  ;;  %v1401_v47 = vld [vmem:[%s6227_s29 + $0x23a0] sm:$0xff] }
 0x252   : > { %5902 = vmatpush3.msra.mxu1 %v1320_v48  ;;  %5870 = vmatprep.subr.mxu0 %v1302_v49  ;;  %v1352_v48 = vld [vmem:[%s6227_s29 + $0x2218] sm:$0xff]  ;;  %v1385_v49 = vld [vmem:[%s6227_s29 + $0x2320] sm:$0xff] }
 0x253   : > { %5903 = vmatprep.subr.mxu1 %v1335_v50  ;;  %5871 = vmatpush3.msra.mxu0 %v1286_v51  ;;  %v1769_v50 = vcombine.high %v259_v43, %v259_v43  ;;  %v1367_v51 = vld [vmem:[%s6227_s29 + $0x2290] sm:$0xff] }
 0x254   : > { %5904 = vmatpush3.msra.mxu1 %v1319_v53  ;;  %5872 = vmatprep.subr.mxu0 %v1301_v55  ;;  %v1400_v53 = vld [vmem:[%s6227_s29 + $0x2398] sm:$0xff]  ;;  %v1351_v55 = vld [vmem:[%s6227_s29 + $0x2210] sm:$0xff] }
 0x255   : > { %5905 = vmatprep.subr.mxu1 %v1334_v56  ;;  %5873 = vmatpush3.msra.mxu0 %v1285_v58  ;;  %v1384_v56 = vld [vmem:[%s6227_s29 + $0x2318] sm:$0xff]  ;;  %v1399_v58 = vld [vmem:[%s6227_s29 + $0x2390] sm:$0xff] }
 0x256   : > { %4181 = vmatprep.mubr.f32.mxu0 %v1767_v57  ;;  %5906 = vmatpush3.msra.mxu1 %v1318_v59  ;;  %v1366_v57 = vld [vmem:[%s6227_s29 + $0x2288] sm:$0xff] }
 0x257   : > { %4182 = vmatmul.mubr.f32.vlgmr.msra.gmra.mxu0 %v1759_v46  ;;  %5907 = vmatprep.subr.mxu1 %v1333_v60  ;;  %v1368_v46 = vld [vmem:[%s6227_s29 + $0x2298] sm:$0xff]  ;;  %v1350_v59 = vld [vmem:[%s6227_s29 + $0x2208] sm:$0xff]  ;;  %v1383_v60 = vld [vmem:[%s6227_s29 + $0x2310] sm:$0xff] }
 0x258   : > { %5912 = vmatprep.subr.mxu0 %v1380_v61  ;;  %5908 = vmatpush3.msra.mxu1 %v1317_v63  ;;  %v1783_v61 = vrot.slane %v1769_v50, %v6276_v52  ;;  %v1398_v63 = vld [vmem:[%s6227_s29 + $0x2388] sm:$0xff] }
 0x259   : > { %4251 = vmatprep.mubr.f32.mxu1 %v1768_v62  ;;  %5913 = vmatpush3.msra.mxu0 %v1364_v0  ;;  %v1365_v62 = vld [vmem:[%s6227_s29 + $0x2280] sm:$0xff]  ;;  %v1430_v50 = vld [vmem:[%s6227_s29 + $0x2488] sm:$0xff] }
 0x25a   : > { %4252 = vmatmul.mubr.f32.vlgmr.msra.gmra.mxu1 %v1766_v54  ;;  %5914 = vmatprep.subr.mxu0 %v1379_v1  ;;  %v1776_v54 = vrot.slane %v259_v43, %v6276_v52  ;;  %v1349_v1 = vld [vmem:[%s6227_s29 + $0x2200] sm:$0xff]  ;;  %v1432_v43 = vld [vmem:[%s6227_s29 + $0x2498] sm:$0xff] }
 0x25b   : > { %5947 = vmatprep.subr.mxu1 %v1412_v2  ;;  %5915 = vmatpush3.msra.mxu0 %v1363_v3  ;;  %v1382_v2 = vld [vmem:[%s6227_s29 + $0x2308] sm:$0xff]  ;;  %v1397_v3 = vld [vmem:[%s6227_s29 + $0x2380] sm:$0xff] }
 0x25c   : > { %5948 = vmatpush3.msra.mxu1 %v1396_v4  ;;  %5916 = vmatprep.subr.mxu0 %v1378_v5  ;;  %v1784_v0 = vcombine.high %v1776_v54, %v1776_v54  ;;  %v1444_v4 = vld [vmem:[%s6227_s29 + $0x24f8] sm:$0xff]  ;;  %v1785_v5 = vcombine.high %v1783_v61, %v1783_v61 }
 0x25d   : > { %5949 = vmatprep.subr.mxu1 %v1411_v6  ;;  %5917 = vmatpush3.msra.mxu0 %v1362_v7  ;;  %v1381_v6 = vld [vmem:[%s6227_s29 + $0x2300] sm:$0xff]  ;;  %v1428_v7 = vld [vmem:[%s6227_s29 + $0x2478] sm:$0xff] }
 0x25e   : > { %5950 = vmatpush3.msra.mxu1 %v1395_v8  ;;  %5918 = vmatprep.subr.mxu0 %v1377_v9  ;;  %v1443_v8 = vld [vmem:[%s6227_s29 + $0x24f0] sm:$0xff] }
 0x25f   : > { %5951 = vmatprep.subr.mxu1 %v1410_v10  ;;  %5919 = vmatpush3.msra.mxu0 %v1361_v11  ;;  %v1427_v9 = vld [vmem:[%s6227_s29 + $0x2470] sm:$0xff]  ;;  %v1460_v10 = vld [vmem:[%s6227_s29 + $0x2578] sm:$0xff]  ;;  %v1442_v11 = vld [vmem:[%s6227_s29 + $0x24e8] sm:$0xff] }
 0x260   : > { %5952 = vmatpush3.msra.mxu1 %v1394_v12  ;;  %5920 = vmatprep.subr.mxu0 %v1376_v13  ;;  %v6172_v12 = vmov 0.0   ;;  %v1426_v13 = vld [vmem:[%s6227_s29 + $0x2468] sm:$0xff] }
 0x261   : > { %5953 = vmatprep.subr.mxu1 %v1409_v14  ;;  %5921 = vmatpush3.msra.mxu0 %v1360_v15  ;;  %v1459_v14 = vld [vmem:[%s6227_s29 + $0x2570] sm:$0xff]  ;;  %v1441_v15 = vld [vmem:[%s6227_s29 + $0x24e0] sm:$0xff] }
 0x262   : > { %5954 = vmatpush3.msra.mxu1 %v1393_v16  ;;  %5922 = vmatprep.subr.mxu0 %v1375_v17  ;;  %v1425_v16 = vld [vmem:[%s6227_s29 + $0x2460] sm:$0xff]  ;;  %v1458_v17 = vld [vmem:[%s6227_s29 + $0x2568] sm:$0xff] }
 0x263   : > { %5955 = vmatprep.subr.mxu1 %v1408_v18  ;;  %5923 = vmatpush3.msra.mxu0 %v1359_v19  ;;  %v1440_v18 = vld [vmem:[%s6227_s29 + $0x24d8] sm:$0xff] }
 0x264   : > { %5956 = vmatpush3.msra.mxu1 %v1392_v20  ;;  %5924 = vmatprep.subr.mxu0 %v1374_v21  ;;  %v1424_v19 = vld [vmem:[%s6227_s29 + $0x2458] sm:$0xff]  ;;  %v1457_v20 = vld [vmem:[%s6227_s29 + $0x2560] sm:$0xff]  ;;  %v1439_v21 = vld [vmem:[%s6227_s29 + $0x24d0] sm:$0xff] }
 0x265   : > { %5957 = vmatprep.subr.mxu1 %v1407_v22  ;;  %5925 = vmatpush3.msra.mxu0 %v1358_v23  ;;  %v1423_v22 = vld [vmem:[%s6227_s29 + $0x2450] sm:$0xff]  ;;  %v1456_v23 = vld [vmem:[%s6227_s29 + $0x2558] sm:$0xff] }
 0x266   : > { %5958 = vmatpush3.msra.mxu1 %v1391_v24  ;;  %5926 = vmatprep.subr.mxu0 %v1373_v25  ;;  %v1438_v24 = vld [vmem:[%s6227_s29 + $0x24c8] sm:$0xff] }
 0x267   : > { %5959 = vmatprep.subr.mxu1 %v1406_v26  ;;  %5927 = vmatpush3.msra.mxu0 %v1357_v27  ;;  %v1422_v25 = vld [vmem:[%s6227_s29 + $0x2448] sm:$0xff]  ;;  %v1455_v26 = vld [vmem:[%s6227_s29 + $0x2550] sm:$0xff]  ;;  %v1437_v27 = vld [vmem:[%s6227_s29 + $0x24c0] sm:$0xff] }
 0x268   : > { %5960 = vmatpush3.msra.mxu1 %v1390_v28  ;;  %5928 = vmatprep.subr.mxu0 %v1372_v29  ;;  %v1421_v28 = vld [vmem:[%s6227_s29 + $0x2440] sm:$0xff]  ;;  %v1454_v29 = vld [vmem:[%s6227_s29 + $0x2548] sm:$0xff] }
 0x269   : > { %5961 = vmatprep.subr.mxu1 %v1405_v30  ;;  %5929 = vmatpush3.msra.mxu0 %v1356_v31  ;;  %v1436_v30 = vld [vmem:[%s6227_s29 + $0x24b8] sm:$0xff] }
 0x26a   : > { %5962 = vmatpush3.msra.mxu1 %v1389_v32  ;;  %5930 = vmatprep.subr.mxu0 %v1371_v33  ;;  %v1420_v31 = vld [vmem:[%s6227_s29 + $0x2438] sm:$0xff]  ;;  %v1453_v32 = vld [vmem:[%s6227_s29 + $0x2540] sm:$0xff]  ;;  %v1435_v33 = vld [vmem:[%s6227_s29 + $0x24b0] sm:$0xff] }
 0x26b   : > { %5963 = vmatprep.subr.mxu1 %v1404_v34  ;;  %5931 = vmatpush3.msra.mxu0 %v1355_v35  ;;  %v1419_v34 = vld [vmem:[%s6227_s29 + $0x2430] sm:$0xff]  ;;  %v1452_v35 = vld [vmem:[%s6227_s29 + $0x2538] sm:$0xff] }
 0x26c   : > { %5964 = vmatpush3.msra.mxu1 %v1388_v36  ;;  %5932 = vmatprep.subr.mxu0 %v1370_v37  ;;  %v1434_v36 = vld [vmem:[%s6227_s29 + $0x24a8] sm:$0xff] }
 0x26d   : > { %5965 = vmatprep.subr.mxu1 %v1403_v38  ;;  %5933 = vmatpush3.msra.mxu0 %v1354_v39  ;;  %v1418_v37 = vld [vmem:[%s6227_s29 + $0x2428] sm:$0xff]  ;;  %v1451_v38 = vld [vmem:[%s6227_s29 + $0x2530] sm:$0xff] }
 0x26e   : > { %5966 = vmatpush3.msra.mxu1 %v1387_v40  ;;  %5934 = vmatprep.subr.mxu0 %v1369_v41  ;;  %v260_v39 = vld [vmem:[%s6222_s25 + $0x90] sm:$0x3f]  ;;  %v1433_v40 = vld [vmem:[%s6227_s29 + $0x24a0] sm:$0xff] }
 0x26f   : > { %5967 = vmatprep.subr.mxu1 %v1402_v42  ;;  %5935 = vmatpush3.msra.mxu0 %v1353_v44  ;;  %v1417_v41 = vld [vmem:[%s6227_s29 + $0x2420] sm:$0xff]  ;;  %v1450_v42 = vld [vmem:[%s6227_s29 + $0x2528] sm:$0xff]  ;;  %v1793_v44 = vrot.slane %v260_v39, %v6276_v52 }
 0x270   : > { %5968 = vmatpush3.msra.mxu1 %v1386_v45  ;;  %5936 = vmatprep.subr.mxu0 %v1368_v46  ;;  %v1416_v45 = vld [vmem:[%s6227_s29 + $0x2418] sm:$0xff]  ;;  %v1449_v46 = vld [vmem:[%s6227_s29 + $0x2520] sm:$0xff] }
 0x271   : > { %5969 = vmatprep.subr.mxu1 %v1401_v47  ;;  %5937 = vmatpush3.msra.mxu0 %v1352_v48  ;;  %v1431_v47 = vld [vmem:[%s6227_s29 + $0x2490] sm:$0xff] }
 0x272   : > { %5970 = vmatpush3.msra.mxu1 %v1385_v49  ;;  %5938 = vmatprep.subr.mxu0 %v1367_v51  ;;  %v1415_v48 = vld [vmem:[%s6227_s29 + $0x2410] sm:$0xff]  ;;  %v1448_v49 = vld [vmem:[%s6227_s29 + $0x2518] sm:$0xff]  ;;  %v1801_v51 = vcombine.high %v1793_v44, %v1793_v44 }
 0x273   : > { %5971 = vmatprep.subr.mxu1 %v1400_v53  ;;  %5939 = vmatpush3.msra.mxu0 %v1351_v55  ;;  %v1414_v53 = vld [vmem:[%s6227_s29 + $0x2408] sm:$0xff]  ;;  %v1786_v55 = vcombine.high %v260_v39, %v260_v39 }
 0x274   : > { %5972 = vmatpush3.msra.mxu1 %v1384_v56  ;;  %5940 = vmatprep.subr.mxu0 %v1366_v57  ;;  %v1447_v56 = vld [vmem:[%s6227_s29 + $0x2510] sm:$0xff]  ;;  %v1413_v57 = vld [vmem:[%s6227_s29 + $0x2400] sm:$0xff] }
 0x275   : > { %5973 = vmatprep.subr.mxu1 %v1399_v58  ;;  %5941 = vmatpush3.msra.mxu0 %v1350_v59  ;;  %v1446_v58 = vld [vmem:[%s6227_s29 + $0x2508] sm:$0xff]  ;;  %v1445_v59 = vld [vmem:[%s6227_s29 + $0x2500] sm:$0xff] }
 0x276   : > { %5974 = vmatpush3.msra.mxu1 %v1383_v60  ;;  %5942 = vmatprep.subr.mxu0 %v1365_v62  ;;  %v1800_v60 = vrot.slane %v1786_v55, %v6276_v52  ;;  %v4789_v62 = vpop.f32.mrf.mxu1 }
 0x277   : > { %5975 = vmatprep.subr.mxu1 %v1398_v63  ;;  %5943 = vmatpush3.msra.mxu0 %v1349_v1 }
 0x278   : > { %4321 = vmatprep.mubr.f32.mxu0 %v1784_v0  ;;  %5976 = vmatpush3.msra.mxu1 %v1382_v2  ;;  %v4790_v1 = vpop.f32.mrf.mxu1 }
 0x279   : > { %4322 = vmatmul.mubr.f32.vlgmr.msra.gmra.mxu0 %v1776_v54  ;;  %5977 = vmatprep.subr.mxu1 %v1397_v3  ;;  %v1429_v54 = vld [vmem:[%s6227_s29 + $0x2480] sm:$0xff] }
 0x27a   : > { %5982 = vmatprep.subr.mxu0 %v1444_v4  ;;  %5978 = vmatpush3.msra.mxu1 %v1381_v6  ;;  %v4859_v3 = vpop.f32.mrf.mxu1 }
 0x27b   : > { %4391 = vmatprep.mubr.f32.mxu1 %v1785_v5  ;;  %5983 = vmatpush3.msra.mxu0 %v1428_v7  ;;  %v4791_v5 = vadd.f32 %v4790_v1, %v4789_v62 }
 0x27c   : > { %4392 = vmatmul.mubr.f32.vlgmr.msra.gmra.mxu1 %v1783_v61  ;;  %5984 = vmatprep.subr.mxu0 %v1443_v8  ;;  %v4754_v61 = vpop.f32.mrf.mxu0  ;;  %v4860_v7 = vpop.f32.mrf.mxu1 }
 0x27d   : > { %6042 = vmatprep.subr.mxu1 %v6172_v12  ;;  %5985 = vmatpush3.msra.mxu0 %v1427_v9 }
 0x27e   : > { %6043 = vmatpush3.msra.mxu1 %v1460_v10  ;;  %5986 = vmatprep.subr.mxu0 %v1442_v11  ;;  %v4755_v63 = vpop.f32.mrf.mxu0  ;;  %v4929_v10 = vpop.f32.mrf.mxu1 }
 0x27f   : > { %6044 = vmatprep.subr.mxu1 %v6172_v12  ;;  %5987 = vmatpush3.msra.mxu0 %v1426_v13  ;;  %v4756_v4 = vadd.f32 %v4755_v63, %v4754_v61  ;;  %v4861_v13 = vadd.f32 %v4860_v7, %v4859_v3 }
 0x280   : > { %6045 = vmatpush3.msra.mxu1 %v1459_v14  ;;  %5988 = vmatprep.subr.mxu0 %v1441_v15  ;;  %v4824_v0 = vpop.f32.mrf.mxu0  ;;  %v4930_v15 = vpop.f32.mrf.mxu1 }
 0x281   : > { %6046 = vmatprep.subr.mxu1 %v6172_v12  ;;  %5989 = vmatpush3.msra.mxu0 %v1425_v16  ;;  %v2014_v8 = vadd.f32 %v4791_v5, %v4756_v4 }
 0x282   : > { %6047 = vmatpush3.msra.mxu1 %v1458_v17  ;;  %5990 = vmatprep.subr.mxu0 %v1440_v18  ;;  %v4825_v2 = vpop.f32.mrf.mxu0  ;;  %v4999_v18 = vpop.f32.mrf.mxu1 }
 0x283   : > { %6048 = vmatprep.subr.mxu1 %v6172_v12  ;;  %5991 = vmatpush3.msra.mxu0 %v1424_v19  ;;  %v4826_v52 = vadd.f32 %v4825_v2, %v4824_v0 }
 0x284   : > { %6049 = vmatpush3.msra.mxu1 %v1457_v20  ;;  %5992 = vmatprep.subr.mxu0 %v1439_v21  ;;  %v4894_v6 = vpop.f32.mrf.mxu0  ;;  %v4931_v20 = vadd.f32 %v4930_v15, %v4929_v10 }
 0x285   : > { %6050 = vmatprep.subr.mxu1 %v6172_v12  ;;  %5993 = vmatpush3.msra.mxu0 %v1423_v22  ;;  %v2084_v11 = vadd.f32 %v4826_v52, %v2014_v8 }
 0x286   : > { %6051 = vmatpush3.msra.mxu1 %v1456_v23  ;;  %5994 = vmatprep.subr.mxu0 %v1438_v24  ;;  %v4895_v9 = vpop.f32.mrf.mxu0  ;;  %v5000_v23 = vpop.f32.mrf.mxu1 }
 0x287   : > { %6052 = vmatprep.subr.mxu1 %v6172_v12  ;;  %5995 = vmatpush3.msra.mxu0 %v1422_v25  ;;  %v4896_v14 = vadd.f32 %v4895_v9, %v4894_v6  ;;  %v2154_v16 = vadd.f32 %v4861_v13, %v2084_v11 }
 0x288   : > { %6053 = vmatpush3.msra.mxu1 %v1455_v26  ;;  %5996 = vmatprep.subr.mxu0 %v1437_v27  ;;  %v5069_v26 = vpop.f32.mrf.mxu1 }
 0x289   : > { %6054 = vmatprep.subr.mxu1 %v6172_v12  ;;  %5997 = vmatpush3.msra.mxu0 %v1421_v28  ;;  %v2224_v19 = vadd.f32 %v4896_v14, %v2154_v16  ;;  %v5001_v28 = vadd.f32 %v5000_v23, %v4999_v18 }
 0x28a   : > { %6055 = vmatpush3.msra.mxu1 %v1454_v29  ;;  %5998 = vmatprep.subr.mxu0 %v1436_v30 }
 0x28b   : > { %6056 = vmatprep.subr.mxu1 %v6172_v12  ;;  %5999 = vmatpush3.msra.mxu0 %v1420_v31  ;;  %v2294_v24 = vadd.f32 %v4931_v20, %v2224_v19  ;;  %v5070_v31 = vpop.f32.mrf.mxu1 }
 0x28c   : > { %6057 = vmatpush3.msra.mxu1 %v1453_v32  ;;  %6000 = vmatprep.subr.mxu0 %v1435_v33 }
 0x28d   : > { %6058 = vmatprep.subr.mxu1 %v6172_v12  ;;  %6001 = vmatpush3.msra.mxu0 %v1419_v34  ;;  %v5139_v34 = vpop.f32.mrf.mxu1 }
 0x28e   : > { %6059 = vmatpush3.msra.mxu1 %v1452_v35  ;;  %6002 = vmatprep.subr.mxu0 %v1434_v36  ;;  %v5071_v36 = vadd.f32 %v5070_v31, %v5069_v26 }
 0x28f   : > { %6060 = vmatprep.subr.mxu1 %v6172_v12  ;;  %6003 = vmatpush3.msra.mxu0 %v1418_v37  ;;  %v5140_v39 = vpop.f32.mrf.mxu1 }
 0x290   : > { %6061 = vmatpush3.msra.mxu1 %v1451_v38  ;;  %6004 = vmatprep.subr.mxu0 %v1433_v40 }
 0x291   : > { %6062 = vmatprep.subr.mxu1 %v6172_v12  ;;  %6005 = vmatpush3.msra.mxu0 %v1417_v41 }
 0x292   : > { %6063 = vmatpush3.msra.mxu1 %v1450_v42  ;;  %6006 = vmatprep.subr.mxu0 %v1432_v43  ;;  %v5209_v42 = vpop.f32.mrf.mxu1 }
 0x293   : > { %6064 = vmatprep.subr.mxu1 %v6172_v12  ;;  %6007 = vmatpush3.msra.mxu0 %v1416_v45 }
 0x294   : > { %6065 = vmatpush3.msra.mxu1 %v1449_v46  ;;  %6008 = vmatprep.subr.mxu0 %v1431_v47  ;;  %v5210_v47 = vpop.f32.mrf.mxu1 }
 0x295   : > { %6066 = vmatprep.subr.mxu1 %v6172_v12  ;;  %6009 = vmatpush3.msra.mxu0 %v1415_v48 }
 0x296   : > { %6067 = vmatpush3.msra.mxu1 %v1448_v49  ;;  %6010 = vmatprep.subr.mxu0 %v1430_v50  ;;  %v5279_v50 = vpop.f32.mrf.mxu1 }
 0x297   : > { %6068 = vmatprep.subr.mxu1 %v6172_v12  ;;  %6011 = vmatpush3.msra.mxu0 %v1414_v53  ;;  %v5211_v53 = vadd.f32 %v5210_v47, %v5209_v42 }
 0x298   : > { %4461 = vmatprep.mubr.f32.mxu0 %v1801_v51  ;;  %6012 = vmatprep.subr.mxu0 %v1429_v54 }
 0x299   : > { %6069 = vmatpush3.msra.mxu1 %v1447_v56  ;;  %6013 = vmatpush3.msra.mxu0 %v1413_v57  ;;  %v5280_v56 = vpop.f32.mrf.mxu1 }
 0x29a   : > { %6070 = vmatprep.subr.mxu1 %v6172_v12  ;;  %4462 = vmatmul.mubr.f32.vlgmr.msra.gmra.mxu0 %v1793_v44  ;;  %v5141_v44 = vadd.f32 %v5140_v39, %v5139_v34  ;;  %v5281_v61 = vadd.f32 %v5280_v56, %v5279_v50 }
 0x29b   : > { %6071 = vmatpush3.msra.mxu1 %v1446_v58  ;;  %6074 = vmatprep.mubr.msk.f32.mxu1 %vm6173_vm1, %v6172_v12 }
 0x29c   : > { %6072 = vmatprep.subr.mxu1 %v6172_v12  ;;  %v4964_v12 = vpop.f32.mrf.mxu0 }
 0x29d   : > { %6073 = vmatpush3.msra.mxu1 %v1445_v59  ;;  %v5349_v59 = vpop.f32.mrf.mxu1 }
 0x29e   : > { %6075 = vmatmul.mubr.f32.vlgmr.msra.gmra.mxu1 %v1800_v60  ;;  %v4965_v17 = vpop.f32.mrf.mxu0 }
 0x29f   : > { %v4966_v22 = vadd.f32 %v4965_v17, %v4964_v12  ;;  %v5350_v0 = vpop.f32.mrf.mxu1 }
 0x2a0   : > { %v5034_v21 = vpop.f32.mrf.mxu0  ;;  %v5351_v5 = vadd.f32 %v5350_v0, %v5349_v59 }
 0x2a1   : > { %v2364_v27 = vadd.f32 %v4966_v22, %v2294_v24  ;;  %v5419_v3 = vpop.f32.mrf.mxu1 }
 0x2a2   : > { %v5035_v25 = vpop.f32.mrf.mxu0 }
 0x2a3   : > { %v5036_v30 = vadd.f32 %v5035_v25, %v5034_v21  ;;  %v2434_v32 = vadd.f32 %v5001_v28, %v2364_v27  ;;  %v5420_v7 = vpop.f32.mrf.mxu1 }
 0x2a4   : > { %v5104_v29 = vpop.f32.mrf.mxu0  ;;  %v5421_v13 = vadd.f32 %v5420_v7, %v5419_v3 }
 0x2a5   : > { %v2504_v35 = vadd.f32 %v5036_v30, %v2434_v32  ;;  %v5489_v10 = vpop.f32.mrf.mxu1 }
 0x2a6   : > { %v5105_v33 = vpop.f32.mrf.mxu0 }
 0x2a7   : > { %v5106_v38 = vadd.f32 %v5105_v33, %v5104_v29  ;;  %v2574_v40 = vadd.f32 %v5071_v36, %v2504_v35  ;;  %v5490_v15 = vpop.f32.mrf.mxu1 }
 0x2a8   : > { %v5174_v37 = vpop.f32.mrf.mxu0  ;;  %v5491_v20 = vadd.f32 %v5490_v15, %v5489_v10 }
 0x2a9   : > { %v2644_v43 = vadd.f32 %v5106_v38, %v2574_v40  ;;  %v5559_v18 = vpop.f32.mrf.mxu1 }
 0x2aa   : > { %v5175_v41 = vpop.f32.mrf.mxu0 }
 0x2ab   : > { %v5176_v46 = vadd.f32 %v5175_v41, %v5174_v37  ;;  %v2714_v48 = vadd.f32 %v5141_v44, %v2644_v43  ;;  %v5560_v23 = vpop.f32.mrf.mxu1 }
 0x2ac   : > { %v5244_v45 = vpop.f32.mrf.mxu0  ;;  %v5561_v28 = vadd.f32 %v5560_v23, %v5559_v18 }
 0x2ad   : > { %v2784_v51 = vadd.f32 %v5176_v46, %v2714_v48  ;;  %v5629_v26 = vpop.f32.mrf.mxu1 }
 0x2ae   : > { %v5245_v49 = vpop.f32.mrf.mxu0 }
 0x2af   : > { %v5246_v55 = vadd.f32 %v5245_v49, %v5244_v45  ;;  %v2854_v57 = vadd.f32 %v5211_v53, %v2784_v51  ;;  %v5630_v31 = vpop.f32.mrf.mxu1 }
 0x2b0   : > { %v5314_v54 = vpop.f32.mrf.mxu0  ;;  %v5631_v36 = vadd.f32 %v5630_v31, %v5629_v26 }
 0x2b1   : > { %v2924_v60 = vadd.f32 %v5246_v55, %v2854_v57 }
 0x2b2   : > { %v5315_v58 = vpop.f32.mrf.mxu0 }
 0x2b3   : > { %v5316_v63 = vadd.f32 %v5315_v58, %v5314_v54  ;;  %v2994_v1 = vadd.f32 %v5281_v61, %v2924_v60 }
 0x2b4   : > { %v5384_v62 = vpop.f32.mrf.mxu0  ;;  %v5699_v34 = vpop.f32.mrf.mxu1 }
 0x2b5   : > { %v3064_v4 = vadd.f32 %v5316_v63, %v2994_v1 }
 0x2b6   : > { %v5385_v2 = vpop.f32.mrf.mxu0  ;;  %v5700_v39 = vpop.f32.mrf.mxu1 }
 0x2b7   : > { %v5386_v52 = vadd.f32 %v5385_v2, %v5384_v62  ;;  %v3134_v8 = vadd.f32 %v5351_v5, %v3064_v4  ;;  %v5701_v44 = vadd.f32 %v5700_v39, %v5699_v34 }
 0x2b8   : > { %v5454_v6 = vpop.f32.mrf.mxu0 }
 0x2b9   : > { %v3204_v11 = vadd.f32 %v5386_v52, %v3134_v8 }
 0x2ba   : > { %v5455_v9 = vpop.f32.mrf.mxu0 }
 0x2bb   : > { %v5456_v14 = vadd.f32 %v5455_v9, %v5454_v6  ;;  %v3274_v16 = vadd.f32 %v5421_v13, %v3204_v11 }
 0x2bc   : > { %v5524_v12 = vpop.f32.mrf.mxu0 }
 0x2bd   : > { %v3344_v19 = vadd.f32 %v5456_v14, %v3274_v16 }
 0x2be   : > { %v5525_v17 = vpop.f32.mrf.mxu0 }
 0x2bf   : > { %v5526_v22 = vadd.f32 %v5525_v17, %v5524_v12  ;;  %v3414_v24 = vadd.f32 %v5491_v20, %v3344_v19  ;;  %v241_v17 = vld [vmem:[#allocation2] sm:$0x3] }
 0x2c0   : > { %v5594_v21 = vpop.f32.mrf.mxu0 }
 0x2c1   : > { %v3484_v27 = vadd.f32 %v5526_v22, %v3414_v24 }
 0x2c2   : > { %v5595_v25 = vpop.f32.mrf.mxu0 }
 0x2c3   : > { %v5596_v30 = vadd.f32 %v5595_v25, %v5594_v21  ;;  %v3554_v32 = vadd.f32 %v5561_v28, %v3484_v27 }
 0x2c4   : > { %v5664_v29 = vpop.f32.mrf.mxu0 }
 0x2c5   : > { %v3624_v35 = vadd.f32 %v5596_v30, %v3554_v32 }
 0x2c6   : > { %v5665_v33 = vpop.f32.mrf.mxu0 }
 0x2c7   : > { %v5666_v38 = vadd.f32 %v5665_v33, %v5664_v29  ;;  %v3694_v40 = vadd.f32 %v5631_v36, %v3624_v35 }
 0x2c9   : > { %v3764_v43 = vadd.f32 %v5666_v38, %v3694_v40 }
 0x2cb   : > { %v3834_v48 = vadd.f32 %v5701_v44, %v3764_v43 }
 0x2d3   : > { %v5734_v37 = vpop.f32.mrf.mxu0 }
 0x2d5   : > { %v5735_v41 = vpop.f32.mrf.mxu0 }
 0x2d6   : > { %v5769_v42 = vpop.f32.mrf.mxu1  ;;  %v5736_v46 = vadd.f32 %v5735_v41, %v5734_v37 }
 0x2d8   : > { %v5770_v47 = vpop.f32.mrf.mxu1  ;;  %v3904_v51 = vadd.f32 %v5736_v46, %v3834_v48 }
 0x2d9   : > { %v5771_v53 = vadd.f32 %v5770_v47, %v5769_v42 }
 0x2db   : > { %v3974_v57 = vadd.f32 %v5771_v53, %v3904_v51 }
 0x2f5   : > { %v5804_v45 = vpop.f32.mrf.mxu0 }
 0x2f7   : > { %v5805_v49 = vpop.f32.mrf.mxu0 }
 0x2f8   : > { %v5839_v50 = vpop.f32.mrf.mxu1  ;;  %v5806_v55 = vadd.f32 %v5805_v49, %v5804_v45 }
 0x2fa   : > { %v5840_v56 = vpop.f32.mrf.mxu1  ;;  %v4044_v60 = vadd.f32 %v5806_v55, %v3974_v57 }
 0x2fb   : > { %v5841_v61 = vadd.f32 %v5840_v56, %v5839_v50 }
 0x2fd   : > { %v4114_v1 = vadd.f32 %v5841_v61, %v4044_v60 }
 0x317   : > { %v5874_v54 = vpop.f32.mrf.mxu0 }
 0x319   : > { %v5875_v58 = vpop.f32.mrf.mxu0 }
 0x31a   : > { %v5909_v59 = vpop.f32.mrf.mxu1  ;;  %v5876_v63 = vadd.f32 %v5875_v58, %v5874_v54 }
 0x31c   : > { %v5910_v0 = vpop.f32.mrf.mxu1  ;;  %v4184_v4 = vadd.f32 %v5876_v63, %v4114_v1 }
 0x31d   : > { %v5911_v5 = vadd.f32 %v5910_v0, %v5909_v59 }
 0x31f   : > { %v4254_v7 = vadd.f32 %v5911_v5, %v4184_v4 }
 0x339   : > { %v5944_v62 = vpop.f32.mrf.mxu0 }
 0x33b   : > { %v5945_v2 = vpop.f32.mrf.mxu0 }
 0x33c   : > { %v5979_v3 = vpop.f32.mrf.mxu1  ;;  %v5946_v6 = vadd.f32 %v5945_v2, %v5944_v62 }
 0x33e   : > { %v5980_v52 = vpop.f32.mrf.mxu1  ;;  %v4324_v8 = vadd.f32 %v5946_v6, %v4254_v7 }
 0x33f   : > { %v5981_v9 = vadd.f32 %v5980_v52, %v5979_v3 }
 0x341   : > { %v4394_v13 = vadd.f32 %v5981_v9, %v4324_v8 }
 0x35a   : > { %v6014_v10 = vpop.f32.mrf.mxu0 }
 0x35c   : > { %v6015_v11 = vpop.f32.mrf.mxu0 }
 0x35d   : > { %v6016_v12 = vadd.f32 %v6015_v11, %v6014_v10 }
 0x35e   : > { %v4533_v14 = vpop.f32.mrf.mxu1 }
 0x35f   : > { %v4464_v15 = vadd.f32 %v6016_v12, %v4394_v13 }
 0x360   : > { %v6076_v16 = vpop.f32.mrf.mxu1 }
 0x361   : > { %v4534_v18 = vadd.f32 %v4533_v14, %v4464_v15  ;;  %4543 = sbr.rel (%p4713_p6) target bundleno = 1081 (0x439), region = 48 }
 0x363   : > { %v4537_v19 = vadd.f32 %v4534_v18, %v241_v17 }
 0x365   : > { %4539 = vst.msk [vmem:[#allocation2] sm:$0x3] %vm4538_vm2, %v4537_v19 }
 0x366   : > { %v4560_v20 = vld [vmem:[%s7552_s3 + $0x30] sm:$0x3]  ;;  %vm4572_vm3 = vcmask 1041408   ;;  %v6174_v21 = vmov 0.0   ;;  %v4559_v22 = vld [vmem:[%s7552_s3 + $0x28] sm:$0xff]  ;;  %vm6175_vm4 = vmmov 0  }
 0x367   : > { %6077 = vmatprep.subr.mxu0 %v6174_v21  ;;  %6091 = vmatprep.mubr.msk.f32.mxu0 %vm6175_vm4, %v6174_v21  ;;  %v4558_v23 = vld [vmem:[%s7552_s3 + $0x20] sm:$0xff]  ;;  %v4557_v26 = vld [vmem:[%s7552_s3 + $0x18] sm:$0xff]  ;;  %v4556_v27 = vld [vmem:[%s7552_s3 + $0x10] sm:$0xff]  ;;  %vm4568_vm5 = vcmask 408576   ;;  %vm4646_vm6 = vcmask 25600  }
 0x368   : > { %6078 = vmatpush3.msk.msra.mxu0 %vm4572_vm3, %v4560_v20  ;;  %v4714_v25 = vld [vmem:[%s7551_s2] ss:$0 sm:$0xff]  ;;  %v4555_v29 = vld [vmem:[%s7552_s3 + $0x8] sm:$0xff] }
 0x369   : > { %6079 = vmatprep.subr.mxu0 %v6174_v21  ;;  %v4554_v30 = vld [vmem:[%s7552_s3] sm:$0xff] }
 0x36a   : > { %6080 = vmatpush3.msra.mxu0 %v4559_v22  ;;  %v4715_v32 = vld [vmem:[%s7553_s4] ss:$0 sm:$0xff] }
 0x36b   : > { %6081 = vmatprep.subr.mxu0 %v6174_v21 }
 0x36c   : > { %v4544_v24 = vld [vmem:[#allocation2] sm:$0x3]  ;;  %6082 = vmatpush3.msra.mxu0 %v4558_v23 }
 0x36d   : > { %6083 = vmatprep.subr.mxu0 %v6174_v21  ;;  %v4552_v28 = vadd.f32 %v4714_v25, %v4544_v24 }
 0x36e   : > { %6084 = vmatpush3.msra.mxu0 %v4557_v26 }
 0x36f   : > { %6085 = vmatprep.subr.mxu0 %v6174_v21  ;;  %v4553_v31 = vmax.f32 %v4552_v28, 0.0 }
 0x370   : > { %6086 = vmatpush3.msra.mxu0 %v4556_v27 }
 0x371   : > { %6087 = vmatprep.subr.mxu0 %v6174_v21 }
 0x372   : > { %6088 = vmatpush3.msra.mxu0 %v4555_v29 }
 0x373   : > { %6089 = vmatprep.subr.mxu0 %v6174_v21 }
 0x374   : > { %6090 = vmatpush3.msra.mxu0 %v4554_v30 }
 0x375   : > { %6092 = vmatmul.mubr.msk.f32.vlgmr.msra.gmra.mxu0 %vm4568_vm5, %v4553_v31 }
 0x435   : > { %v4642_v33 = vpop.f32.mrf.mxu0 }
 0x436   : > { %v4643_v34 = vadd.f32 %v4715_v32, %v4642_v33 }
 0x437   : > { %v6093_v35 = vpop.f32.mrf.mxu0 }
 0x438   : > { %4647 = vst.msk [vmem:[#allocation3] sm:$0x3] %vm4646_vm6, %v4643_v34 }
 0x439 PF: > { %p6098_p7 = scmp.eq.s32.totalorder %s6213_s19, 5  ;;  %s6176_s25 = smov [#allocation3]  }
 0x43a   : > { %s4655_s26 = sshll.u32 %s6176_s25, 4  ;;  %s4656_s26 = int_to_ptr.vmem [resolvable:$true] %s4655_s26 }
 0x43b   : > { %s6134_s27 = scalar_lea.vmem %s4656_s26, 32  ;;  %p6141_p11 = scmp.lt.s32.totalorder %s4656_s26, %s4656_s26 }
 0x43c   : > { %p6135_p8 = scmp.ne.s32.totalorder %s4656_s26, %s6134_s27  ;;  %p6142_p12 = scmp.lt.s32.totalorder %s6134_s27, %s6134_s27 }
 0x43e   : > { %p6136_p9 = pnand %p6135_p8, %p6098_p7  ;;  %p6143_p13 = por %p6142_p12, %p6141_p11 }
 0x440   : > { %p6137_p10 = pneg %p6136_p9 }
 0x442   : > { %p6144_p0 = pnand %p6143_p13, %p6137_p10 }
 0x444   : > { %6147 = shalt.err (!%p6144_p0)
}
 0x445   : > { %6095 = dma.vmem_to_hbm [thread:$0]  (%p6098_p7), %s4656_s26, 32, %s7554_s5, [#allocation4]  }
 0x446   : > { %6163 = dma.done.wait (%p6098_p7), [#allocation4], 32  }
 0x447   : > { %6165 = vsyncadd (%p6098_p7), [#allocation4], 4294967264 }
 0x448 PF: > { %s16_s18 = sadd.s32 1, %s6168_s18  }
 0x449   : > { %p13_p1 = scmp.ge.s32.totalorder %s16_s18, 8  }
 0x44b   :  { %15 = sbr.rel (!%p13_p1) target bundleno = 1 (0x1), region = 78 }
 0x450   :  { %4668 = vsyncpa [#allocation4], 1 }
 0x451   :  { %4670 = vsyncpa [#allocation4 + $0x1], 1 }

</bundles_post_ra>
